<compile_context>
chip_gen: v6e
topology: v6e:2x2x1
jax: 0.10.0
libtpu: 0.0.40
codegen_flags: <defaults>
</compile_context>

<pallas_src>
import functools

import jax
import jax.numpy as jnp
from jax.experimental import pallas as pl
from jax.experimental.pallas import tpu as pltpu


NUM_CLASSES = 8
FPN_CH = 128                        # synthetic FPN channel width (lane-dense)
BB_OUT = 2 * FPN_CH                 # fused [student | teacher] backbone feature
HEAD_C = 4 + 1 + NUM_CLASSES        # fused head Cout: [reg(4) | obj(1) | cls(NC)]
HEAD_PAD = 128                      # fused head Cout padded to a full lane width
IN_CH = 9                           # 6 student channels + 3 teacher channels
STRIDES = (1, 2, 4)                 # 3 FPN levels
MAX_TILE_N = 512                    # pixel-tile rows per grid step


def _round_up(n, m):
    return ((n + m - 1) // m) * m


# ----------------------------------------------------------------------------
# Fused all-levels Pallas kernel
# ----------------------------------------------------------------------------
def _dil_kernel(lvl_ref, nvalid_ref,                    # scalar-prefetch (SMEM)
                xc_ref, wb_ref, bb_ref,
                whs_ref, bhs_ref, wht_ref, bht_ref,
                sums_ref, *, tile_n):
    """One pixel tile of one FPN level.

    xc_ref : (tile_n, 9)  raw pixels [student 6ch | teacher 3ch]
    wb_ref : (9, 256)     block-diagonal fused backbone weight for this level
    whs/wht: (128, 128)   per-level fused (reg|obj|cls, zero-padded) head weights
    sums_ref: (16, 128) accumulator output, same block across the whole grid:
      rows 0..7  : per-channel sum of (head_s - head_t)^2   (distillation)
      rows 8..15 : per-channel sum of  head_s^2             (det surrogate)
    """
    step = pl.program_id(0)

    @pl.when(step == 0)
    def _init():
        sums_ref[...] = jnp.zeros_like(sums_ref)

    # Fused student+teacher backbone: one matmul -> [fs | ft], then SiLU.
    f = jnp.dot(xc_ref[...], wb_ref[...], preferred_element_type=jnp.float32)
    f = f + bb_ref[...]
    f = f * jax.nn.sigmoid(f)                           # SiLU
    fs = f[:, 0:FPN_CH]                                 # student features
    ft = f[:, FPN_CH:BB_OUT]                            # teacher features

    # Fused head convs (reg|obj|cls concatenated along Cout, padded to 128).
    hs = jnp.dot(fs, whs_ref[...], preferred_element_type=jnp.float32) + bhs_ref[...]
    ht = jnp.dot(ft, wht_ref[...], preferred_element_type=jnp.float32) + bht_ref[...]

    diff = hs - ht
    dil_sq = diff * diff                                # (tile_n, 128)
    det_sq = hs * hs

    # Mask zero-padded tail rows of this tile (per-tile valid count from SMEM).
    nv = nvalid_ref[step]
    row = jax.lax.broadcasted_iota(jnp.int32, (tile_n, 1), 0)
    m = (row < nv).astype(jnp.float32)
    dil_sq = dil_sq * m
    det_sq = det_sq * m

    # Keep per-step partials vreg-shaped (8, 128): pure VPU adds in the hot
    # loop; the single cross-sublane reduce happens in the wrapper.
    sums_ref[0:8, :] += dil_sq.reshape(tile_n // 8, 8, HEAD_PAD).sum(axis=0)
    sums_ref[8:16, :] += det_sq.reshape(tile_n // 8, 8, HEAD_PAD).sum(axis=0)


def fused_dil_sums(xc_all, lvl_ids, valid_rows, params, tile_n):
    """Run the fused all-levels kernel; returns the (16, HEAD_PAD) sum slab."""
    num_tiles = xc_all.shape[0] // tile_n
    kernel = functools.partial(_dil_kernel, tile_n=tile_n)

    grid_spec = pltpu.PrefetchScalarGridSpec(
        num_scalar_prefetch=2,
        grid=(num_tiles,),
        in_specs=[
            # pixel tile
            pl.BlockSpec((tile_n, IN_CH), lambda i, lvl, nv: (i, 0)),
            # per-level weights, selected by the prefetched level-id table
            pl.BlockSpec((None, IN_CH, BB_OUT), lambda i, lvl, nv: (lvl[i], 0, 0)),
            pl.BlockSpec((None, 1, BB_OUT), lambda i, lvl, nv: (lvl[i], 0, 0)),
            pl.BlockSpec((None, FPN_CH, HEAD_PAD), lambda i, lvl, nv: (lvl[i], 0, 0)),
            pl.BlockSpec((None, 1, HEAD_PAD), lambda i, lvl, nv: (lvl[i], 0, 0)),
            pl.BlockSpec((None, FPN_CH, HEAD_PAD), lambda i, lvl, nv: (lvl[i], 0, 0)),
            pl.BlockSpec((None, 1, HEAD_PAD), lambda i, lvl, nv: (lvl[i], 0, 0)),
        ],
        out_specs=pl.BlockSpec((16, HEAD_PAD), lambda i, lvl, nv: (0, 0)),
    )

    return pl.pallas_call(
        kernel,
        out_shape=jax.ShapeDtypeStruct((16, HEAD_PAD), jnp.float32),
        grid_spec=grid_spec,
        compiler_params=pltpu.CompilerParams(
            dimension_semantics=("arbitrary",),     # pixel axis carries the sum
            vmem_limit_bytes=32 * 1024 * 1024,      # safe on 64 MiB v7x VMEM
        ),
    )(lvl_ids, valid_rows, xc_all,
      params["wb"], params["bb"],
      params["wh_s"], params["bh_s"],
      params["wh_t"], params["bh_t"])


# ----------------------------------------------------------------------------
# Synthetic student / teacher parameters (deterministic)
# ----------------------------------------------------------------------------
def make_params(key):
    def nrm(k, shape, scale=0.1):
        return (scale * jax.random.normal(k, shape)).astype(jnp.float32)

    keys = jax.random.split(key, 64)
    ki = iter(keys)
    wb, bb, whs, bhs, wht, bht = [], [], [], [], [], []
    for _ in STRIDES:
        # Student backbone 1x1 conv (6 -> 128) and teacher (3 -> 128), fused
        # into one block-diagonal (9 -> 256) weight so one matmul does both.
        ws = nrm(next(ki), (6, FPN_CH))
        bs = nrm(next(ki), (1, FPN_CH))
        wt = nrm(next(ki), (3, FPN_CH))
        bt = nrm(next(ki), (1, FPN_CH))
        w = jnp.zeros((IN_CH, BB_OUT), jnp.float32)
        w = w.at[0:6, 0:FPN_CH].set(ws)
        w = w.at[6:9, FPN_CH:BB_OUT].set(wt)
        wb.append(w)
        bb.append(jnp.concatenate([bs, bt], axis=1))

        # Fused head weights: [reg(4) | obj(1) | cls(NC)] along Cout,
        # zero-padded to HEAD_PAD lanes (padded channels contribute 0).
        for wlist, blist in ((whs, bhs), (wht, bht)):
            hw = nrm(next(ki), (FPN_CH, HEAD_C))
            hb = nrm(next(ki), (1, HEAD_C))
            wlist.append(jnp.pad(hw, ((0, 0), (0, HEAD_PAD - HEAD_C))))
            blist.append(jnp.pad(hb, ((0, 0), (0, HEAD_PAD - HEAD_C))))

    return {
        "wb": jnp.stack(wb),      # (3, 9, 256)
        "bb": jnp.stack(bb),      # (3, 1, 256)
        "wh_s": jnp.stack(whs),   # (3, 128, 128)
        "bh_s": jnp.stack(bhs),   # (3, 1, 128)
        "wh_t": jnp.stack(wht),   # (3, 128, 128)
        "bh_t": jnp.stack(bht),   # (3, 1, 128)
    }


# ----------------------------------------------------------------------------
# YOLOXDIL forward (training, off_pipe, dil_loc='head', still_teacher=True)
# ----------------------------------------------------------------------------
def yolox_dil_forward(params, x, targets=None, coef_cfg=None):
    coef_cfg = coef_cfg if coef_cfg is not None else {}
    dil_loss_coef = coef_cfg.get("dil_loss_coef", 1.0)
    det_loss_coef = coef_cfg.get("det_loss_coef", 1.0)
    reg_coef = coef_cfg.get("reg_coef", 1.0)
    cls_coef = coef_cfg.get("cls_coef", 1.0)
    obj_coef = coef_cfg.get("obj_coef", 1.0)

    # x is NCHW [B, 9, H, W]; student consumes channels [:6], teacher [-3:].
    # They are kept interleaved as one 9-channel pixel stream; the fused
    # block-diagonal backbone weight routes them inside the kernel.
    b, c, hh, ww = x.shape
    x_nhwc = jnp.transpose(x, (0, 2, 3, 1))             # (B, H, W, 9)

    n_levels = [b * len(range(0, hh, s)) * len(range(0, ww, s)) for s in STRIDES]
    tile_n = min(MAX_TILE_N, _round_up(max(n_levels), 8))

    chunks, lvl_ids, valid_rows = [], [], []
    for lvl, s in enumerate(STRIDES):
        xl = x_nhwc[:, ::s, ::s, :]
        n = n_levels[lvl]
        xl2 = xl.reshape(n, c)
        n_pad = _round_up(n, tile_n)
        if n_pad != n:
            xl2 = jnp.pad(xl2, ((0, n_pad - n), (0, 0)))
        chunks.append(xl2)
        for t in range(n_pad // tile_n):
            lvl_ids.append(lvl)
            valid_rows.append(max(0, min(tile_n, n - t * tile_n)))

    xc_all = jnp.concatenate(chunks, axis=0)
    lvl_ids = jnp.asarray(lvl_ids, dtype=jnp.int32)
    valid_rows = jnp.asarray(valid_rows, dtype=jnp.int32)

    sums = fused_dil_sums(xc_all, lvl_ids, valid_rows, params, tile_n)
    dil_ch = jnp.sum(sums[0:8, :], axis=0)     # per-channel (s - t)^2 sums
    det_ch = jnp.sum(sums[8:16, :], axis=0)    # per-channel s^2 sums
    total_pix = float(sum(n_levels))

    # Channel groups of the fused head output.
    reg_sl = slice(0, 4)
    obj_sl = slice(4, 5)
    cls_sl = slice(5, 5 + NUM_CLASSES)
    numel_reg = 4.0 * total_pix
    numel_obj = 1.0 * total_pix
    numel_cls = float(NUM_CLASSES) * total_pix

    # Distillation losses (the module's own compute), exact MSE-sum semantics:
    # sum over levels of MSELoss(reduction='sum'), divided by total branch numel.
    reg_dil_loss = reg_coef * (jnp.sum(dil_ch[reg_sl]) / numel_reg)
    cls_dil_loss = cls_coef * (jnp.sum(dil_ch[cls_sl]) / numel_cls)
    obj_dil_loss = obj_coef * (jnp.sum(dil_ch[obj_sl]) / numel_obj)

    # TODO(synk): the real detection loss (SimOTA assignment, IoU/BCE losses)
    # lives in the external YOLOXHead module, not in YOLOXDIL; a sum-of-squares
    # surrogate over the student head maps (computed in the same fused kernel
    # pass, no extra HBM traffic) is used here.
    iou_loss = jnp.sum(det_ch[reg_sl]) / numel_reg
    conf_loss = jnp.sum(det_ch[obj_sl]) / numel_obj
    cls_loss = jnp.sum(det_ch[cls_sl]) / numel_cls
    l1_loss = jnp.float32(0.0)
    num_fg = jnp.float32(1.0)
    loss = iou_loss + conf_loss + cls_loss + l1_loss

    dil_loss = dil_loss_coef * (reg_dil_loss + cls_dil_loss + obj_dil_loss)
    loss = det_loss_coef * loss
    total_loss = dil_loss + loss

    return {
        "total_loss": total_loss,
        "det_loss": loss,
        "iou_loss": iou_loss,
        "l1_loss": l1_loss,
        "conf_loss": conf_loss,
        "cls_loss": cls_loss,
        "dil_loss": dil_loss,
        "reg_dil_loss": reg_dil_loss,
        "cls_dil_loss": cls_dil_loss,
        "obj_dil_loss": obj_dil_loss,
        "num_fg": num_fg,
    }


if __name__ == "__main__":
    key = jax.random.PRNGKey(0)
    k_param, k_x, k_t = jax.random.split(key, 3)

    params = make_params(k_param)
    # 9 input channels: 6 (student: two stacked RGB frames) + 3 (teacher frame)
    x = jax.random.normal(k_x, (2, 9, 16, 16), dtype=jnp.float32)
    targets = jax.random.normal(k_t, (2, 10, 5), dtype=jnp.float32)

    fwd = jax.jit(yolox_dil_forward)
    outputs = fwd(params, x, targets)
    outputs = jax.tree_util.tree_map(jax.block_until_ready, outputs)

    assert jnp.isfinite(outputs["total_loss"])
    print("KERNEL_OK")
</pallas_src>

<mosaic_0001>
module attributes {stable_mosaic.version = 11 : i64} {
  func.func @_dil_kernel(%arg0: i32, %arg1: memref<3xi32, #tpu.memory_space<smem>>, %arg2: memref<3xi32, #tpu.memory_space<smem>>, %arg3: memref<512x9xf32, #tpu.memory_space<vmem>>, %arg4: memref<1x9x256xf32, #tpu.memory_space<vmem>>, %arg5: memref<1x1x256xf32, #tpu.memory_space<vmem>>, %arg6: memref<1x128x128xf32, #tpu.memory_space<vmem>>, %arg7: memref<1x1x128xf32, #tpu.memory_space<vmem>>, %arg8: memref<1x128x128xf32, #tpu.memory_space<vmem>>, %arg9: memref<1x1x128xf32, #tpu.memory_space<vmem>>, %arg10: memref<16x128xf32, #tpu.memory_space<vmem>>) attributes {dimension_semantics = [#tpu.dimension_semantics<arbitrary>], iteration_bounds = array<i64: 3>, scalar_prefetch = 2 : i64, scratch_operands = 0 : i64, tpu.core_type = #tpu.core_type<tc>, window_params = [{transform_indices = @transform_0, window_bounds = array<i64: 512, 9>}, {transform_indices = @transform_1, window_bounds = array<i64: 1, 9, 256>}, {transform_indices = @transform_2, window_bounds = array<i64: 1, 1, 256>}, {transform_indices = @transform_3, window_bounds = array<i64: 1, 128, 128>}, {transform_indices = @transform_4, window_bounds = array<i64: 1, 1, 128>}, {transform_indices = @transform_5, window_bounds = array<i64: 1, 128, 128>}, {transform_indices = @transform_6, window_bounds = array<i64: 1, 1, 128>}, {pipeline_mode = #tpu.pipeline_mode<synchronous>, transform_indices = @transform_7, window_bounds = array<i64: 16, 128>}]} {
    %c0_i32 = arith.constant 0 : i32
    %0 = arith.cmpi eq, %arg0, %c0_i32 : i32
    %1 = arith.extui %0 : i1 to i32
    %c0_i32_0 = arith.constant 0 : i32
    %2 = arith.cmpi ne, %1, %c0_i32_0 : i32
    scf.if %2 {
      %cst_32 = arith.constant 0.000000e+00 : f32
      %57 = vector.broadcast %cst_32 : f32 to vector<16x128xf32>
      %c0_33 = arith.constant 0 : index
      %c0_34 = arith.constant 0 : index
      %58 = vector.load %arg10[%c0_33, %c0_34] : memref<16x128xf32, #tpu.memory_space<vmem>>, vector<16x128xf32>
      tpu.vector_store %arg10[%c0_33, %c0_34], %57 {strides = array<i32>} : memref<16x128xf32, #tpu.memory_space<vmem>>, vector<16x128xf32>,
    } else {
    }
    %c0 = arith.constant 0 : index
    %c0_1 = arith.constant 0 : index
    %3 = vector.load %arg3[%c0, %c0_1] : memref<512x9xf32, #tpu.memory_space<vmem>>, vector<512x9xf32>
    %c0_2 = arith.constant 0 : index
    %c0_3 = arith.constant 0 : index
    %c0_4 = arith.constant 0 : index
    %4 = vector.load %arg4[%c0_2, %c0_3, %c0_4] : memref<1x9x256xf32, #tpu.memory_space<vmem>>, vector<1x9x256xf32>
    %5 = vector.shape_cast %4 : vector<1x9x256xf32> to vector<9x256xf32>
    %cst = arith.constant dense<0.000000e+00> : vector<512x256xf32>
    %6 = tpu.matmul %3, %5, %cst {dimension_numbers = #tpu.dot_dimension_numbers<[1], [0], [0], [1], [0, 0, 1, 1], [], []>} : vector<512x9xf32>, vector<9x256xf32>, vector<512x256xf32> -> vector<512x256xf32>
    %c0_5 = arith.constant 0 : index
    %c0_6 = arith.constant 0 : index
    %c0_7 = arith.constant 0 : index
    %7 = vector.load %arg5[%c0_5, %c0_6, %c0_7] : memref<1x1x256xf32, #tpu.memory_space<vmem>>, vector<1x1x256xf32>
    %8 = vector.shape_cast %7 : vector<1x1x256xf32> to vector<1x256xf32>
    %9 = vector.broadcast %8 : vector<1x256xf32> to vector<512x256xf32>
    %10 = arith.addf %6, %9 : vector<512x256xf32>
    %11 = arith.negf %10 : vector<512x256xf32>
    %12 = math.exp %11 : vector<512x256xf32>
    %cst_8 = arith.constant 1.000000e+00 : f32
    %13 = vector.broadcast %cst_8 : f32 to vector<512x256xf32>
    %14 = arith.addf %13, %12 : vector<512x256xf32>
    %15 = arith.divf %13, %14 : vector<512x256xf32>
    %16 = arith.mulf %10, %15 : vector<512x256xf32>
    %17 = vector.extract_strided_slice %16 {offsets = [0, 0], sizes = [512, 128], strides = [1, 1]} : vector<512x256xf32> to vector<512x128xf32>
    %18 = vector.extract_strided_slice %16 {offsets = [0, 128], sizes = [512, 128], strides = [1, 1]} : vector<512x256xf32> to vector<512x128xf32>
    %c0_9 = arith.constant 0 : index
    %c0_10 = arith.constant 0 : index
    %c0_11 = arith.constant 0 : index
    %19 = vector.load %arg6[%c0_9, %c0_10, %c0_11] : memref<1x128x128xf32, #tpu.memory_space<vmem>>, vector<1x128x128xf32>
    %20 = vector.shape_cast %19 : vector<1x128x128xf32> to vector<128x128xf32>
    %cst_12 = arith.constant dense<0.000000e+00> : vector<512x128xf32>
    %21 = tpu.matmul %17, %20, %cst_12 {dimension_numbers = #tpu.dot_dimension_numbers<[1], [0], [0], [1], [0, 0, 1, 1], [], []>} : vector<512x128xf32>, vector<128x128xf32>, vector<512x128xf32> -> vector<512x128xf32>
    %c0_13 = arith.constant 0 : index
    %c0_14 = arith.constant 0 : index
    %c0_15 = arith.constant 0 : index
    %22 = vector.load %arg7[%c0_13, %c0_14, %c0_15] : memref<1x1x128xf32, #tpu.memory_space<vmem>>, vector<1x1x128xf32>
    %23 = vector.shape_cast %22 : vector<1x1x128xf32> to vector<1x128xf32>
    %24 = vector.broadcast %23 : vector<1x128xf32> to vector<512x128xf32>
    %25 = arith.addf %21, %24 : vector<512x128xf32>
    %c0_16 = arith.constant 0 : index
    %c0_17 = arith.constant 0 : index
    %c0_18 = arith.constant 0 : index
    %26 = vector.load %arg8[%c0_16, %c0_17, %c0_18] : memref<1x128x128xf32, #tpu.memory_space<vmem>>, vector<1x128x128xf32>
    %27 = vector.shape_cast %26 : vector<1x128x128xf32> to vector<128x128xf32>
    %cst_19 = arith.constant dense<0.000000e+00> : vector<512x128xf32>
    %28 = tpu.matmul %18, %27, %cst_19 {dimension_numbers = #tpu.dot_dimension_numbers<[1], [0], [0], [1], [0, 0, 1, 1], [], []>} : vector<512x128xf32>, vector<128x128xf32>, vector<512x128xf32> -> vector<512x128xf32>
    %c0_20 = arith.constant 0 : index
    %c0_21 = arith.constant 0 : index
    %c0_22 = arith.constant 0 : index
    %29 = vector.load %arg9[%c0_20, %c0_21, %c0_22] : memref<1x1x128xf32, #tpu.memory_space<vmem>>, vector<1x1x128xf32>
    %30 = vector.shape_cast %29 : vector<1x1x128xf32> to vector<1x128xf32>
    %31 = vector.broadcast %30 : vector<1x128xf32> to vector<512x128xf32>
    %32 = arith.addf %28, %31 : vector<512x128xf32>
    %33 = arith.subf %25, %32 : vector<512x128xf32>
    %34 = arith.mulf %33, %33 : vector<512x128xf32>
    %35 = arith.mulf %25, %25 : vector<512x128xf32>
    %36 = arith.index_cast %arg0 : i32 to index
    %37 = memref.load %arg2[%36] : memref<3xi32, #tpu.memory_space<smem>>
    %38 = tpu.iota {dimensions = array<i32: 0>} : vector<512x1xi32>
    %39 = vector.broadcast %37 : i32 to vector<512x1xi32>
    %40 = arith.cmpi slt, %38, %39 : vector<512x1xi32>
    %41 = arith.extui %40 : vector<512x1xi1> to vector<512x1xi32>
    %42 = arith.sitofp %41 : vector<512x1xi32> to vector<512x1xf32>
    %43 = vector.broadcast %42 : vector<512x1xf32> to vector<512x128xf32>
    %44 = arith.mulf %34, %43 : vector<512x128xf32>
    %45 = vector.broadcast %42 : vector<512x1xf32> to vector<512x128xf32>
    %46 = arith.mulf %35, %45 : vector<512x128xf32>
    %c0_23 = arith.constant 0 : index
    %c0_24 = arith.constant 0 : index
    %47 = vector.load %arg10[%c0_23, %c0_24] : memref<16x128xf32, #tpu.memory_space<vmem>>, vector<8x128xf32>
    %48 = vector.shape_cast %44 : vector<512x128xf32> to vector<64x8x128xf32>
    %cst_25 = arith.constant dense<0.000000e+00> : vector<8x128xf32>
    %49 = vector.multi_reduction <add>, %48, %cst_25 [0] : vector<64x8x128xf32> to vector<8x128xf32>
    %50 = arith.addf %47, %49 : vector<8x128xf32>
    %c0_26 = arith.constant 0 : index
    %c0_27 = arith.constant 0 : index
    %51 = vector.load %arg10[%c0_26, %c0_27] : memref<16x128xf32, #tpu.memory_space<vmem>>, vector<8x128xf32>
    tpu.vector_store %arg10[%c0_26, %c0_27], %50 {strides = array<i32>} : memref<16x128xf32, #tpu.memory_space<vmem>>, vector<8x128xf32>,
    %c8 = arith.constant 8 : index
    %c0_28 = arith.constant 0 : index
    %52 = vector.load %arg10[%c8, %c0_28] : memref<16x128xf32, #tpu.memory_space<vmem>>, vector<8x128xf32>
    %53 = vector.shape_cast %46 : vector<512x128xf32> to vector<64x8x128xf32>
    %cst_29 = arith.constant dense<0.000000e+00> : vector<8x128xf32>
    %54 = vector.multi_reduction <add>, %53, %cst_29 [0] : vector<64x8x128xf32> to vector<8x128xf32>
    %55 = arith.addf %52, %54 : vector<8x128xf32>
    %c8_30 = arith.constant 8 : index
    %c0_31 = arith.constant 0 : index
    %56 = vector.load %arg10[%c8_30, %c0_31] : memref<16x128xf32, #tpu.memory_space<vmem>>, vector<8x128xf32>
    tpu.vector_store %arg10[%c8_30, %c0_31], %55 {strides = array<i32>} : memref<16x128xf32, #tpu.memory_space<vmem>>, vector<8x128xf32>,
    return
  }
  func.func @transform_0(%arg0: i32, %arg1: memref<3xi32, #tpu.memory_space<smem>>, %arg2: memref<3xi32, #tpu.memory_space<smem>>) -> (i32, i32) {
    %c0_i32 = arith.constant 0 : i32
    %c0_i32_0 = arith.constant 0 : i32
    return %arg0, %c0_i32 : i32, i32
  }
  func.func @transform_1(%arg0: i32, %arg1: memref<3xi32, #tpu.memory_space<smem>>, %arg2: memref<3xi32, #tpu.memory_space<smem>>) -> (i32, i32, i32) {
    %0 = arith.index_cast %arg0 : i32 to index
    %1 = memref.load %arg1[%0] : memref<3xi32, #tpu.memory_space<smem>>
    %c0_i32 = arith.constant 0 : i32
    %c0_i32_0 = arith.constant 0 : i32
    %c0_i32_1 = arith.constant 0 : i32
    return %1, %c0_i32, %c0_i32_0 : i32, i32, i32
  }
  func.func @transform_2(%arg0: i32, %arg1: memref<3xi32, #tpu.memory_space<smem>>, %arg2: memref<3xi32, #tpu.memory_space<smem>>) -> (i32, i32, i32) {
    %0 = arith.index_cast %arg0 : i32 to index
    %1 = memref.load %arg1[%0] : memref<3xi32, #tpu.memory_space<smem>>
    %c0_i32 = arith.constant 0 : i32
    %c0_i32_0 = arith.constant 0 : i32
    %c0_i32_1 = arith.constant 0 : i32
    return %1, %c0_i32, %c0_i32_0 : i32, i32, i32
  }
  func.func @transform_3(%arg0: i32, %arg1: memref<3xi32, #tpu.memory_space<smem>>, %arg2: memref<3xi32, #tpu.memory_space<smem>>) -> (i32, i32, i32) {
    %0 = arith.index_cast %arg0 : i32 to index
    %1 = memref.load %arg1[%0] : memref<3xi32, #tpu.memory_space<smem>>
    %c0_i32 = arith.constant 0 : i32
    %c0_i32_0 = arith.constant 0 : i32
    %c0_i32_1 = arith.constant 0 : i32
    return %1, %c0_i32, %c0_i32_0 : i32, i32, i32
  }
  func.func @transform_4(%arg0: i32, %arg1: memref<3xi32, #tpu.memory_space<smem>>, %arg2: memref<3xi32, #tpu.memory_space<smem>>) -> (i32, i32, i32) {
    %0 = arith.index_cast %arg0 : i32 to index
    %1 = memref.load %arg1[%0] : memref<3xi32, #tpu.memory_space<smem>>
    %c0_i32 = arith.constant 0 : i32
    %c0_i32_0 = arith.constant 0 : i32
    %c0_i32_1 = arith.constant 0 : i32
    return %1, %c0_i32, %c0_i32_0 : i32, i32, i32
  }
  func.func @transform_5(%arg0: i32, %arg1: memref<3xi32, #tpu.memory_space<smem>>, %arg2: memref<3xi32, #tpu.memory_space<smem>>) -> (i32, i32, i32) {
    %0 = arith.index_cast %arg0 : i32 to index
    %1 = memref.load %arg1[%0] : memref<3xi32, #tpu.memory_space<smem>>
    %c0_i32 = arith.constant 0 : i32
    %c0_i32_0 = arith.constant 0 : i32
    %c0_i32_1 = arith.constant 0 : i32
    return %1, %c0_i32, %c0_i32_0 : i32, i32, i32
  }
  func.func @transform_6(%arg0: i32, %arg1: memref<3xi32, #tpu.memory_space<smem>>, %arg2: memref<3xi32, #tpu.memory_space<smem>>) -> (i32, i32, i32) {
    %0 = arith.index_cast %arg0 : i32 to index
    %1 = memref.load %arg1[%0] : memref<3xi32, #tpu.memory_space<smem>>
    %c0_i32 = arith.constant 0 : i32
    %c0_i32_0 = arith.constant 0 : i32
    %c0_i32_1 = arith.constant 0 : i32
    return %1, %c0_i32, %c0_i32_0 : i32, i32, i32
  }
  func.func @transform_7(%arg0: i32, %arg1: memref<3xi32, #tpu.memory_space<smem>>, %arg2: memref<3xi32, #tpu.memory_space<smem>>) -> (i32, i32) {
    %c0_i32 = arith.constant 0 : i32
    %c0_i32_0 = arith.constant 0 : i32
    %c0_i32_1 = arith.constant 0 : i32
    return %c0_i32, %c0_i32_0 : i32, i32
  }
}

</mosaic_0001>

<bundles_post_ra>
// kernel: yolox_dil_forward.1
= control target key start
LH: loop header
LB: loop body
LE: loop exit
PB: predicated region body
PF: predicated region fallthrough
CT: control target
= control target key end

     0   :  { %s7367_s0 = inlined_call_operand.vmem [shape: s32[3], index: 0, kind: input, shape index: {}]   ;;  %s7368_s2 = inlined_call_operand.vmem [shape: f32[1536,9], index: 2, kind: input, shape index: {}]   ;;  %s7369_s3 = inlined_call_operand.vmem [shape: f32[3,9,256], index: 3, kind: input, shape index: {}]   ;;  %s7370_s4 = inlined_call_operand.vmem [shape: f32[3,1,256], index: 4, kind: input, shape index: {}]   ;;  %s7371_s5 = inlined_call_operand.vmem [shape: f32[3,128,128], index: 5, kind: input, shape index: {}]   ;;  %s7372_s6 = inlined_call_operand.vmem [shape: f32[3,1,128], index: 6, kind: input, shape index: {}]   ;;  %s7373_s7 = inlined_call_operand.vmem [shape: f32[3,128,128], index: 7, kind: input, shape index: {}]   ;;  %s7374_s8 = inlined_call_operand.vmem [shape: f32[3,1,128], index: 8, kind: input, shape index: {}]   ;;  %s7375_s9 = inlined_call_operand.vmem [shape: f32[16,128], index: 9, kind: output, shape index: {}]   ;;  %s7376_s1 = inlined_call_operand.vmem [shape: s32[3], index: 1, kind: input, shape index: {}]  }
   0x1   :  { %s14_s11 = sshll.u32 %s7367_s0, 4  ;;  %s18_s14 = sshll.u32 %s7376_s1, 4  ;;  %s15_s11 = int_to_ptr.vmem [resolvable:$true] %s14_s11  ;;  %s19_s14 = int_to_ptr.vmem [resolvable:$true] %s18_s14 }
   0x2   :  { %s4929_s15 = scalar_lea.vmem %s15_s11, 16  ;;  %p4934_p1 = scmp.lt.s32.totalorder %s15_s11, %s15_s11 }
   0x3   :  { %p4930_p0 = scmp.ne.s32.totalorder %s15_s11, %s4929_s15  ;;  %p4935_p2 = scmp.lt.s32.totalorder %s4929_s15, %s4929_s15 }
   0x5   :  { %p4936_p3 = por %p4935_p2, %p4934_p1 }
   0x7   :  { %p4937_p4 = pnand %p4936_p3, %p4930_p0 }
   0x9   :  { %4940 = shalt.err (!%p4937_p4)  }
   0xa   :  { %s4963_s16 = smov [#allocation3]   ;;  %s4941_s17 = scalar_lea.vmem %s19_s14, 16 }
   0xb   :  { %17 = dma.vmem_to_smem %s15_s11, 16, %s4963_s16, [#allocation2] }
   0xc   :  { %p4942_p5 = scmp.ne.s32.totalorder %s19_s14, %s4941_s17  ;;  %p4946_p6 = scmp.lt.s32.totalorder %s19_s14, %s19_s14 }
   0xd   :  { %p4947_p7 = scmp.lt.s32.totalorder %s4941_s17, %s4941_s17 }
   0xf   :  { %p4948_p8 = por %p4947_p7, %p4946_p6 }
  0x11   :  { %p4949_p9 = pnand %p4948_p8, %p4942_p5 }
  0x13   :  { %4952 = shalt.err (!%p4949_p9)  }
  0x14   :  { %s4964_s0 = smov [#allocation4]  }
  0x15   :  { %21 = dma.vmem_to_smem %s19_s14, 16, %s4964_s0, [#allocation2] }
  0x16   :  { %4957 = dma.done.wait [#allocation2], 32 }
  0x17   :  { %4958 = vsyncadd [#allocation2], 4294967264 }
  0x18   :  { %23 = sfence }
  0x19   :  { %s5023_s1 = smov 0  }
  0x1a LB: > { %s5029_s18 = sadd.s32 4294967295, %s4961_s1   ;;  %p3680_p10 = scmp.ge.s32.totalorder %s4961_s1, 1  ;;  %s4961_s1 = sphi %s5023_s1, %s29_s1  }
  0x1b   : > { %p324_p11 = scmp.lt.s32.totalorder %s4961_s1, 4 }
  0x1d   : > { %p325_p12 = pnand %p3680_p10, %p324_p11 }
  0x1f   : > { %328 = sbr.rel (%p325_p12) target bundleno = 884 (0x374), region = 48 }
  0x24   : > { %s3681_s19 = sshll.u32 %s5029_s18, 6  ;;  %s388_s20 = sld [smem:[#allocation3 + %s5029_s18]] }
  0x25   : > { %p383_p13 = scmp.lt.s32.totalorder %s3681_s19, 191  ;;  %s395_s21 = sld [smem:[#allocation3 + %s5029_s18]] }
  0x26   : > { %s401_s22 = sld [smem:[#allocation3 + %s5029_s18]]  ;;  %p3690_p6 = scmp.ne.s32.totalorder %s5029_s18, 0 }
  0x27   : > { %s7739_s19 = smov (!%p383_p13, %s3681_s19), 191  ;;  %s408_s23 = sld [smem:[#allocation3 + %s5029_s18]] }
  0x28   : > { %s3682_s24 = sshll.u32 %s7739_s19, 3  ;;  %s413_s25 = sld [smem:[#allocation3 + %s5029_s18]] }
  0x29   : > { %s5042_s28 = scalar_lea.vmem %s7368_s2, %s3682_s24  ;;  %s420_s29 = sld [smem:[#allocation3 + %s5029_s18]] }
  0x2a   : > { %p389_p0 = scmp.lt.s32.totalorder %s388_s20, 2 }
  0x2b   : > { %p396_p1 = scmp.lt.s32.totalorder %s395_s21, 2 }
  0x2c   : > { %s7741_s20 = smov (!%p389_p0, %s388_s20), 2  ;;  %p402_p2 = scmp.lt.s32.totalorder %s401_s22, 2 }
  0x2d   : > { %s7743_s21 = smov (!%p396_p1, %s395_s21), 2  ;;  %s3953_s30 = sshll.u32 %s7741_s20, 5 }
  0x2e   : > { %s393_s12 = scalar_lea.vmem %s7369_s3, %s3953_s30  ;;  %s3685_s13 = sshll.u32 %s7743_s21, 1 }
  0x2f   : > { %s5051_s16 = scalar_lea.vmem %s7370_s4, %s3685_s13  ;;  %p409_p3 = scmp.lt.s32.totalorder %s408_s23, 2 }
  0x30   : > { %s7745_s22 = smov (!%p402_p2, %s401_s22), 2  ;;  %p414_p4 = scmp.lt.s32.totalorder %s413_s25, 2 }
  0x31   : > { %s7747_s23 = smov (!%p409_p3, %s408_s23), 2  ;;  %s3954_s17 = sshll.u32 %s7745_s22, 7 }
  0x32   : > { %s5056_s20 = scalar_lea.vmem %s7371_s5, %s3954_s17  ;;  %s5061_s27 = scalar_lea.vmem %s7372_s6, %s7747_s23 }
  0x33   : > { %s7749_s25 = smov (!%p414_p4, %s413_s25), 2  ;;  %p421_p5 = scmp.lt.s32.totalorder %s420_s29, 2 }
  0x34   : > { %s3955_s21 = sshll.u32 %s7749_s25, 7  ;;  %428 = sbr.rel (%p3690_p6) target bundleno = 59 (0x3b), region = 52 }
  0x35   : > { %s5066_s11 = scalar_lea.vmem %s7373_s7, %s3955_s21  ;;  %s7751_s29 = smov (!%p421_p5, %s420_s29), 2 }
  0x36   : > { %s423_s14 = scalar_lea.vmem %s7374_s8, %s7751_s29 }
  0x39   : > { %v4965_v0 = vmov 0.0  }
  0x3a   : > { %429 = vst [vmem:[%s7375_s9] sm:$0xff] %v4965_v0  ;;  %430 = vst [vmem:[%s7375_s9 + $0x8] sm:$0xff] %v4965_v0 }
  0x3b PF: > { %v498_v1 = vld [vmem:[%s393_s12 + $0x18] sm:$0x1]  ;;  %vm704_vm0 = vcmask 1040384   ;;  %v497_v2 = vld [vmem:[%s393_s12 + $0x10] sm:$0x1]  ;;  %v496_v3 = vld [vmem:[%s393_s12 + $0x8] sm:$0xff] }
  0x3c   : > { %3691 = vmatprep.subr.msk.mxu0 %vm704_vm0, %v498_v1  ;;  %v495_v4 = vld [vmem:[%s393_s12] sm:$0xff]  ;;  %v7377_v5 = vmov 0.0   ;;  %vm511_vm1 = vcmask 72704   ;;  %v432_v7 = vld [vmem:[%s5042_s28 + $0x8] sm:$0xff]  ;;  %v433_v8 = vld [vmem:[%s5042_s28 + $0x10] sm:$0xff] }
  0x3d   : > { %3692 = vmatpush1.msk.msra.mxu0 %vm704_vm0, %v497_v2  ;;  %775 = vmatprep.mubr.f32.mxu0 %v7377_v5  ;;  %v431_v6 = vld [vmem:[%s5042_s28] sm:$0xff]  ;;  %v434_v9 = vld [vmem:[%s5042_s28 + $0x18] sm:$0xff]  ;;  %v436_v11 = vld [vmem:[%s5042_s28 + $0x28] sm:$0xff] }
  0x3e   : > { %741 = vmatprep.subr.mxu0 %v496_v3  ;;  %v435_v10 = vld [vmem:[%s5042_s28 + $0x20] sm:$0xff]  ;;  %v437_v12 = vld [vmem:[%s5042_s28 + $0x30] sm:$0xff]  ;;  %v438_v13 = vld [vmem:[%s5042_s28 + $0x38] sm:$0xff] }
  0x3f   : > { %742 = vmatpush1.msra.mxu0 %v495_v4  ;;  %v439_v14 = vld [vmem:[%s5042_s28 + $0x40] sm:$0xff]  ;;  %v440_v15 = vld [vmem:[%s5042_s28 + $0x48] sm:$0xff]  ;;  %v441_v16 = vld [vmem:[%s5042_s28 + $0x50] sm:$0xff] }
  0x40   : > { %3693 = vmatmul.mubr.msk.f32.vlgmr.msra.gmra.mxu0 %vm511_vm1, %v431_v6  ;;  %v442_v17 = vld [vmem:[%s5042_s28 + $0x58] sm:$0xff]  ;;  %v443_v18 = vld [vmem:[%s5042_s28 + $0x60] sm:$0xff]  ;;  %v444_v19 = vld [vmem:[%s5042_s28 + $0x68] sm:$0xff] }
  0x41   : > { %781 = vmatprep.mubr.f32.mxu0 %v7377_v5  ;;  %v445_v20 = vld [vmem:[%s5042_s28 + $0x70] sm:$0xff]  ;;  %v446_v21 = vld [vmem:[%s5042_s28 + $0x78] sm:$0xff]  ;;  %v447_v22 = vld [vmem:[%s5042_s28 + $0x80] sm:$0xff] }
  0x42   : > { %v448_v23 = vld [vmem:[%s5042_s28 + $0x88] sm:$0xff]  ;;  %v449_v24 = vld [vmem:[%s5042_s28 + $0x90] sm:$0xff]  ;;  %v450_v25 = vld [vmem:[%s5042_s28 + $0x98] sm:$0xff] }
  0x43   : > { %v451_v26 = vld [vmem:[%s5042_s28 + $0xa0] sm:$0xff]  ;;  %v452_v27 = vld [vmem:[%s5042_s28 + $0xa8] sm:$0xff]  ;;  %v453_v28 = vld [vmem:[%s5042_s28 + $0xb0] sm:$0xff] }
  0x44   : > { %3694 = vmatmul.mubr.msk.f32.gmra.mxu0 %vm511_vm1, %v432_v7  ;;  %v454_v29 = vld [vmem:[%s5042_s28 + $0xb8] sm:$0xff]  ;;  %v455_v30 = vld [vmem:[%s5042_s28 + $0xc0] sm:$0xff]  ;;  %v456_v32 = vld [vmem:[%s5042_s28 + $0xc8] sm:$0xff] }
  0x45   : > { %787 = vmatprep.mubr.f32.mxu0 %v7377_v5  ;;  %v2071_v31 = vld [vmem:[%s5056_s20 + $0x78] sm:$0xff]  ;;  %v2070_v33 = vld [vmem:[%s5056_s20 + $0x70] sm:$0xff]  ;;  %v2069_v34 = vld [vmem:[%s5056_s20 + $0x68] sm:$0xff] }
  0x46   : > { %4116 = vmatprep.subr.mxu0 %v2071_v31  ;;  %4372 = vmatprep.subr.mxu1 %v2071_v31  ;;  %v457_v35 = vld [vmem:[%s5042_s28 + $0xd0] sm:$0xff]  ;;  %v2068_v36 = vld [vmem:[%s5056_s20 + $0x60] sm:$0xff]  ;;  %v2067_v37 = vld [vmem:[%s5056_s20 + $0x58] sm:$0xff] }
  0x47   : > { %4117 = vmatpush3.msra.mxu0 %v2071_v31  ;;  %4388 = vmatpush3.msra.mxu1 %v2071_v31  ;;  %v458_v38 = vld [vmem:[%s5042_s28 + $0xd8] sm:$0xff]  ;;  %v2066_v39 = vld [vmem:[%s5056_s20 + $0x50] sm:$0xff]  ;;  %v459_v40 = vld [vmem:[%s5042_s28 + $0xe0] sm:$0xff] }
  0x48   : > { %3695 = vmatmul.mubr.msk.f32.gmra.mxu0 %vm511_vm1, %v433_v8  ;;  %4118 = vmatprep.subr.mxu0 %v2070_v33  ;;  %v2065_v41 = vld [vmem:[%s5056_s20 + $0x48] sm:$0xff]  ;;  %v2064_v42 = vld [vmem:[%s5056_s20 + $0x40] sm:$0xff]  ;;  %v2063_v44 = vld [vmem:[%s5056_s20 + $0x38] sm:$0xff]  ;;  %v501_v8 = vlaneseq }
  0x49   : > { %793 = vmatprep.mubr.f32.mxu0 %v7377_v5  ;;  %4373 = vmatprep.subr.mxu1 %v2070_v33  ;;  %v460_v43 = vld [vmem:[%s5042_s28 + $0xe8] sm:$0xff]  ;;  %v461_v45 = vld [vmem:[%s5042_s28 + $0xf0] sm:$0xff]  ;;  %v462_v48 = vld [vmem:[%s5042_s28 + $0xf8] sm:$0xff] }
  0x4a   : > { %4119 = vmatpush3.msra.mxu0 %v2070_v33  ;;  %4389 = vmatpush3.msra.mxu1 %v2070_v33  ;;  %v2062_v46 = vld [vmem:[%s5056_s20 + $0x30] sm:$0xff]  ;;  %v2061_v47 = vld [vmem:[%s5056_s20 + $0x28] sm:$0xff]  ;;  %v2060_v49 = vld [vmem:[%s5056_s20 + $0x20] sm:$0xff] }
  0x4b   : > { %4120 = vmatprep.subr.mxu0 %v2069_v34  ;;  %4374 = vmatprep.subr.mxu1 %v2069_v34  ;;  %v463_v50 = vld [vmem:[%s5042_s28 + $0x100] sm:$0xff]  ;;  %v2059_v51 = vld [vmem:[%s5056_s20 + $0x18] sm:$0xff]  ;;  %v2058_v52 = vld [vmem:[%s5056_s20 + $0x10] sm:$0xff] }
  0x4c   : > { %3696 = vmatmul.mubr.msk.f32.gmra.mxu0 %vm511_vm1, %v434_v9  ;;  %4390 = vmatpush3.msra.mxu1 %v2069_v34  ;;  %v464_v53 = vld [vmem:[%s5042_s28 + $0x108] sm:$0xff]  ;;  %v465_v55 = vld [vmem:[%s5042_s28 + $0x110] sm:$0xff]  ;;  %v2056_v56 = vld [vmem:[%s5056_s20] sm:$0xff] }
  0x4d   : > { %799 = vmatprep.mubr.f32.mxu0 %v7377_v5  ;;  %4121 = vmatpush3.msra.mxu0 %v2069_v34  ;;  %v2057_v54 = vld [vmem:[%s5056_s20 + $0x8] sm:$0xff]  ;;  %v466_v57 = vld [vmem:[%s5042_s28 + $0x118] sm:$0xff]  ;;  %v467_v58 = vld [vmem:[%s5042_s28 + $0x120] sm:$0xff] }
  0x4e   : > { %4122 = vmatprep.subr.mxu0 %v2068_v36  ;;  %4375 = vmatprep.subr.mxu1 %v2068_v36  ;;  %v468_v59 = vld [vmem:[%s5042_s28 + $0x128] sm:$0xff]  ;;  %v469_v60 = vld [vmem:[%s5042_s28 + $0x130] sm:$0xff]  ;;  %v470_v61 = vld [vmem:[%s5042_s28 + $0x138] sm:$0xff] }
  0x4f   : > { %4123 = vmatpush3.msra.mxu0 %v2068_v36  ;;  %4391 = vmatpush3.msra.mxu1 %v2068_v36  ;;  %v471_v62 = vld [vmem:[%s5042_s28 + $0x140] sm:$0xff]  ;;  %v472_v63 = vld [vmem:[%s5042_s28 + $0x148] sm:$0xff]  ;;  %v473_v0 = vld [vmem:[%s5042_s28 + $0x150] sm:$0xff] }
  0x50   : > { %3697 = vmatmul.mubr.msk.f32.gmra.mxu0 %vm511_vm1, %v435_v10  ;;  %4124 = vmatprep.subr.mxu0 %v2067_v37  ;;  %v474_v1 = vld [vmem:[%s5042_s28 + $0x158] sm:$0xff]  ;;  %v475_v2 = vld [vmem:[%s5042_s28 + $0x160] sm:$0xff]  ;;  %v476_v3 = vld [vmem:[%s5042_s28 + $0x168] sm:$0xff] }
  0x51   : > { %805 = vmatprep.mubr.f32.mxu0 %v7377_v5  ;;  %4376 = vmatprep.subr.mxu1 %v2067_v37  ;;  %v477_v4 = vld [vmem:[%s5042_s28 + $0x170] sm:$0xff]  ;;  %v478_v6 = vld [vmem:[%s5042_s28 + $0x178] sm:$0xff]  ;;  %v479_v7 = vld [vmem:[%s5042_s28 + $0x180] sm:$0xff] }
  0x52   : > { %4125 = vmatpush3.msra.mxu0 %v2067_v37  ;;  %4392 = vmatpush3.msra.mxu1 %v2067_v37  ;;  %v480_v10 = vld [vmem:[%s5042_s28 + $0x188] sm:$0xff] }
  0x53   : > { %4126 = vmatprep.subr.mxu0 %v2066_v39  ;;  %4377 = vmatprep.subr.mxu1 %v2066_v39 }
  0x54   : > { %3698 = vmatmul.mubr.msk.f32.gmra.mxu0 %vm511_vm1, %v436_v11  ;;  %4393 = vmatpush3.msra.mxu1 %v2066_v39 }
  0x55   : > { %811 = vmatprep.mubr.f32.mxu0 %v7377_v5  ;;  %4127 = vmatpush3.msra.mxu0 %v2066_v39 }
  0x56   : > { %4128 = vmatprep.subr.mxu0 %v2065_v41  ;;  %4378 = vmatprep.subr.mxu1 %v2065_v41 }
  0x57   : > { %4129 = vmatpush3.msra.mxu0 %v2065_v41  ;;  %4394 = vmatpush3.msra.mxu1 %v2065_v41 }
  0x58   : > { %3699 = vmatmul.mubr.msk.f32.gmra.mxu0 %vm511_vm1, %v437_v12  ;;  %4130 = vmatprep.subr.mxu0 %v2064_v42  ;;  %v5248_v12 = vshrl.u32 %v501_v8, 7  ;;  %v490_v8 = vld [vmem:[%s5042_s28 + $0x1d8] sm:$0xff] }
  0x59   : > { %817 = vmatprep.mubr.f32.mxu0 %v7377_v5  ;;  %4379 = vmatprep.subr.mxu1 %v2064_v42 }
  0x5a   : > { %4131 = vmatpush3.msra.mxu0 %v2064_v42  ;;  %4395 = vmatpush3.msra.mxu1 %v2064_v42  ;;  %7479 = vst [vmem:[#allocation6_spill] sm:$0xff] %v5248_v12 }
  0x5b   : > { %4132 = vmatprep.subr.mxu0 %v2063_v44  ;;  %4380 = vmatprep.subr.mxu1 %v2063_v44 }
  0x5c   : > { %3700 = vmatmul.mubr.msk.f32.gmra.mxu0 %vm511_vm1, %v438_v13  ;;  %4396 = vmatpush3.msra.mxu1 %v2063_v44 }
  0x5d   : > { %823 = vmatprep.mubr.f32.mxu0 %v7377_v5  ;;  %4133 = vmatpush3.msra.mxu0 %v2063_v44 }
  0x5e   : > { %4134 = vmatprep.subr.mxu0 %v2062_v46  ;;  %4381 = vmatprep.subr.mxu1 %v2062_v46 }
  0x5f   : > { %4135 = vmatpush3.msra.mxu0 %v2062_v46  ;;  %4397 = vmatpush3.msra.mxu1 %v2062_v46 }
  0x60   : > { %3701 = vmatmul.mubr.msk.f32.gmra.mxu0 %vm511_vm1, %v439_v14  ;;  %4136 = vmatprep.subr.mxu0 %v2061_v47  ;;  %v481_v14 = vld [vmem:[%s5042_s28 + $0x190] sm:$0xff] }
  0x61   : > { %829 = vmatprep.mubr.f32.mxu0 %v7377_v5  ;;  %4382 = vmatprep.subr.mxu1 %v2061_v47 }
  0x62   : > { %4137 = vmatpush3.msra.mxu0 %v2061_v47  ;;  %4398 = vmatpush3.msra.mxu1 %v2061_v47 }
  0x63   : > { %4138 = vmatprep.subr.mxu0 %v2060_v49  ;;  %4383 = vmatprep.subr.mxu1 %v2060_v49 }
  0x64   : > { %3702 = vmatmul.mubr.msk.f32.gmra.mxu0 %vm511_vm1, %v440_v15  ;;  %4399 = vmatpush3.msra.mxu1 %v2060_v49 }
  0x65   : > { %835 = vmatprep.mubr.f32.mxu0 %v7377_v5  ;;  %4139 = vmatpush3.msra.mxu0 %v2060_v49 }
  0x66   : > { %4140 = vmatprep.subr.mxu0 %v2059_v51  ;;  %4384 = vmatprep.subr.mxu1 %v2059_v51 }
  0x67   : > { %4141 = vmatpush3.msra.mxu0 %v2059_v51  ;;  %4400 = vmatpush3.msra.mxu1 %v2059_v51 }
  0x68   : > { %3703 = vmatmul.mubr.msk.f32.gmra.mxu0 %vm511_vm1, %v441_v16  ;;  %4142 = vmatprep.subr.mxu0 %v2058_v52  ;;  %v503_v16 = vsub.s32 0, %v5248_v12 }
  0x69   : > { %841 = vmatprep.mubr.f32.mxu0 %v7377_v5  ;;  %4385 = vmatprep.subr.mxu1 %v2058_v52 }
  0x6a   : > { %4143 = vmatpush3.msra.mxu0 %v2058_v52  ;;  %4401 = vmatpush3.msra.mxu1 %v2058_v52 }
  0x6b   : > { %4144 = vmatprep.subr.mxu0 %v2057_v54  ;;  %4386 = vmatprep.subr.mxu1 %v2057_v54 }
  0x6c   : > { %3704 = vmatmul.mubr.msk.f32.gmra.mxu0 %vm511_vm1, %v442_v17  ;;  %4402 = vmatpush3.msra.mxu1 %v2057_v54  ;;  %v5257_v17 = vld [vmem:[%s5051_s16] sm:$0x3] }
  0x6d   : > { %847 = vmatprep.mubr.f32.mxu0 %v7377_v5  ;;  %4145 = vmatpush3.msra.mxu0 %v2057_v54 }
  0x6e   : > { %4146 = vmatprep.subr.mxu0 %v2056_v56  ;;  %4387 = vmatprep.subr.mxu1 %v2056_v56 }
  0x6f   : > { %4147 = vmatpush3.msra.mxu0 %v2056_v56  ;;  %4403 = vmatpush3.msra.mxu1 %v2056_v56 }
  0x70   : > { %3705 = vmatmul.mubr.msk.f32.gmra.mxu0 %vm511_vm1, %v443_v18 }
  0x71   : > { %853 = vmatprep.mubr.f32.mxu0 %v7377_v5 }
  0x74   : > { %3706 = vmatmul.mubr.msk.f32.gmra.mxu0 %vm511_vm1, %v444_v19  ;;  %v482_v19 = vld [vmem:[%s5042_s28 + $0x198] sm:$0xff] }
  0x75   : > { %859 = vmatprep.mubr.f32.mxu0 %v7377_v5 }
  0x78   : > { %3707 = vmatmul.mubr.msk.f32.gmra.mxu0 %vm511_vm1, %v445_v20 }
  0x79   : > { %865 = vmatprep.mubr.f32.mxu0 %v7377_v5 }
  0x7c   : > { %3708 = vmatmul.mubr.msk.f32.gmra.mxu0 %vm511_vm1, %v446_v21  ;;  %v5265_v21 = vrot.slane %v5257_v17, %v503_v16 }
  0x7d   : > { %871 = vmatprep.mubr.f32.mxu0 %v7377_v5 }
  0x80   : > { %3709 = vmatmul.mubr.msk.f32.gmra.mxu0 %vm511_vm1, %v447_v22 }
  0x81   : > { %877 = vmatprep.mubr.f32.mxu0 %v7377_v5 }
  0x84   : > { %3710 = vmatmul.mubr.msk.f32.gmra.mxu0 %vm511_vm1, %v448_v23  ;;  %v483_v23 = vld [vmem:[%s5042_s28 + $0x1a0] sm:$0xff] }
  0x85   : > { %883 = vmatprep.mubr.f32.mxu0 %v7377_v5 }
  0x88   : > { %3711 = vmatmul.mubr.msk.f32.gmra.mxu0 %vm511_vm1, %v449_v24 }
  0x89   : > { %889 = vmatprep.mubr.f32.mxu0 %v7377_v5 }
  0x8c   : > { %3712 = vmatmul.mubr.msk.f32.gmra.mxu0 %vm511_vm1, %v450_v25 }
  0x8d   : > { %895 = vmatprep.mubr.f32.mxu0 %v7377_v5 }
  0x90   : > { %3713 = vmatmul.mubr.msk.f32.gmra.mxu0 %vm511_vm1, %v451_v26 }
  0x91   : > { %901 = vmatprep.mubr.f32.mxu0 %v7377_v5 }
  0x94   : > { %3714 = vmatmul.mubr.msk.f32.gmra.mxu0 %vm511_vm1, %v452_v27 }
  0x95   : > { %907 = vmatprep.mubr.f32.mxu0 %v7377_v5 }
  0x98   : > { %3715 = vmatmul.mubr.msk.f32.gmra.mxu0 %vm511_vm1, %v453_v28  ;;  %v484_v28 = vld [vmem:[%s5042_s28 + $0x1a8] sm:$0xff] }
  0x99   : > { %913 = vmatprep.mubr.f32.mxu0 %v7377_v5 }
  0x9c   : > { %3716 = vmatmul.mubr.msk.f32.gmra.mxu0 %vm511_vm1, %v454_v29 }
  0x9d   : > { %919 = vmatprep.mubr.f32.mxu0 %v7377_v5 }
  0xa0   : > { %3717 = vmatmul.mubr.msk.f32.gmra.mxu0 %vm511_vm1, %v455_v30 }
  0xa1   : > { %925 = vmatprep.mubr.f32.mxu0 %v7377_v5 }
  0xa4   : > { %3718 = vmatmul.mubr.msk.f32.gmra.mxu0 %vm511_vm1, %v456_v32 }
  0xa5   : > { %931 = vmatprep.mubr.f32.mxu0 %v7377_v5 }
  0xa8   : > { %3719 = vmatmul.mubr.msk.f32.gmra.mxu0 %vm511_vm1, %v457_v35  ;;  %v485_v35 = vld [vmem:[%s5042_s28 + $0x1b0] sm:$0xff] }
  0xa9   : > { %937 = vmatprep.mubr.f32.mxu0 %v7377_v5 }
  0xac   : > { %3720 = vmatmul.mubr.msk.f32.gmra.mxu0 %vm511_vm1, %v458_v38 }
  0xad   : > { %943 = vmatprep.mubr.f32.mxu0 %v7377_v5 }
  0xb0   : > { %3721 = vmatmul.mubr.msk.f32.gmra.mxu0 %vm511_vm1, %v459_v40 }
  0xb1   : > { %949 = vmatprep.mubr.f32.mxu0 %v7377_v5 }
  0xb4   : > { %3722 = vmatmul.mubr.msk.f32.gmra.mxu0 %vm511_vm1, %v460_v43  ;;  %v486_v43 = vld [vmem:[%s5042_s28 + $0x1b8] sm:$0xff] }
  0xb5   : > { %955 = vmatprep.mubr.f32.mxu0 %v7377_v5 }
  0xb8   : > { %3723 = vmatmul.mubr.msk.f32.gmra.mxu0 %vm511_vm1, %v461_v45 }
  0xb9   : > { %961 = vmatprep.mubr.f32.mxu0 %v7377_v5 }
  0xbc   : > { %3724 = vmatmul.mubr.msk.f32.gmra.mxu0 %vm511_vm1, %v462_v48 }
  0xbd   : > { %967 = vmatprep.mubr.f32.mxu0 %v7377_v5 }
  0xc0   : > { %3725 = vmatmul.mubr.msk.f32.gmra.mxu0 %vm511_vm1, %v463_v50  ;;  %v487_v50 = vld [vmem:[%s5042_s28 + $0x1c0] sm:$0xff] }
  0xc1   : > { %973 = vmatprep.mubr.f32.mxu0 %v7377_v5 }
  0xc4   : > { %3726 = vmatmul.mubr.msk.f32.gmra.mxu0 %vm511_vm1, %v464_v53 }
  0xc5   : > { %979 = vmatprep.mubr.f32.mxu0 %v7377_v5 }
  0xc8   : > { %3727 = vmatmul.mubr.msk.f32.gmra.mxu0 %vm511_vm1, %v465_v55  ;;  %v488_v55 = vld [vmem:[%s5042_s28 + $0x1c8] sm:$0xff] }
  0xc9   : > { %985 = vmatprep.mubr.f32.mxu0 %v7377_v5 }
  0xcc   : > { %3728 = vmatmul.mubr.msk.f32.gmra.mxu0 %vm511_vm1, %v466_v57 }
  0xcd   : > { %991 = vmatprep.mubr.f32.mxu0 %v7377_v5 }
  0xd0   : > { %3729 = vmatmul.mubr.msk.f32.gmra.mxu0 %vm511_vm1, %v467_v58 }
  0xd1   : > { %997 = vmatprep.mubr.f32.mxu0 %v7377_v5 }
  0xd4   : > { %3730 = vmatmul.mubr.msk.f32.gmra.mxu0 %vm511_vm1, %v468_v59 }
  0xd5   : > { %1003 = vmatprep.mubr.f32.mxu0 %v7377_v5 }
  0xd8   : > { %3731 = vmatmul.mubr.msk.f32.gmra.mxu0 %vm511_vm1, %v469_v60 }
  0xd9   : > { %1009 = vmatprep.mubr.f32.mxu0 %v7377_v5 }
  0xdc   : > { %3732 = vmatmul.mubr.msk.f32.gmra.mxu0 %vm511_vm1, %v470_v61 }
  0xdd   : > { %1015 = vmatprep.mubr.f32.mxu0 %v7377_v5 }
  0xe0   : > { %3733 = vmatmul.mubr.msk.f32.gmra.mxu0 %vm511_vm1, %v471_v62  ;;  %v489_v62 = vld [vmem:[%s5042_s28 + $0x1d0] sm:$0xff] }
  0xe1   : > { %1021 = vmatprep.mubr.f32.mxu0 %v7377_v5 }
  0xe4   : > { %3734 = vmatmul.mubr.msk.f32.gmra.mxu0 %vm511_vm1, %v472_v63 }
  0xe5   : > { %1027 = vmatprep.mubr.f32.mxu0 %v7377_v5 }
  0xe8   : > { %3735 = vmatmul.mubr.msk.f32.gmra.mxu0 %vm511_vm1, %v473_v0 }
  0xe9   : > { %1033 = vmatprep.mubr.f32.mxu0 %v7377_v5 }
  0xec   : > { %3736 = vmatmul.mubr.msk.f32.gmra.mxu0 %vm511_vm1, %v474_v1 }
  0xed   : > { %1039 = vmatprep.mubr.f32.mxu0 %v7377_v5 }
  0xf0   : > { %3737 = vmatmul.mubr.msk.f32.gmra.mxu0 %vm511_vm1, %v475_v2 }
  0xf1   : > { %1045 = vmatprep.mubr.f32.mxu0 %v7377_v5 }
  0xf4   : > { %3738 = vmatmul.mubr.msk.f32.gmra.mxu0 %vm511_vm1, %v476_v3 }
  0xf5   : > { %1051 = vmatprep.mubr.f32.mxu0 %v7377_v5 }
  0xf8   : > { %3739 = vmatmul.mubr.msk.f32.gmra.mxu0 %vm511_vm1, %v477_v4 }
  0xf9   : > { %1057 = vmatprep.mubr.f32.mxu0 %v7377_v5 }
  0xfc   : > { %3740 = vmatmul.mubr.msk.f32.gmra.mxu0 %vm511_vm1, %v478_v6 }
  0xfd   : > { %1063 = vmatprep.mubr.f32.mxu0 %v7377_v5 }
 0x100   : > { %v777_v9 = vpop.f32.mrf.mxu0  ;;  %3741 = vmatmul.mubr.msk.f32.gmra.mxu0 %vm511_vm1, %v479_v7 }
 0x101   : > { %1069 = vmatprep.mubr.f32.mxu0 %v7377_v5  ;;  %v5273_v25 = vadd.f32 %v777_v9, %v5265_v21 }
 0x102   : > { %v5246_v11 = vpop.f32.mrf.mxu0 }
 0x103   : > { %v3757_v30 = vmul.f32 -1.442695, %v5273_v25 }
 0x104   : > { %v783_v13 = vpop.f32.mrf.mxu0  ;;  %3742 = vmatmul.mubr.msk.f32.gmra.mxu0 %vm511_vm1, %v480_v10 }
 0x105   : > { %1075 = vmatprep.mubr.f32.mxu0 %v7377_v5  ;;  %v5276_v26 = vadd.f32 %v783_v13, %v5265_v21  ;;  %4416 = vpow2.f32 %v3757_v30 }
 0x106   : > { %v5253_v15 = vpop.f32.mrf.mxu0 }
 0x107   : > { %v3759_v32 = vmul.f32 -1.442695, %v5276_v26 }
 0x108   : > { %v789_v18 = vpop.f32.mrf.mxu0  ;;  %3743 = vmatmul.mubr.msk.f32.gmra.mxu0 %vm511_vm1, %v481_v14 }
 0x109   : > { %1081 = vmatprep.mubr.f32.mxu0 %v7377_v5  ;;  %v5285_v31 = vadd.f32 %v789_v18, %v5265_v21  ;;  %4418 = vpow2.f32 %v3759_v32 }
 0x10a   : > { %v5262_v20 = vpop.f32.mrf.mxu0 }
 0x10b   : > { %v3761_v37 = vmul.f32 -1.442695, %v5285_v31 }
 0x10c   : > { %v795_v22 = vpop.f32.mrf.mxu0  ;;  %3744 = vmatmul.mubr.msk.f32.gmra.mxu0 %vm511_vm1, %v482_v19 }
 0x10d   : > { %1087 = vmatprep.mubr.f32.mxu0 %v7377_v5  ;;  %v5289_v33 = vadd.f32 %v795_v22, %v5265_v21  ;;  %4420 = vpow2.f32 %v3761_v37 }
 0x10e   : > { %v5270_v24 = vpop.f32.mrf.mxu0 }
 0x10f   : > { %v3763_v39 = vmul.f32 -1.442695, %v5289_v33 }
 0x110   : > { %v801_v27 = vpop.f32.mrf.mxu0  ;;  %3745 = vmatmul.mubr.msk.f32.gmra.mxu0 %vm511_vm1, %v483_v23 }
 0x111   : > { %1093 = vmatprep.mubr.f32.mxu0 %v7377_v5  ;;  %v5298_v38 = vadd.f32 %v801_v27, %v5265_v21  ;;  %4422 = vpow2.f32 %v3763_v39 }
 0x112   : > { %v5281_v29 = vpop.f32.mrf.mxu0  ;;  %v4417_v58 = vpop.eup %4416 }
 0x113   : > { %v3765_v45 = vmul.f32 -1.442695, %v5298_v38  ;;  %v1544_v0 = vadd.f32 1.0, %v4417_v58 }
 0x114   : > { %v807_v34 = vpop.f32.mrf.mxu0  ;;  %3746 = vmatmul.mubr.msk.f32.gmra.mxu0 %vm511_vm1, %v484_v28  ;;  %v491_v28 = vld [vmem:[%s5042_s28 + $0x1e0] sm:$0xff] }
 0x115   : > { %1099 = vmatprep.mubr.f32.mxu0 %v7377_v5  ;;  %v5302_v40 = vadd.f32 %v807_v34, %v5265_v21 }
 0x116   : > { %v5294_v36 = vpop.f32.mrf.mxu0  ;;  %v4419_v60 = vpop.eup %4418 }
 0x117   : > { %v3767_v47 = vmul.f32 -1.442695, %v5302_v40  ;;  %v1546_v3 = vadd.f32 1.0, %v4419_v60 }
 0x118   : > { %v813_v41 = vpop.f32.mrf.mxu0  ;;  %3747 = vmatmul.mubr.msk.f32.gmra.mxu0 %vm511_vm1, %v485_v35 }
 0x119   : > { %v5306_v42 = vadd.f32 %v813_v41, %v5265_v21  ;;  %1105 = vmatprep.mubr.f32.mxu0 %v7377_v5 }
 0x11a   : > { %v5310_v44 = vpop.f32.mrf.mxu0  ;;  %v4421_v2 = vpop.eup %4420 }
 0x11b   : > { %v3769_v46 = vmul.f32 -1.442695, %v5306_v42  ;;  %v1548_v13 = vadd.f32 1.0, %v4421_v2 }
 0x11c   : > { %v819_v48 = vpop.f32.mrf.mxu0  ;;  %3748 = vmatmul.mubr.msk.f32.gmra.mxu0 %vm511_vm1, %v486_v43 }
 0x11d   : > { %v5317_v49 = vadd.f32 %v819_v48, %v5265_v21  ;;  %1111 = vmatprep.mubr.f32.mxu0 %v7377_v5  ;;  %4424 = vpow2.f32 %v3769_v46 }
 0x11e   : > { %v5321_v51 = vpop.f32.mrf.mxu0  ;;  %4426 = vpow2.f32 %v3765_v45  ;;  %v4423_v6 = vpop.eup %4422  ;;  %v492_v45 = vld [vmem:[%s5042_s28 + $0x1e8] sm:$0xff] }
 0x11f   : > { %v3771_v52 = vmul.f32 -1.442695, %v5317_v49  ;;  %4428 = vpow2.f32 %v3767_v47  ;;  %v1550_v18 = vadd.f32 1.0, %v4423_v6 }
 0x120   : > { %v825_v53 = vpop.f32.mrf.mxu0  ;;  %3749 = vmatmul.mubr.msk.f32.gmra.mxu0 %vm511_vm1, %v487_v50 }
 0x121   : > { %v5326_v54 = vadd.f32 %v825_v53, %v5265_v21  ;;  %1117 = vmatprep.mubr.f32.mxu0 %v7377_v5  ;;  %4430 = vpow2.f32 %v3771_v52 }
 0x122   : > { %v5330_v56 = vpop.f32.mrf.mxu0 }
 0x123   : > { %v3773_v57 = vmul.f32 -1.442695, %v5326_v54 }
 0x124   : > { %v831_v59 = vpop.f32.mrf.mxu0  ;;  %3750 = vmatmul.mubr.msk.f32.gmra.mxu0 %vm511_vm1, %v488_v55  ;;  %v493_v55 = vld [vmem:[%s5042_s28 + $0x1f0] sm:$0xff] }
 0x125   : > { %4432 = vpow2.f32 %v3773_v57  ;;  %v5335_v61 = vadd.f32 %v831_v59, %v5265_v21  ;;  %1123 = vmatprep.mubr.f32.mxu0 %v7377_v5 }
 0x126   : > { %v5339_v63 = vpop.f32.mrf.mxu0 }
 0x127   : > { %v3775_v1 = vmul.f32 -1.442695, %v5335_v61 }
 0x128   : > { %v837_v4 = vpop.f32.mrf.mxu0  ;;  %3751 = vmatmul.mubr.msk.f32.gmra.mxu0 %vm511_vm1, %v489_v62 }
 0x129   : > { %4434 = vpow2.f32 %v3775_v1  ;;  %v5344_v7 = vadd.f32 %v837_v4, %v5265_v21  ;;  %1129 = vmatprep.mubr.f32.mxu0 %v7377_v5 }
 0x12a   : > { %v5348_v9 = vpop.f32.mrf.mxu0  ;;  %v4425_v10 = vpop.eup %4424  ;;  %4436 = vrcp.f32 %v1544_v0 }
 0x12b   : > { %v3777_v14 = vmul.f32 -1.442695, %v5344_v7  ;;  %v4427_v16 = vpop.eup %4426  ;;  %4438 = vrcp.f32 %v1546_v3  ;;  %v1556_v19 = vadd.f32 1.0, %v4425_v10  ;;  %v494_v3 = vld [vmem:[%s5042_s28 + $0x1f8] sm:$0xff]  ;;  %s5991_s28 = sld [smem:[#allocation4 + %s5029_s18]] }
 0x12c   : > { %v843_v22 = vpop.f32.mrf.mxu0  ;;  %3752 = vmatmul.mubr.msk.f32.gmra.mxu0 %vm511_vm1, %v490_v8  ;;  %v4429_v23 = vpop.eup %4428  ;;  %v1552_v34 = vadd.f32 1.0, %v4427_v16 }
 0x12d   : > { %4440 = vpow2.f32 %v3777_v14  ;;  %v5353_v27 = vadd.f32 %v843_v22, %v5265_v21  ;;  %1135 = vmatprep.mubr.f32.mxu0 %v7377_v5  ;;  %v1554_v37 = vadd.f32 1.0, %v4429_v23 }
 0x12e   : > { %4442 = vrcp.f32 %v1556_v19  ;;  %v5357_v30 = vpop.f32.mrf.mxu0  ;;  %v4431_v32 = vpop.eup %4430 }
 0x12f   : > { %4444 = vrcp.f32 %v1548_v13  ;;  %v3779_v35 = vmul.f32 -1.442695, %v5353_v27  ;;  %v1558_v39 = vadd.f32 1.0, %v4431_v32 }
 0x130   : > { %4446 = vrcp.f32 %v1550_v18  ;;  %v849_v41 = vpop.f32.mrf.mxu0  ;;  %3753 = vmatmul.mubr.msk.f32.gmra.mxu0 %vm511_vm1, %v491_v28 }
 0x131   : > { %4448 = vpow2.f32 %v3779_v35  ;;  %v5362_v43 = vadd.f32 %v849_v41, %v5265_v21  ;;  %1141 = vmatprep.mubr.f32.mxu0 %v7377_v5 }
 0x132   : > { %v4433_v46 = vpop.eup %4432  ;;  %4450 = vrcp.f32 %v1558_v39  ;;  %v5366_v47 = vpop.f32.mrf.mxu0 }
 0x133   : > { %4452 = vrcp.f32 %v1552_v34  ;;  %v1560_v48 = vadd.f32 1.0, %v4433_v46  ;;  %v3781_v50 = vmul.f32 -1.442695, %v5362_v43 }
 0x134   : > { %4454 = vrcp.f32 %v1554_v37  ;;  %v855_v52 = vpop.f32.mrf.mxu0  ;;  %3754 = vmatmul.mubr.msk.f32.gmra.mxu0 %vm511_vm1, %v492_v45 }
 0x135   : > { %4456 = vrcp.f32 %v1560_v48  ;;  %v5371_v53 = vadd.f32 %v855_v52, %v5265_v21  ;;  %1147 = vmatprep.mubr.f32.mxu0 %v7377_v5 }
 0x136   : > { %v4435_v57 = vpop.eup %4434  ;;  %4458 = vpow2.f32 %v3781_v50  ;;  %v5375_v58 = vpop.f32.mrf.mxu0 }
 0x137   : > { %v1562_v59 = vadd.f32 1.0, %v4435_v57  ;;  %v3783_v60 = vmul.f32 -1.442695, %v5371_v53  ;;  %v4437_v62 = vpop.eup %4436 }
 0x138   : > { %v861_v0 = vpop.f32.mrf.mxu0  ;;  %3755 = vmatmul.mubr.msk.f32.gmra.mxu0 %vm511_vm1, %v493_v55  ;;  %v4439_v1 = vpop.eup %4438  ;;  %v1928_v10 = vmul.f32 %v4437_v62, %v5273_v25 }
 0x139   : > { %4460 = vrcp.f32 %v1562_v59  ;;  %v5380_v2 = vadd.f32 %v861_v0, %v5265_v21  ;;  %1153 = vmatprep.mubr.f32.mxu0 %v7377_v5  ;;  %v1930_v32 = vmul.f32 %v4439_v1, %v5276_v26 }
 0x13a   : > { %v4441_v4 = vpop.eup %4440  ;;  %4462 = vpow2.f32 %v3783_v60  ;;  %v5384_v6 = vpop.f32.mrf.mxu0 }
 0x13b   : > { %v4443_v8 = vpop.eup %4442  ;;  %v1564_v13 = vadd.f32 1.0, %v4441_v4  ;;  %v3785_v14 = vmul.f32 -1.442695, %v5380_v2 }
 0x13c   : > { %v4445_v16 = vpop.eup %4444  ;;  %v867_v18 = vpop.f32.mrf.mxu0  ;;  %3756 = vmatmul.mubr.msk.f32.gmra.mxu0 %vm511_vm1, %v494_v3  ;;  %v1940_v19 = vmul.f32 %v4443_v8, %v5306_v42 }
 0x13d   : > { %v4447_v22 = vpop.eup %4446  ;;  %4464 = vrcp.f32 %v1564_v13  ;;  %v5391_v23 = vadd.f32 %v867_v18, %v5265_v21  ;;  %4148 = vmatprep.mubr.f32.mxu0 %v1928_v10  ;;  %v1932_v35 = vmul.f32 %v4445_v16, %v5285_v31 }
 0x13e   : > { %v4449_v28 = vpop.eup %4448  ;;  %4466 = vpow2.f32 %v3785_v14  ;;  %4157 = vmatprep.mubr.f32.mxu1 %v1940_v19  ;;  %v5394_v25 = vpop.f32.mrf.mxu0  ;;  %v1934_v50 = vmul.f32 %v4447_v22, %v5289_v33 }
 0x13f   : > { %v4451_v34 = vpop.eup %4450  ;;  %v1566_v37 = vadd.f32 1.0, %v4449_v28  ;;  %v3787_v39 = vmul.f32 -1.442695, %v5391_v23 }
 0x140   : > { %v4453_v42 = vpop.eup %4452  ;;  %v1942_v41 = vmul.f32 %v4451_v34, %v5317_v49  ;;  %v873_v45 = vpop.f32.mrf.mxu0  ;;  %4149 = vmatmul.mubr.f32.vlgmr.msra.gmra.mxu0 %v1930_v32 }
 0x141   : > { %v4455_v46 = vpop.eup %4454  ;;  %4468 = vrcp.f32 %v1566_v37  ;;  %v5400_v48 = vadd.f32 %v873_v45, %v5265_v21  ;;  %4151 = vmatprep.mubr.f32.mxu0 %v1932_v35  ;;  %v1936_v55 = vmul.f32 %v4453_v42, %v5298_v38 }
 0x142   : > { %v4457_v26 = vpop.eup %4456  ;;  %4470 = vpow2.f32 %v3787_v39  ;;  %4158 = vmatmul.mubr.f32.vlgmr.msra.gmra.mxu1 %v1942_v41  ;;  %v5403_v31 = vpop.f32.mrf.mxu0  ;;  %v1938_v0 = vmul.f32 %v4455_v46, %v5302_v40 }
 0x143   : > { %v4459_v52 = vpop.eup %4458  ;;  %v1944_v49 = vmul.f32 %v4457_v26, %v5326_v54  ;;  %v3789_v57 = vmul.f32 -1.442695, %v5400_v48 }
 0x144   : > { %v1568_v59 = vadd.f32 1.0, %v4459_v52  ;;  %v879_v60 = vpop.f32.mrf.mxu0  ;;  %4152 = vmatmul.mubr.f32.gmra.mxu0 %v1934_v50 }
 0x145   : > { %4472 = vpow2.f32 %v3789_v57  ;;  %v5409_v62 = vadd.f32 %v879_v60, %v5265_v21  ;;  %4154 = vmatprep.mubr.f32.mxu0 %v1936_v55  ;;  %4160 = vmatprep.mubr.f32.mxu1 %v1944_v49  ;;  %v2479_v55 = vld [vmem:[%s5066_s11 + $0x78] sm:$0xff] }
 0x146   : > { %v4461_v33 = vpop.eup %4460  ;;  %4474 = vrcp.f32 %v1568_v59  ;;  %v5412_v1 = vpop.f32.mrf.mxu0  ;;  %4244 = vmatprep.subr.mxu1 %v2479_v55 }
 0x147   : > { %v4463_v38 = vpop.eup %4462  ;;  %v1946_v54 = vmul.f32 %v4461_v33, %v5335_v61  ;;  %v3791_v3 = vmul.f32 -1.442695, %v5409_v62  ;;  %4245 = vmatpush3.msra.mxu1 %v2479_v55 }
 0x148   : > { %v1570_v4 = vadd.f32 1.0, %v4463_v38  ;;  %v885_v8 = vpop.f32.mrf.mxu0  ;;  %4155 = vmatmul.mubr.f32.gmra.mxu0 %v1938_v0 }
 0x149   : > { %4476 = vpow2.f32 %v3791_v3  ;;  %v5417_v10 = vadd.f32 %v885_v8, %v5265_v21  ;;  %4161 = vmatmul.mubr.f32.gmra.mxu1 %v1946_v54 }
 0x14a   : > { %v4465_v13 = vpop.eup %4464  ;;  %4478 = vrcp.f32 %v1570_v4  ;;  %v5419_v14 = vpop.f32.mrf.mxu0 }
 0x14b   : > { %v4467_v40 = vpop.eup %4466  ;;  %v1948_v16 = vmul.f32 %v4465_v13, %v5344_v7  ;;  %v3793_v18 = vmul.f32 -1.442695, %v5417_v10 }
 0x14c   : > { %v1572_v61 = vadd.f32 1.0, %v4467_v40  ;;  %v891_v19 = vpop.f32.mrf.mxu0 }
 0x14d   : > { %4480 = vpow2.f32 %v3793_v18  ;;  %v5424_v22 = vadd.f32 %v891_v19, %v5265_v21  ;;  %4163 = vmatprep.mubr.f32.mxu1 %v1948_v16 }
 0x14e   : > { %v4469_v28 = vpop.eup %4468  ;;  %4482 = vrcp.f32 %v1572_v61  ;;  %v5426_v32 = vpop.f32.mrf.mxu0  ;;  %v2478_v61 = vld [vmem:[%s5066_s11 + $0x70] sm:$0xff] }
 0x14f   : > { %v4471_v34 = vpop.eup %4470  ;;  %v1950_v35 = vmul.f32 %v4469_v28, %v5353_v27  ;;  %v3795_v37 = vmul.f32 -1.442695, %v5424_v22  ;;  %4246 = vmatprep.subr.mxu1 %v2478_v61 }
 0x150   : > { %v1574_v7 = vadd.f32 1.0, %v4471_v34  ;;  %v897_v39 = vpop.f32.mrf.mxu0  ;;  %4247 = vmatpush3.msra.mxu1 %v2478_v61 }
 0x151   : > { %4484 = vpow2.f32 %v3795_v37  ;;  %v5431_v42 = vadd.f32 %v897_v39, %v5265_v21  ;;  %4164 = vmatmul.mubr.f32.gmra.mxu1 %v1950_v35 }
 0x152   : > { %v4473_v41 = vpop.eup %4472  ;;  %4486 = vrcp.f32 %v1574_v7  ;;  %v5433_v45 = vpop.f32.mrf.mxu0 }
 0x153   : > { %v4475_v46 = vpop.eup %4474  ;;  %v1576_v26 = vadd.f32 1.0, %v4473_v41  ;;  %v3797_v50 = vmul.f32 -1.442695, %v5431_v42 }
 0x154   : > { %v1952_v52 = vmul.f32 %v4475_v46, %v5362_v43  ;;  %v903_v27 = vpop.f32.mrf.mxu0 }
 0x155   : > { %4488 = vrcp.f32 %v1576_v26  ;;  %v5439_v49 = vadd.f32 %v903_v27, %v5265_v21  ;;  %v2477_v26 = vld [vmem:[%s5066_s11 + $0x68] sm:$0xff] }
 0x156   : > { %v4477_v57 = vpop.eup %4476  ;;  %4490 = vpow2.f32 %v3797_v50  ;;  %4166 = vmatprep.mubr.f32.mxu1 %v1952_v52  ;;  %v5441_v59 = vpop.f32.mrf.mxu0  ;;  %4248 = vmatprep.subr.mxu1 %v2477_v26 }
 0x157   : > { %v4479_v60 = vpop.eup %4478  ;;  %v1578_v33 = vadd.f32 1.0, %v4477_v57  ;;  %v3799_v0 = vmul.f32 -1.442695, %v5439_v49  ;;  %4249 = vmatpush3.msra.mxu1 %v2477_v26 }
 0x158   : > { %v1954_v43 = vmul.f32 %v4479_v60, %v5371_v53  ;;  %v909_v38 = vpop.f32.mrf.mxu0 }
 0x159   : > { %4492 = vrcp.f32 %v1578_v33  ;;  %v5446_v54 = vadd.f32 %v909_v38, %v5265_v21 }
 0x15a   : > { %v4481_v3 = vpop.eup %4480  ;;  %4494 = vpow2.f32 %v3799_v0  ;;  %4167 = vmatmul.mubr.f32.gmra.mxu1 %v1954_v43  ;;  %v5448_v4 = vpop.f32.mrf.mxu0 }
 0x15b   : > { %v4483_v8 = vpop.eup %4482  ;;  %v1580_v13 = vadd.f32 1.0, %v4481_v3  ;;  %v3801_v40 = vmul.f32 -1.442695, %v5446_v54 }
 0x15c   : > { %v1956_v16 = vmul.f32 %v4483_v8, %v5380_v2  ;;  %v915_v18 = vpop.f32.mrf.mxu0 }
 0x15d   : > { %4496 = vrcp.f32 %v1580_v13  ;;  %v5454_v53 = vadd.f32 %v915_v18, %v5265_v21  ;;  %v2476_v13 = vld [vmem:[%s5066_s11 + $0x60] sm:$0xff] }
 0x15e   : > { %v4485_v19 = vpop.eup %4484  ;;  %4498 = vpow2.f32 %v3801_v40  ;;  %4169 = vmatprep.mubr.f32.mxu1 %v1956_v16  ;;  %v5456_v28 = vpop.f32.mrf.mxu0  ;;  %4250 = vmatprep.subr.mxu1 %v2476_v13 }
 0x15f   : > { %v4487_v34 = vpop.eup %4486  ;;  %v1582_v35 = vadd.f32 1.0, %v4485_v19  ;;  %v3803_v37 = vmul.f32 -1.442695, %v5454_v53  ;;  %4251 = vmatpush3.msra.mxu1 %v2476_v13 }
 0x160   : > { %v1958_v2 = vmul.f32 %v4487_v34, %v5391_v23  ;;  %v921_v7 = vpop.f32.mrf.mxu0 }
 0x161   : > { %4500 = vrcp.f32 %v1582_v35  ;;  %v5461_v39 = vadd.f32 %v921_v7, %v5265_v21 }
 0x162   : > { %v4489_v41 = vpop.eup %4488  ;;  %4502 = vpow2.f32 %v3803_v37  ;;  %4170 = vmatmul.mubr.f32.gmra.mxu1 %v1958_v2  ;;  %v5463_v46 = vpop.f32.mrf.mxu0 }
 0x163   : > { %v4491_v50 = vpop.eup %4490  ;;  %v1960_v52 = vmul.f32 %v4489_v41, %v5400_v48  ;;  %v3805_v27 = vmul.f32 -1.442695, %v5461_v39 }
 0x164   : > { %v1584_v55 = vadd.f32 1.0, %v4491_v50  ;;  %v927_v57 = vpop.f32.mrf.mxu0 }
 0x165   : > { %4504 = vpow2.f32 %v3805_v27  ;;  %v5469_v23 = vadd.f32 %v927_v57, %v5265_v21  ;;  %4172 = vmatprep.mubr.f32.mxu1 %v1960_v52 }
 0x166   : > { %v4493_v60 = vpop.eup %4492  ;;  %4506 = vrcp.f32 %v1584_v55  ;;  %v5471_v33 = vpop.f32.mrf.mxu0 }
 0x167   : > { %v4495_v0 = vpop.eup %4494  ;;  %v1962_v43 = vmul.f32 %v4493_v60, %v5409_v62  ;;  %v3807_v48 = vmul.f32 -1.442695, %v5469_v23 }
 0x168   : > { %v1586_v38 = vadd.f32 1.0, %v4495_v0  ;;  %v933_v3 = vpop.f32.mrf.mxu0 }
 0x169   : > { %4508 = vpow2.f32 %v3807_v48  ;;  %v5476_v8 = vadd.f32 %v933_v3, %v5265_v21  ;;  %4173 = vmatmul.mubr.f32.gmra.mxu1 %v1962_v43 }
 0x16a   : > { %v4497_v40 = vpop.eup %4496  ;;  %4510 = vrcp.f32 %v1586_v38  ;;  %v5479_v16 = vpop.f32.mrf.mxu0 }
 0x16b   : > { %v4499_v18 = vpop.eup %4498  ;;  %v1964_v61 = vmul.f32 %v4497_v40, %v5417_v10  ;;  %v3809_v62 = vmul.f32 -1.442695, %v5476_v8  ;;  %v2475_v10 = vld [vmem:[%s5066_s11 + $0x58] sm:$0xff] }
 0x16c   : > { %v1588_v19 = vadd.f32 1.0, %v4499_v18  ;;  %v939_v34 = vpop.f32.mrf.mxu0  ;;  %4252 = vmatprep.subr.mxu1 %v2475_v10 }
 0x16d   : > { %4512 = vpow2.f32 %v3809_v62  ;;  %v5484_v35 = vadd.f32 %v939_v34, %v5265_v21  ;;  %4175 = vmatprep.mubr.f32.mxu1 %v1964_v61  ;;  %4253 = vmatpush3.msra.mxu1 %v2475_v10  ;;  %v2474_v34 = vld [vmem:[%s5066_s11 + $0x50] sm:$0xff] }
 0x16e   : > { %v4501_v37 = vpop.eup %4500  ;;  %4514 = vrcp.f32 %v1588_v19  ;;  %v5486_v2 = vpop.f32.mrf.mxu0  ;;  %4254 = vmatprep.subr.mxu1 %v2474_v34 }
 0x16f   : > { %v4503_v7 = vpop.eup %4502  ;;  %v1966_v41 = vmul.f32 %v4501_v37, %v5424_v22  ;;  %v3811_v26 = vmul.f32 -1.442695, %v5484_v35  ;;  %4255 = vmatpush3.msra.mxu1 %v2474_v34 }
 0x170   : > { %v1590_v50 = vadd.f32 1.0, %v4503_v7  ;;  %v945_v52 = vpop.f32.mrf.mxu0 }
 0x171   : > { %4516 = vpow2.f32 %v3811_v26  ;;  %v5492_v27 = vadd.f32 %v945_v52, %v5265_v21  ;;  %4176 = vmatmul.mubr.f32.gmra.mxu1 %v1966_v41 }
 0x172   : > { %v4505_v55 = vpop.eup %4504  ;;  %4518 = vrcp.f32 %v1590_v50  ;;  %v5494_v57 = vpop.f32.mrf.mxu0 }
 0x173   : > { %v4507_v60 = vpop.eup %4506  ;;  %v1592_v0 = vadd.f32 1.0, %v4505_v55  ;;  %v3813_v22 = vmul.f32 -1.442695, %v5492_v27 }
 0x174   : > { %v1968_v43 = vmul.f32 %v4507_v60, %v5431_v42  ;;  %v951_v48 = vpop.f32.mrf.mxu0 }
 0x175   : > { %4520 = vrcp.f32 %v1592_v0  ;;  %v5499_v38 = vadd.f32 %v951_v48, %v5265_v21 }
 0x176   : > { %v4509_v3 = vpop.eup %4508  ;;  %4522 = vpow2.f32 %v3813_v22  ;;  %4178 = vmatprep.mubr.f32.mxu1 %v1968_v43  ;;  %v5501_v13 = vpop.f32.mrf.mxu0 }
 0x177   : > { %v4511_v40 = vpop.eup %4510  ;;  %v1594_v18 = vadd.f32 1.0, %v4509_v3  ;;  %v3815_v61 = vmul.f32 -1.442695, %v5499_v38 }
 0x178   : > { %v1970_v62 = vmul.f32 %v4511_v40, %v5439_v49  ;;  %v957_v19 = vpop.f32.mrf.mxu0  ;;  %v2473_v40 = vld [vmem:[%s5066_s11 + $0x48] sm:$0xff] }
 0x179   : > { %4524 = vrcp.f32 %v1594_v18  ;;  %v5507_v42 = vadd.f32 %v957_v19, %v5265_v21  ;;  %4256 = vmatprep.subr.mxu1 %v2473_v40 }
 0x17a   : > { %v4513_v37 = vpop.eup %4512  ;;  %4526 = vpow2.f32 %v3815_v61  ;;  %4179 = vmatmul.mubr.f32.gmra.mxu1 %v1970_v62  ;;  %v5509_v7 = vpop.f32.mrf.mxu0 }
 0x17b   : > { %v4515_v41 = vpop.eup %4514  ;;  %v1596_v26 = vadd.f32 1.0, %v4513_v37  ;;  %v3817_v10 = vmul.f32 -1.442695, %v5507_v42  ;;  %4257 = vmatpush3.msra.mxu1 %v2473_v40 }
 0x17c   : > { %v1972_v49 = vmul.f32 %v4515_v41, %v5446_v54  ;;  %v963_v50 = vpop.f32.mrf.mxu0 }
 0x17d   : > { %4528 = vrcp.f32 %v1596_v26  ;;  %v5514_v52 = vadd.f32 %v963_v50, %v5265_v21  ;;  %v2472_v26 = vld [vmem:[%s5066_s11 + $0x40] sm:$0xff] }
 0x17e   : > { %v4517_v55 = vpop.eup %4516  ;;  %4530 = vpow2.f32 %v3817_v10  ;;  %4181 = vmatprep.mubr.f32.mxu1 %v1972_v49  ;;  %v5516_v60 = vpop.f32.mrf.mxu0  ;;  %4258 = vmatprep.subr.mxu1 %v2472_v26 }
 0x17f   : > { %v4519_v0 = vpop.eup %4518  ;;  %v1598_v22 = vadd.f32 1.0, %v4517_v55  ;;  %v3819_v43 = vmul.f32 -1.442695, %v5514_v52  ;;  %4259 = vmatpush3.msra.mxu1 %v2472_v26 }
 0x180   : > { %v1974_v48 = vmul.f32 %v4519_v0, %v5454_v53  ;;  %v969_v3 = vpop.f32.mrf.mxu0 }
 0x181   : > { %4532 = vrcp.f32 %v1598_v22  ;;  %v5522_v54 = vadd.f32 %v969_v3, %v5265_v21 }
 0x182   : > { %v4521_v18 = vpop.eup %4520  ;;  %4534 = vpow2.f32 %v3819_v43  ;;  %4182 = vmatmul.mubr.f32.gmra.mxu1 %v1974_v48  ;;  %v5524_v61 = vpop.f32.mrf.mxu0 }
 0x183   : > { %v4523_v62 = vpop.eup %4522  ;;  %v1976_v19 = vmul.f32 %v4521_v18, %v5461_v39  ;;  %v3821_v34 = vmul.f32 -1.442695, %v5522_v54 }
 0x184   : > { %v1600_v53 = vadd.f32 1.0, %v4523_v62  ;;  %v975_v37 = vpop.f32.mrf.mxu0 }
 0x185   : > { %4536 = vpow2.f32 %v3821_v34  ;;  %v5529_v41 = vadd.f32 %v975_v37, %v5265_v21  ;;  %4184 = vmatprep.mubr.f32.mxu1 %v1976_v19 }
 0x186   : > { %v4525_v10 = vpop.eup %4524  ;;  %4538 = vrcp.f32 %v1600_v53  ;;  %v5532_v49 = vpop.f32.mrf.mxu0  ;;  %v2471_v53 = vld [vmem:[%s5066_s11 + $0x38] sm:$0xff] }
 0x187   : > { %v4527_v50 = vpop.eup %4526  ;;  %v1978_v55 = vmul.f32 %v4525_v10, %v5469_v23  ;;  %v3823_v39 = vmul.f32 -1.442695, %v5529_v41  ;;  %4260 = vmatprep.subr.mxu1 %v2471_v53 }
 0x188   : > { %v1602_v0 = vadd.f32 1.0, %v4527_v50  ;;  %v981_v22 = vpop.f32.mrf.mxu0  ;;  %4261 = vmatpush3.msra.mxu1 %v2471_v53 }
 0x189   : > { %4540 = vpow2.f32 %v3823_v39  ;;  %v5537_v43 = vadd.f32 %v981_v22, %v5265_v21  ;;  %4185 = vmatmul.mubr.f32.gmra.mxu1 %v1978_v55 }
 0x18a   : > { %v4529_v48 = vpop.eup %4528  ;;  %4542 = vrcp.f32 %v1602_v0  ;;  %v5539_v3 = vpop.f32.mrf.mxu0 }
 0x18b   : > { %7480 = vst [vmem:[#allocation7_spill] sm:$0xff] %v5539_v3  ;;  %v4531_v40 = vpop.eup %4530  ;;  %v1980_v18 = vmul.f32 %v4529_v48, %v5476_v8  ;;  %v3825_v23 = vmul.f32 -1.442695, %v5537_v43 }
 0x18c   : > { %v1604_v62 = vadd.f32 1.0, %v4531_v40  ;;  %v987_v19 = vpop.f32.mrf.mxu0 }
 0x18d   : > { %4544 = vpow2.f32 %v3825_v23  ;;  %v5544_v34 = vadd.f32 %v987_v19, %v5265_v21  ;;  %4187 = vmatprep.mubr.f32.mxu1 %v1980_v18 }
 0x18e   : > { %v4533_v37 = vpop.eup %4532  ;;  %4546 = vrcp.f32 %v1604_v62  ;;  %v5547_v26 = vpop.f32.mrf.mxu0 }
 0x18f   : > { %7481 = vst [vmem:[#allocation8_spill] sm:$0xff] %v5547_v26  ;;  %v4535_v10 = vpop.eup %4534  ;;  %v1982_v50 = vmul.f32 %v4533_v37, %v5484_v35  ;;  %v3827_v8 = vmul.f32 -1.442695, %v5544_v34 }
 0x190   : > { %v1606_v55 = vadd.f32 1.0, %v4535_v10  ;;  %v993_v39 = vpop.f32.mrf.mxu0  ;;  %v2470_v10 = vld [vmem:[%s5066_s11 + $0x30] sm:$0xff] }
 0x191   : > { %4548 = vpow2.f32 %v3827_v8  ;;  %v5552_v0 = vadd.f32 %v993_v39, %v5265_v21  ;;  %4188 = vmatmul.mubr.f32.gmra.mxu1 %v1982_v50  ;;  %4262 = vmatprep.subr.mxu1 %v2470_v10 }
 0x192   : > { %v4537_v22 = vpop.eup %4536  ;;  %4550 = vrcp.f32 %v1606_v55  ;;  %v5554_v48 = vpop.f32.mrf.mxu0  ;;  %4263 = vmatpush3.msra.mxu1 %v2470_v10 }
 0x193   : > { %7482 = vst [vmem:[#allocation9_spill] sm:$0xff] %v5554_v48  ;;  %v4539_v40 = vpop.eup %4538  ;;  %v1608_v18 = vadd.f32 1.0, %v4537_v22  ;;  %v3829_v23 = vmul.f32 -1.442695, %v5552_v0 }
 0x194   : > { %v1984_v35 = vmul.f32 %v4539_v40, %v5492_v27  ;;  %v999_v62 = vpop.f32.mrf.mxu0  ;;  %v2469_v40 = vld [vmem:[%s5066_s11 + $0x28] sm:$0xff] }
 0x195   : > { %4552 = vrcp.f32 %v1608_v18  ;;  %v5559_v19 = vadd.f32 %v999_v62, %v5265_v21  ;;  %4264 = vmatprep.subr.mxu1 %v2469_v40 }
 0x196   : > { %v4541_v53 = vpop.eup %4540  ;;  %4554 = vpow2.f32 %v3829_v23  ;;  %4190 = vmatprep.mubr.f32.mxu1 %v1984_v35  ;;  %v5561_v37 = vpop.f32.mrf.mxu0  ;;  %4265 = vmatpush3.msra.mxu1 %v2469_v40 }
 0x197   : > { %7483 = vst [vmem:[#allocation10_spill] sm:$0xff] %v5561_v37  ;;  %v4543_v50 = vpop.eup %4542  ;;  %v1610_v8 = vadd.f32 1.0, %v4541_v53  ;;  %v3831_v55 = vmul.f32 -1.442695, %v5559_v19 }
 0x198   : > { %v1986_v27 = vmul.f32 %v4543_v50, %v5499_v38  ;;  %v1005_v39 = vpop.f32.mrf.mxu0  ;;  %v2468_v38 = vld [vmem:[%s5066_s11 + $0x20] sm:$0xff] }
 0x199   : > { %4556 = vrcp.f32 %v1610_v8  ;;  %v5567_v22 = vadd.f32 %v1005_v39, %v5265_v21  ;;  %4266 = vmatprep.subr.mxu1 %v2468_v38 }
 0x19a   : > { %v4545_v18 = vpop.eup %4544  ;;  %4558 = vpow2.f32 %v3831_v55  ;;  %4191 = vmatmul.mubr.f32.gmra.mxu1 %v1986_v27  ;;  %v5570_v23 = vpop.f32.mrf.mxu0  ;;  %v2467_v55 = vld [vmem:[%s5066_s11 + $0x18] sm:$0xff] }
 0x19b   : > { %7484 = vst [vmem:[#allocation11_spill] sm:$0xff] %v5570_v23  ;;  %v4547_v35 = vpop.eup %4546  ;;  %v1612_v62 = vadd.f32 1.0, %v4545_v18  ;;  %v3833_v53 = vmul.f32 -1.442695, %v5567_v22  ;;  %4267 = vmatpush3.msra.mxu1 %v2468_v38  ;;  %v507_v18 = vsub.s32 1, %v5248_v12  ;;  %v2465_v38 = vld [vmem:[%s5066_s11 + $0x8] sm:$0xff] }
 0x19c   : > { %v1988_v10 = vmul.f32 %v4547_v35, %v5507_v42  ;;  %v1011_v50 = vpop.f32.mrf.mxu0  ;;  %4268 = vmatprep.subr.mxu1 %v2467_v55 }
 0x19d   : > { %4560 = vrcp.f32 %v1612_v62  ;;  %v5576_v8 = vadd.f32 %v1011_v50, %v5265_v21  ;;  %4269 = vmatpush3.msra.mxu1 %v2467_v55  ;;  %v2466_v62 = vld [vmem:[%s5066_s11 + $0x10] sm:$0xff]  ;;  %v5592_v55 = vrot.slane %v5257_v17, %v507_v18 }
 0x19e   : > { %v4549_v27 = vpop.eup %4548  ;;  %4562 = vpow2.f32 %v3833_v53  ;;  %4193 = vmatprep.mubr.f32.mxu1 %v1988_v10  ;;  %v5579_v39 = vpop.f32.mrf.mxu0  ;;  %4270 = vmatprep.subr.mxu1 %v2466_v62 }
 0x19f   : > { %7485 = vst [vmem:[#allocation12_spill] sm:$0xff] %v5579_v39  ;;  %v4551_v40 = vpop.eup %4550  ;;  %v1614_v42 = vadd.f32 1.0, %v4549_v27  ;;  %v3835_v35 = vmul.f32 -1.442695, %v5576_v8  ;;  %4271 = vmatpush3.msra.mxu1 %v2466_v62 }
 0x1a0   : > { %v1990_v50 = vmul.f32 %v4551_v40, %v5514_v52  ;;  %v1017_v5 = vpop.f32.mrf.mxu0  ;;  %4272 = vmatprep.subr.mxu1 %v2465_v38 }
 0x1a1   : > { %4564 = vrcp.f32 %v1614_v42  ;;  %v5586_v53 = vadd.f32 %v1017_v5, %v5265_v21  ;;  %4273 = vmatpush3.msra.mxu1 %v2465_v38  ;;  %v2464_v42 = vld [vmem:[%s5066_s11] sm:$0xff] }
 0x1a2   : > { %v4553_v10 = vpop.eup %4552  ;;  %4566 = vpow2.f32 %v3835_v35  ;;  %4194 = vmatmul.mubr.f32.gmra.mxu1 %v1990_v50  ;;  %v5589_v39 = vpop.f32.mrf.mxu0  ;;  %4274 = vmatprep.subr.mxu1 %v2464_v42 }
 0x1a3   : > { %7486 = vst [vmem:[#allocation13_spill] sm:$0xff] %v5589_v39  ;;  %v4555_v27 = vpop.eup %4554  ;;  %v1992_v52 = vmul.f32 %v4553_v10, %v5522_v54  ;;  %v3837_v40 = vmul.f32 -1.442695, %v5586_v53  ;;  %4275 = vmatpush3.msra.mxu1 %v2464_v42  ;;  %v5604_v54 = vadd.f32 %v5246_v11, %v5592_v55 }
 0x1a4   : > { %v1616_v5 = vadd.f32 1.0, %v4555_v27  ;;  %v1023_v23 = vpop.f32.mrf.mxu0 }
 0x1a5   : > { %4568 = vpow2.f32 %v3837_v40  ;;  %v5598_v35 = vadd.f32 %v1023_v23, %v5265_v21  ;;  %4196 = vmatprep.mubr.f32.mxu1 %v1992_v52 }
 0x1a6   : > { %v4557_v62 = vpop.eup %4556  ;;  %4570 = vrcp.f32 %v1616_v5  ;;  %v5600_v50 = vpop.f32.mrf.mxu0  ;;  %v3758_v5 = vmul.f32 -1.442695, %v5604_v54 }
 0x1a7   : > { %7487 = vst [vmem:[#allocation14_spill] sm:$0xff] %v5600_v50  ;;  %v4559_v17 = vpop.eup %4558  ;;  %v1994_v18 = vmul.f32 %v4557_v62, %v5529_v41  ;;  %v3839_v38 = vmul.f32 -1.442695, %v5598_v35  ;;  %v5618_v62 = vadd.f32 %v5253_v15, %v5592_v55 }
 0x1a8   : > { %v1618_v10 = vadd.f32 1.0, %v4559_v17  ;;  %v1029_v27 = vpop.f32.mrf.mxu0 }
 0x1a9   : > { %4572 = vpow2.f32 %v3839_v38  ;;  %v5609_v23 = vadd.f32 %v1029_v27, %v5265_v21  ;;  %4197 = vmatmul.mubr.f32.gmra.mxu1 %v1994_v18  ;;  %v3760_v15 = vmul.f32 -1.442695, %v5618_v62 }
 0x1aa   : > { %v4561_v52 = vpop.eup %4560  ;;  %4574 = vrcp.f32 %v1618_v10  ;;  %v5611_v40 = vpop.f32.mrf.mxu0 }
 0x1ab   : > { %7488 = vst [vmem:[#allocation15_spill] sm:$0xff] %v5611_v40  ;;  %v4563_v42 = vpop.eup %4562  ;;  %v1996_v11 = vmul.f32 %v4561_v52, %v5537_v43  ;;  %v3841_v41 = vmul.f32 -1.442695, %v5609_v23 }
 0x1ac   : > { %v1620_v17 = vadd.f32 1.0, %v4563_v42  ;;  %v1035_v38 = vpop.f32.mrf.mxu0 }
 0x1ad   : > { %4576 = vpow2.f32 %v3841_v41  ;;  %v5621_v18 = vadd.f32 %v1035_v38, %v5265_v21  ;;  %4199 = vmatprep.mubr.f32.mxu1 %v1996_v11 }
 0x1ae   : > { %v4565_v10 = vpop.eup %4564  ;;  %4578 = vrcp.f32 %v1620_v17  ;;  %v5623_v27 = vpop.f32.mrf.mxu0 }
 0x1af   : > { %7489 = vst [vmem:[#allocation16_spill] sm:$0xff] %v5623_v27  ;;  %v4567_v40 = vpop.eup %4566  ;;  %4580 = vpow2.f32 %v3758_v5  ;;  %v1998_v43 = vmul.f32 %v4565_v10, %v5544_v34  ;;  %v3843_v52 = vmul.f32 -1.442695, %v5621_v18  ;;  %v5635_v5 = vadd.f32 %v5262_v20, %v5592_v55 }
 0x1b0   : > { %v1622_v50 = vadd.f32 1.0, %v4567_v40  ;;  %v1041_v42 = vpop.f32.mrf.mxu0  ;;  %v5640_v40 = vadd.f32 %v5270_v24, %v5592_v55 }
 0x1b1   : > { %4582 = vpow2.f32 %v3843_v52  ;;  %v5629_v41 = vadd.f32 %v1041_v42, %v5265_v21  ;;  %4200 = vmatmul.mubr.f32.gmra.mxu1 %v1998_v43 }
 0x1b2   : > { %v4569_v11 = vpop.eup %4568  ;;  %4584 = vrcp.f32 %v1622_v50  ;;  %v5631_v17 = vpop.f32.mrf.mxu0  ;;  %v3764_v24 = vmul.f32 -1.442695, %v5640_v40 }
 0x1b3   : > { %7490 = vst [vmem:[#allocation17_spill] sm:$0xff] %v5631_v17  ;;  %v4571_v38 = vpop.eup %4570  ;;  %v1624_v34 = vadd.f32 1.0, %v4569_v11  ;;  %v3845_v10 = vmul.f32 -1.442695, %v5629_v41  ;;  %4586 = vpow2.f32 %v3760_v15  ;;  %v3762_v17 = vmul.f32 -1.442695, %v5635_v5 }
 0x1b4   : > { %v2000_v52 = vmul.f32 %v4571_v38, %v5552_v0  ;;  %v1047_v43 = vpop.f32.mrf.mxu0  ;;  %v5653_v0 = vadd.f32 %v5281_v29, %v5592_v55 }
 0x1b5   : > { %4588 = vrcp.f32 %v1624_v34  ;;  %v5644_v50 = vadd.f32 %v1047_v43, %v5265_v21 }
 0x1b6   : > { %v4573_v42 = vpop.eup %4572  ;;  %4590 = vpow2.f32 %v3845_v10  ;;  %4202 = vmatprep.mubr.f32.mxu1 %v2000_v52  ;;  %v5646_v20 = vpop.f32.mrf.mxu0  ;;  %v3766_v29 = vmul.f32 -1.442695, %v5653_v0 }
 0x1b7   : > { %7491 = vst [vmem:[#allocation18_spill] sm:$0xff] %v5646_v20  ;;  %v4575_v11 = vpop.eup %4574  ;;  %v1626_v15 = vadd.f32 1.0, %v4573_v42  ;;  %v3847_v27 = vmul.f32 -1.442695, %v5644_v50 }
 0x1b8   : > { %v2002_v38 = vmul.f32 %v4575_v11, %v5559_v19  ;;  %v1053_v34 = vpop.f32.mrf.mxu0  ;;  %v5665_v19 = vadd.f32 %v5294_v36, %v5592_v55 }
 0x1b9   : > { %4592 = vrcp.f32 %v1626_v15  ;;  %v5657_v10 = vadd.f32 %v1053_v34, %v5265_v21 }
 0x1ba   : > { %v4577_v52 = vpop.eup %4576  ;;  %4594 = vpow2.f32 %v3847_v27  ;;  %4203 = vmatmul.mubr.f32.gmra.mxu1 %v2002_v38  ;;  %v5659_v43 = vpop.f32.mrf.mxu0  ;;  %v3768_v36 = vmul.f32 -1.442695, %v5665_v19 }
 0x1bb   : > { %7492 = vst [vmem:[#allocation19_spill] sm:$0xff] %v5659_v43  ;;  %v4579_v42 = vpop.eup %4578  ;;  %4596 = vpow2.f32 %v3762_v17  ;;  %v1628_v20 = vadd.f32 1.0, %v4577_v52  ;;  %v3849_v39 = vmul.f32 -1.442695, %v5657_v10 }
 0x1bc   : > { %v4581_v37 = vpop.eup %4580  ;;  %4598 = vpow2.f32 %v3764_v24  ;;  %v2004_v11 = vmul.f32 %v4579_v42, %v5567_v22  ;;  %v1059_v15 = vpop.f32.mrf.mxu0 }
 0x1bd   : > { %4600 = vrcp.f32 %v1628_v20  ;;  %v5669_v27 = vadd.f32 %v1059_v15, %v5265_v21  ;;  %v1545_v24 = vadd.f32 1.0, %v4581_v37 }
 0x1be   : > { %v4583_v38 = vpop.eup %4582  ;;  %4602 = vpow2.f32 %v3849_v39  ;;  %4205 = vmatprep.mubr.f32.mxu1 %v2004_v11  ;;  %v5671_v17 = vpop.f32.mrf.mxu0 }
 0x1bf   : > { %7493 = vst [vmem:[#allocation20_spill] sm:$0xff] %v5671_v17  ;;  %v4585_v34 = vpop.eup %4584  ;;  %v1630_v52 = vadd.f32 1.0, %v4583_v38  ;;  %v3851_v43 = vmul.f32 -1.442695, %v5669_v27  ;;  %4604 = vpow2.f32 %v3766_v29  ;;  %v5683_v29 = vadd.f32 %v5310_v44, %v5592_v55 }
 0x1c0   : > { %v2006_v22 = vmul.f32 %v4585_v34, %v5576_v8  ;;  %v1065_v42 = vpop.f32.mrf.mxu0  ;;  %v4587_v20 = vpop.eup %4586 }
 0x1c1   : > { %4606 = vrcp.f32 %v1630_v52  ;;  %v5677_v15 = vadd.f32 %v1065_v42, %v5265_v21  ;;  %v1547_v34 = vadd.f32 1.0, %v4587_v20  ;;  %v5689_v52 = vadd.f32 %v5321_v51, %v5592_v55 }
 0x1c2   : > { %v4589_v39 = vpop.eup %4588  ;;  %4608 = vpow2.f32 %v3851_v43  ;;  %4206 = vmatmul.mubr.f32.gmra.mxu1 %v2006_v22  ;;  %v5679_v11 = vpop.f32.mrf.mxu0 }
 0x1c3   : > { %7494 = vst [vmem:[#allocation21_spill] sm:$0xff] %v5679_v11  ;;  %v4591_v37 = vpop.eup %4590  ;;  %4610 = vrcp.f32 %v1545_v24  ;;  %v2008_v38 = vmul.f32 %v4589_v39, %v5586_v53  ;;  %v3853_v8 = vmul.f32 -1.442695, %v5677_v15  ;;  %v3770_v39 = vmul.f32 -1.442695, %v5683_v29 }
 0x1c4   : > { %4612 = vpow2.f32 %v3768_v36  ;;  %v1632_v43 = vadd.f32 1.0, %v4591_v37  ;;  %v1071_v22 = vpop.f32.mrf.mxu0  ;;  %v5699_v36 = vadd.f32 %v5330_v56, %v5592_v55 }
 0x1c5   : > { %4614 = vpow2.f32 %v3853_v8  ;;  %v5692_v42 = vadd.f32 %v1071_v22, %v5265_v21  ;;  %4208 = vmatprep.mubr.f32.mxu1 %v2008_v38  ;;  %v3772_v8 = vmul.f32 -1.442695, %v5689_v52 }
 0x1c6   : > { %v4593_v24 = vpop.eup %4592  ;;  %4616 = vrcp.f32 %v1632_v43  ;;  %v5694_v44 = vpop.f32.mrf.mxu0 }
 0x1c7   : > { %7495 = vst [vmem:[#allocation22_spill] sm:$0xff] %v5694_v44  ;;  %v4595_v53 = vpop.eup %4594  ;;  %v2010_v51 = vmul.f32 %v4593_v24, %v5598_v35  ;;  %v3855_v20 = vmul.f32 -1.442695, %v5692_v42  ;;  %4618 = vrcp.f32 %v1547_v34  ;;  %v3774_v35 = vmul.f32 -1.442695, %v5699_v36 }
 0x1c8   : > { %v4597_v37 = vpop.eup %4596  ;;  %v1634_v38 = vadd.f32 1.0, %v4595_v53  ;;  %v1077_v22 = vpop.f32.mrf.mxu0 }
 0x1c9   : > { %v4599_v43 = vpop.eup %4598  ;;  %4620 = vpow2.f32 %v3855_v20  ;;  %v5705_v44 = vadd.f32 %v1077_v22, %v5265_v21  ;;  %4209 = vmatmul.mubr.f32.gmra.mxu1 %v2010_v51  ;;  %v1549_v53 = vadd.f32 1.0, %v4597_v37 }
 0x1ca   : > { %v4601_v11 = vpop.eup %4600  ;;  %4622 = vrcp.f32 %v1634_v38  ;;  %v5707_v56 = vpop.f32.mrf.mxu0  ;;  %v1551_v22 = vadd.f32 1.0, %v4599_v43  ;;  %v5727_v43 = vadd.f32 %v5348_v9, %v5592_v55 }
 0x1cb   : > { %7496 = vst [vmem:[#allocation23_spill] sm:$0xff] %v5707_v56  ;;  %v4603_v17 = vpop.eup %4602  ;;  %4624 = vpow2.f32 %v3770_v39  ;;  %v2012_v34 = vmul.f32 %v4601_v11, %v5609_v23  ;;  %v3857_v24 = vmul.f32 -1.442695, %v5705_v44  ;;  %v5719_v23 = vadd.f32 %v5339_v63, %v5592_v55 }
 0x1cc   : > { %4626 = vpow2.f32 %v3772_v8  ;;  %v1636_v48 = vadd.f32 1.0, %v4603_v17  ;;  %v1083_v20 = vpop.f32.mrf.mxu0  ;;  %v4605_v12 = vpop.eup %4604 }
 0x1cd   : > { %4628 = vpow2.f32 %v3857_v24  ;;  %v5713_v51 = vadd.f32 %v1083_v20, %v5265_v21  ;;  %4211 = vmatprep.mubr.f32.mxu1 %v2012_v34  ;;  %v1553_v8 = vadd.f32 1.0, %v4605_v12  ;;  %v3776_v12 = vmul.f32 -1.442695, %v5719_v23 }
 0x1ce   : > { %v4607_v38 = vpop.eup %4606  ;;  %4630 = vrcp.f32 %v1636_v48  ;;  %v5715_v39 = vpop.f32.mrf.mxu0 }
 0x1cf   : > { %7497 = vst [vmem:[#allocation24_spill] sm:$0xff] %v5715_v39  ;;  %v4609_v56 = vpop.eup %4608  ;;  %4632 = vpow2.f32 %v3774_v35  ;;  %v2014_v17 = vmul.f32 %v4607_v38, %v5621_v18  ;;  %v3859_v11 = vmul.f32 -1.442695, %v5713_v51  ;;  %v5739_v38 = vadd.f32 %v5357_v30, %v5592_v55 }
 0x1d0   : > { %v5723_v37 = vpop.eup %4610  ;;  %4634 = vrcp.f32 %v1549_v53  ;;  %v1638_v48 = vadd.f32 1.0, %v4609_v56  ;;  %v1089_v34 = vpop.f32.mrf.mxu0  ;;  %v3778_v56 = vmul.f32 -1.442695, %v5727_v43 }
 0x1d1   : > { %v4613_v24 = vpop.eup %4612  ;;  %4636 = vpow2.f32 %v3859_v11  ;;  %v5730_v35 = vadd.f32 %v1089_v34, %v5265_v21  ;;  %4212 = vmatmul.mubr.f32.gmra.mxu1 %v2014_v17  ;;  %7499 = vst [vmem:[#allocation26_spill] sm:$0xff] %v5739_v38 }
 0x1d2   : > { %v4615_v63 = vpop.eup %4614  ;;  %4638 = vrcp.f32 %v1638_v48  ;;  %v5732_v18 = vpop.f32.mrf.mxu0 }
 0x1d3   : > { %7498 = vst [vmem:[#allocation25_spill] sm:$0xff] %v5732_v18  ;;  %v4617_v20 = vpop.eup %4616  ;;  %4640 = vrcp.f32 %v1551_v22  ;;  %v1640_v53 = vadd.f32 1.0, %v4615_v63  ;;  %v3861_v9 = vmul.f32 -1.442695, %v5730_v35  ;;  %v1555_v18 = vadd.f32 1.0, %v4613_v24 }
 0x1d4   : > { %4642 = vrcp.f32 %v1553_v8  ;;  %v2016_v17 = vmul.f32 %v4617_v20, %v5629_v41  ;;  %v1095_v11 = vpop.f32.mrf.mxu0  ;;  %v5742_v48 = vpop.eup %4618  ;;  %v3780_v41 = vmul.f32 -1.442695, %v5739_v38 }
 0x1d5   : > { %4644 = vrcp.f32 %v1640_v53  ;;  %v5745_v22 = vadd.f32 %v1095_v11, %v5265_v21 }
 0x1d6   : > { %v4621_v34 = vpop.eup %4620  ;;  %4646 = vpow2.f32 %v3861_v9  ;;  %4214 = vmatprep.mubr.f32.mxu1 %v2016_v17  ;;  %v5747_v63 = vpop.f32.mrf.mxu0 }
 0x1d7   : > { %7500 = vst [vmem:[#allocation27_spill] sm:$0xff] %v5747_v63  ;;  %v4623_v8 = vpop.eup %4622  ;;  %4648 = vpow2.f32 %v3776_v12  ;;  %v1642_v39 = vadd.f32 1.0, %v4621_v34  ;;  %v3863_v30 = vmul.f32 -1.442695, %v5745_v22 }
 0x1d8   : > { %v4625_v26 = vpop.eup %4624  ;;  %4650 = vpow2.f32 %v3778_v56  ;;  %v2018_v20 = vmul.f32 %v4623_v8, %v5644_v50  ;;  %v1101_v53 = vpop.f32.mrf.mxu0  ;;  %v5760_v50 = vadd.f32 %v5366_v47, %v5592_v55 }
 0x1d9   : > { %v4627_v11 = vpop.eup %4626  ;;  %4652 = vrcp.f32 %v1642_v39  ;;  %v5753_v9 = vadd.f32 %v1101_v53, %v5265_v21  ;;  %v1557_v34 = vadd.f32 1.0, %v4625_v26 }
 0x1da   : > { %v4629_v17 = vpop.eup %4628  ;;  %4654 = vpow2.f32 %v3863_v30  ;;  %4215 = vmatmul.mubr.f32.gmra.mxu1 %v2018_v20  ;;  %v5755_v24 = vpop.f32.mrf.mxu0  ;;  %v1559_v38 = vadd.f32 1.0, %v4627_v11  ;;  %7502 = vst [vmem:[#allocation29_spill] sm:$0xff] %v5760_v50 }
 0x1db   : > { %7501 = vst [vmem:[#allocation28_spill] sm:$0xff] %v5755_v24  ;;  %v4631_v12 = vpop.eup %4630  ;;  %4656 = vrcp.f32 %v1555_v18  ;;  %v1644_v63 = vadd.f32 1.0, %v4629_v17  ;;  %v3865_v56 = vmul.f32 -1.442695, %v5753_v9 }
 0x1dc   : > { %v4633_v3 = vpop.eup %4632  ;;  %4658 = vpow2.f32 %v3780_v41  ;;  %v2020_v39 = vmul.f32 %v4631_v12, %v5657_v10  ;;  %v1107_v8 = vpop.f32.mrf.mxu0  ;;  %v3782_v10 = vmul.f32 -1.442695, %v5760_v50 }
 0x1dd   : > { %v5763_v30 = vpop.eup %4634  ;;  %4660 = vrcp.f32 %v1644_v63  ;;  %v5766_v20 = vadd.f32 %v1107_v8, %v5265_v21  ;;  %v1561_v41 = vadd.f32 1.0, %v4633_v3  ;;  %v5776_v63 = vadd.f32 %v5375_v58, %v5592_v55 }
 0x1de   : > { %v4637_v26 = vpop.eup %4636  ;;  %4662 = vpow2.f32 %v3865_v56  ;;  %4217 = vmatprep.mubr.f32.mxu1 %v2020_v39  ;;  %v5768_v18 = vpop.f32.mrf.mxu0 }
 0x1df   : > { %7503 = vst [vmem:[#allocation30_spill] sm:$0xff] %v5768_v18  ;;  %v4639_v53 = vpop.eup %4638  ;;  %4664 = vrcp.f32 %v1557_v34  ;;  %v1646_v11 = vadd.f32 1.0, %v4637_v26  ;;  %v3867_v47 = vmul.f32 -1.442695, %v5766_v20  ;;  %7504 = vst [vmem:[#allocation31_spill] sm:$0xff] %v5776_v63 }
 0x1e0   : > { %v5771_v17 = vpop.eup %4640  ;;  %4666 = vrcp.f32 %v1559_v38  ;;  %v2022_v12 = vmul.f32 %v4639_v53, %v5669_v27  ;;  %v1113_v56 = vpop.f32.mrf.mxu0  ;;  %v3784_v27 = vmul.f32 -1.442695, %v5776_v63 }
 0x1e1   : > { %v5779_v39 = vpop.eup %4642  ;;  %4668 = vrcp.f32 %v1646_v11  ;;  %v5782_v3 = vadd.f32 %v1113_v56, %v5265_v21 }
 0x1e2   : > { %v4645_v34 = vpop.eup %4644  ;;  %4670 = vpow2.f32 %v3867_v47  ;;  %4218 = vmatmul.mubr.f32.gmra.mxu1 %v2022_v12  ;;  %v5784_v8 = vpop.f32.mrf.mxu0 }
 0x1e3   : > { %7505 = vst [vmem:[#allocation32_spill] sm:$0xff] %v5784_v8  ;;  %v4647_v38 = vpop.eup %4646  ;;  %4672 = vrcp.f32 %v1561_v41  ;;  %v2024_v26 = vmul.f32 %v4645_v34, %v5677_v15  ;;  %v3869_v58 = vmul.f32 -1.442695, %v5782_v3  ;;  %v5796_v34 = vadd.f32 %v5384_v6, %v5592_v55 }
 0x1e4   : > { %v4649_v18 = vpop.eup %4648  ;;  %4674 = vpow2.f32 %v3782_v10  ;;  %v1648_v53 = vadd.f32 1.0, %v4647_v38  ;;  %v1119_v11 = vpop.f32.mrf.mxu0 }
 0x1e5   : > { %v4651_v24 = vpop.eup %4650  ;;  %4676 = vpow2.f32 %v3869_v58  ;;  %v5790_v56 = vadd.f32 %v1119_v11, %v5265_v21  ;;  %4220 = vmatprep.mubr.f32.mxu1 %v2024_v26  ;;  %v1563_v15 = vadd.f32 1.0, %v4649_v18  ;;  %7507 = vst [vmem:[#allocation34_spill] sm:$0xff] %v5796_v34 }
 0x1e6   : > { %v4653_v47 = vpop.eup %4652  ;;  %4678 = vrcp.f32 %v1648_v53  ;;  %v5792_v12 = vpop.f32.mrf.mxu0  ;;  %v1565_v58 = vadd.f32 1.0, %v4651_v24 }
 0x1e7   : > { %7506 = vst [vmem:[#allocation33_spill] sm:$0xff] %v5792_v12  ;;  %v4655_v41 = vpop.eup %4654  ;;  %v2026_v10 = vmul.f32 %v4653_v47, %v5692_v42  ;;  %v3871_v38 = vmul.f32 -1.442695, %v5790_v56  ;;  %4680 = vpow2.f32 %v3784_v27  ;;  %v3786_v42 = vmul.f32 -1.442695, %v5796_v34 }
 0x1e8   : > { %v5800_v8 = vpop.eup %4656  ;;  %v1650_v11 = vadd.f32 1.0, %v4655_v41  ;;  %v1125_v26 = vpop.f32.mrf.mxu0 }
 0x1e9   : > { %v4659_v63 = vpop.eup %4658  ;;  %4682 = vpow2.f32 %v3871_v38  ;;  %v5803_v53 = vadd.f32 %v1125_v26, %v5265_v21  ;;  %4221 = vmatmul.mubr.f32.gmra.mxu1 %v2026_v10  ;;  %v5814_v38 = vadd.f32 %v5394_v25, %v5592_v55 }
 0x1ea   : > { %v4661_v18 = vpop.eup %4660  ;;  %4684 = vrcp.f32 %v1650_v11  ;;  %v5805_v6 = vpop.f32.mrf.mxu0  ;;  %v1567_v41 = vadd.f32 1.0, %v4659_v63  ;;  %v5825_v63 = vadd.f32 %v5403_v31, %v5592_v55 }
 0x1eb   : > { %7508 = vst [vmem:[#allocation35_spill] sm:$0xff] %v5805_v6  ;;  %v4663_v12 = vpop.eup %4662  ;;  %4686 = vrcp.f32 %v1563_v15  ;;  %v2028_v47 = vmul.f32 %v4661_v18, %v5705_v44  ;;  %v3873_v24 = vmul.f32 -1.442695, %v5803_v53  ;;  %7509 = vst [vmem:[#allocation36_spill] sm:$0xff] %v5814_v38 }
 0x1ec   : > { %v5810_v27 = vpop.eup %4664  ;;  %4688 = vrcp.f32 %v1565_v58  ;;  %v1652_v10 = vadd.f32 1.0, %v4663_v12  ;;  %v1131_v11 = vpop.f32.mrf.mxu0  ;;  %7511 = vst [vmem:[#allocation38_spill] sm:$0xff] %v5825_v63 }
 0x1ed   : > { %v5816_v26 = vpop.eup %4666  ;;  %4690 = vpow2.f32 %v3873_v24  ;;  %v5819_v15 = vadd.f32 %v1131_v11, %v5265_v21  ;;  %4223 = vmatprep.mubr.f32.mxu1 %v2028_v47  ;;  %v3788_v24 = vmul.f32 -1.442695, %v5814_v38 }
 0x1ee   : > { %v4669_v44 = vpop.eup %4668  ;;  %4692 = vrcp.f32 %v1652_v10  ;;  %v5821_v18 = vpop.f32.mrf.mxu0 }
 0x1ef   : > { %7510 = vst [vmem:[#allocation37_spill] sm:$0xff] %v5821_v18  ;;  %v4671_v6 = vpop.eup %4670  ;;  %4694 = vpow2.f32 %v3786_v42  ;;  %v2030_v25 = vmul.f32 %v4669_v44, %v5713_v51  ;;  %v3875_v12 = vmul.f32 -1.442695, %v5819_v15  ;;  %v3790_v44 = vmul.f32 -1.442695, %v5825_v63 }
 0x1f0   : > { %v5829_v58 = vpop.eup %4672  ;;  %4696 = vrcp.f32 %v1567_v41  ;;  %v1654_v47 = vadd.f32 1.0, %v4671_v6  ;;  %v1137_v11 = vpop.f32.mrf.mxu0  ;;  %v5840_v41 = vadd.f32 %v5412_v1, %v5592_v55 }
 0x1f1   : > { %v4675_v10 = vpop.eup %4674  ;;  %4698 = vpow2.f32 %v3875_v12  ;;  %v5833_v18 = vadd.f32 %v1137_v11, %v5265_v21  ;;  %4224 = vmatmul.mubr.f32.gmra.mxu1 %v2030_v25 }
 0x1f2   : > { %v4677_v42 = vpop.eup %4676  ;;  %4700 = vrcp.f32 %v1654_v47  ;;  %v5835_v31 = vpop.f32.mrf.mxu0  ;;  %v1569_v34 = vadd.f32 1.0, %v4675_v10 }
 0x1f3   : > { %7512 = vst [vmem:[#allocation39_spill] sm:$0xff] %v5835_v31  ;;  %v4679_v51 = vpop.eup %4678  ;;  %v1656_v38 = vadd.f32 1.0, %v4677_v42  ;;  %v3877_v6 = vmul.f32 -1.442695, %v5833_v18  ;;  %4702 = vpow2.f32 %v3788_v24  ;;  %v3792_v42 = vmul.f32 -1.442695, %v5840_v41 }
 0x1f4   : > { %v2032_v12 = vmul.f32 %v4679_v51, %v5730_v35  ;;  %v1143_v11 = vpop.f32.mrf.mxu0  ;;  %v4681_v25 = vpop.eup %4680 }
 0x1f5   : > { %4704 = vrcp.f32 %v1656_v38  ;;  %v5845_v47 = vadd.f32 %v1143_v11, %v5265_v21  ;;  %v1571_v35 = vadd.f32 1.0, %v4681_v25  ;;  %v5855_v38 = vadd.f32 %v5419_v14, %v5592_v55 }
 0x1f6   : > { %v4683_v31 = vpop.eup %4682  ;;  %4706 = vpow2.f32 %v3877_v6  ;;  %4226 = vmatprep.mubr.f32.mxu1 %v2032_v12  ;;  %v5847_v63 = vpop.f32.mrf.mxu0 }
 0x1f7   : > { %7513 = vst [vmem:[#allocation40_spill] sm:$0xff] %v5847_v63  ;;  %v4685_v1 = vpop.eup %4684  ;;  %4708 = vpow2.f32 %v3790_v44  ;;  %v1658_v50 = vadd.f32 1.0, %v4683_v31  ;;  %v3879_v24 = vmul.f32 -1.442695, %v5845_v47 }
 0x1f8   : > { %v5851_v10 = vpop.eup %4686  ;;  %4710 = vrcp.f32 %v1569_v34  ;;  %v2034_v51 = vmul.f32 %v4685_v1, %v5745_v22  ;;  %v1149_v6 = vpop.f32.mrf.mxu0  ;;  %v3794_v22 = vmul.f32 -1.442695, %v5855_v38 }
 0x1f9   : > { %v5858_v12 = vpop.eup %4688  ;;  %4712 = vrcp.f32 %v1658_v50  ;;  %v5861_v44 = vadd.f32 %v1149_v6, %v5265_v21  ;;  %v5869_v50 = vadd.f32 %v5426_v32, %v5592_v55  ;;  %v5883_v32 = vadd.f32 %v5441_v59, %v5592_v55 }
 0x1fa   : > { %v4691_v31 = vpop.eup %4690  ;;  %4714 = vpow2.f32 %v3879_v24  ;;  %4227 = vmatmul.mubr.f32.gmra.mxu1 %v2034_v51  ;;  %v5863_v11 = vpop.f32.mrf.mxu0  ;;  %v5876_v51 = vadd.f32 %v5433_v45, %v5592_v55 }
 0x1fb   : > { %7514 = vst [vmem:[#allocation41_spill] sm:$0xff] %v5863_v11  ;;  %v4693_v34 = vpop.eup %4692  ;;  %4716 = vpow2.f32 %v3792_v42  ;;  %v1660_v25 = vadd.f32 1.0, %v4691_v31  ;;  %v3881_v14 = vmul.f32 -1.442695, %v5861_v44  ;;  %v3796_v45 = vmul.f32 -1.442695, %v5869_v50 }
 0x1fc   : > { %v4695_v63 = vpop.eup %4694  ;;  %4718 = vrcp.f32 %v1571_v35  ;;  %v2036_v1 = vmul.f32 %v4693_v34, %v5753_v9  ;;  %v1155_v6 = vpop.f32.mrf.mxu0  ;;  %7515 = vst [vmem:[#allocation42_spill] sm:$0xff] %v5876_v51 }
 0x1fd   : > { %v5872_v24 = vpop.eup %4696  ;;  %4720 = vrcp.f32 %v1660_v25  ;;  %v5879_v42 = vadd.f32 %v1155_v6, %v5265_v21  ;;  %v1573_v11 = vadd.f32 1.0, %v4695_v63  ;;  %v5889_v25 = vadd.f32 %v5448_v4, %v5592_v55 }
 0x1fe   : > { %v4699_v35 = vpop.eup %4698  ;;  %4722 = vpow2.f32 %v3881_v14  ;;  %4229 = vmatprep.mubr.f32.mxu1 %v2036_v1  ;;  %v3798_v1 = vmul.f32 -1.442695, %v5876_v51  ;;  %v5895_v63 = vadd.f32 %v5456_v28, %v5592_v55  ;;  %v3800_v6 = vmul.f32 -1.442695, %v5883_v32 }
 0x1ff   : > { %v4701_v31 = vpop.eup %4700  ;;  %v1662_v9 = vadd.f32 1.0, %v4699_v35  ;;  %v3883_v34 = vmul.f32 -1.442695, %v5879_v42  ;;  %4724 = vpow2.f32 %v3794_v22 }
 0x200   : > { %v2038_v21 = vmul.f32 %v4701_v31, %v5766_v20  ;;  %v4703_v14 = vpop.eup %4702  ;;  %7516 = vst [vmem:[#allocation43_spill] sm:$0xff] %v5895_v63  ;;  %v3802_v20 = vmul.f32 -1.442695, %v5889_v25  ;;  %v5902_v31 = vadd.f32 %v5463_v46, %v5592_v55 }
 0x201   : > { %4726 = vrcp.f32 %v1662_v9  ;;  %v3804_v9 = vmul.f32 -1.442695, %v5895_v63 }
 0x202   : > { %v4705_v59 = vpop.eup %4704  ;;  %4728 = vpow2.f32 %v3883_v34  ;;  %4230 = vmatmul.mubr.f32.gmra.mxu1 %v2038_v21 }
 0x203   : > { %v4707_v22 = vpop.eup %4706  ;;  %4730 = vrcp.f32 %v1573_v11  ;;  %v2040_v4 = vmul.f32 %v4705_v59, %v5782_v3  ;;  %v5909_v11 = vadd.f32 %v5471_v33, %v5592_v55  ;;  %v3806_v59 = vmul.f32 -1.442695, %v5902_v31 }
 0x204   : > { %v4709_v35 = vpop.eup %4708  ;;  %4732 = vpow2.f32 %v3796_v45  ;;  %v1664_v28 = vadd.f32 1.0, %v4707_v22  ;;  %v1575_v45 = vadd.f32 1.0, %v4703_v14 }
 0x205   : > { %v5904_v51 = vpop.eup %4710  ;;  %4734 = vpow2.f32 %v3798_v1  ;;  %4232 = vmatprep.mubr.f32.mxu1 %v2040_v4  ;;  %v5915_v1 = vadd.f32 %v5479_v16, %v5592_v55  ;;  %v3808_v33 = vmul.f32 -1.442695, %v5909_v11  ;;  %v5924_v16 = vadd.f32 %v5486_v2, %v5592_v55 }
 0x206   : > { %v4713_v3 = vpop.eup %4712  ;;  %4736 = vrcp.f32 %v1664_v28 }
 0x207   : > { %v4715_v34 = vpop.eup %4714  ;;  %4738 = vpow2.f32 %v3800_v6  ;;  %v2042_v21 = vmul.f32 %v4713_v3, %v5790_v56  ;;  %v1577_v56 = vadd.f32 1.0, %v4709_v35  ;;  %v5930_v35 = vpop.f32.mrf.mxu0 }
 0x208   : > { %v4717_v46 = vpop.eup %4716  ;;  %4740 = vpow2.f32 %v3802_v20  ;;  %v1666_v22 = vadd.f32 1.0, %v4715_v34  ;;  %v3810_v20 = vmul.f32 -1.442695, %v5915_v1  ;;  %7517 = vst [vmem:[#allocation44_spill] sm:$0xff] %v5930_v35 }
 0x209   : > { %v5917_v63 = vpop.eup %4718  ;;  %4742 = vpow2.f32 %v3804_v9  ;;  %4233 = vmatmul.mubr.f32.gmra.mxu1 %v2042_v21  ;;  %v1579_v9 = vadd.f32 1.0, %v4717_v46  ;;  %v5928_v21 = vadd.f32 %v5494_v57, %v5592_v55  ;;  %v3812_v46 = vmul.f32 -1.442695, %v5924_v16 }
 0x20a   : > { %v4721_v4 = vpop.eup %4720  ;;  %4744 = vrcp.f32 %v1666_v22  ;;  %v5942_v57 = vadd.f32 %v5509_v7, %v5592_v55  ;;  %v5953_v7 = vmul.f32 %v5742_v48, %v5618_v62  ;;  %v5968_v62 = vmul.f32 %v5779_v39, %v5653_v0 }
 0x20b   : > { %v4723_v14 = vpop.eup %4722  ;;  %4746 = vrcp.f32 %v1575_v45  ;;  %v2044_v6 = vmul.f32 %v4721_v4, %v5803_v53  ;;  %v5934_v45 = vadd.f32 %v5501_v13, %v5592_v55  ;;  %v3814_v13 = vmul.f32 -1.442695, %v5928_v21 }
 0x20c   : > { %4748 = vpow2.f32 %v3806_v59  ;;  %v1668_v28 = vadd.f32 1.0, %v4723_v14  ;;  %v4725_v3 = vpop.eup %4724 }
 0x20d   : > { %4750 = vpow2.f32 %v3808_v33  ;;  %4235 = vmatprep.mubr.f32.mxu1 %v2044_v6  ;;  %v1581_v4 = vadd.f32 1.0, %v4725_v3  ;;  %v5949_v6 = vmul.f32 %v5723_v37, %v5604_v54 }
 0x20e   : > { %v4727_v34 = vpop.eup %4726  ;;  %4752 = vrcp.f32 %v1668_v28  ;;  %v3816_v28 = vmul.f32 -1.442695, %v5934_v45 }
 0x20f   : > { %v4729_v53 = vpop.eup %4728  ;;  %4754 = vrcp.f32 %v1577_v56  ;;  %v2046_v2 = vmul.f32 %v4727_v34, %v5819_v15  ;;  %v5945_v56 = vpop.f32.mrf.mxu0  ;;  %v3818_v34 = vmul.f32 -1.442695, %v5942_v57 }
 0x210   : > { %v5937_v59 = vpop.eup %4730  ;;  %4756 = vpow2.f32 %v3810_v20  ;;  %v1670_v22 = vadd.f32 1.0, %v4729_v53  ;;  %v5957_v20 = vmul.f32 %v5763_v30, %v5635_v5  ;;  %v5972_v5 = vmul.f32 %v5800_v8, %v5665_v19 }
 0x211   : > { %v4733_v33 = vpop.eup %4732  ;;  %4758 = vrcp.f32 %v1579_v9  ;;  %4236 = vmatmul.mubr.f32.gmra.mxu1 %v2046_v2  ;;  %v5962_v9 = vmul.f32 %v5771_v17, %v5640_v40  ;;  %v5976_v40 = vmul.f32 %v5810_v27, %v5683_v29  ;;  %v2145_v0 = vpop.f32.mrf.mxu0  ;;  %v5984_v19 = vmul.f32 %v5816_v26, %v5689_v52 }
 0x212   : > { %v4735_v14 = vpop.eup %4734  ;;  %4760 = vrcp.f32 %v1670_v22  ;;  %v1583_v48 = vadd.f32 1.0, %v4733_v33  ;;  %v5988_v53 = vadd.f32 %v5524_v61, %v5592_v55  ;;  %v6000_v52 = vmul.f32 %v5829_v58, %v5699_v36 }
 0x213   : > { %v4737_v15 = vpop.eup %4736  ;;  %4762 = vpow2.f32 %v3812_v46  ;;  %v1585_v17 = vadd.f32 1.0, %v4735_v14  ;;  %v6004_v61 = vmul.f32 %v5851_v10, %v5719_v23  ;;  %v6008_v33 = vmul.f32 %v5858_v12, %v5727_v43  ;;  %v6015_v36 = vpop.f32.mrf.mxu0  ;;  %v7519_v23 = vld [vmem:[#allocation29_spill] sm:$0xff]  ;;  %v7520_v14 = vld [vmem:[#allocation31_spill] sm:$0xff] }
 0x214   : > { %v4739_v3 = vpop.eup %4738  ;;  %v2048_v54 = vmul.f32 %v4737_v15, %v5833_v18  ;;  %4764 = vrcp.f32 %v1581_v4  ;;  %v5980_v18 = vadd.f32 %v5516_v60, %v5592_v55  ;;  %v5995_v60 = vadd.f32 %v5532_v49, %v5592_v55  ;;  %v7518_v49 = vld [vmem:[#allocation26_spill] sm:$0xff] }
 0x215   : > { %v4741_v37 = vpop.eup %4740  ;;  %4766 = vpow2.f32 %v3814_v13  ;;  %v1587_v8 = vadd.f32 1.0, %v4739_v3  ;;  %v6012_v4 = vmul.f32 %v5872_v24, %v7518_v49  ;;  %v6019_v10 = vmul.f32 %v5904_v51, %v7519_v23  ;;  %v7521_v24 = vld [vmem:[#allocation34_spill] sm:$0xff] }
 0x216   : > { %v4743_v30 = vpop.eup %4742  ;;  %4238 = vmatprep.mubr.f32.mxu1 %v2048_v54  ;;  %4768 = vpow2.f32 %v3816_v28  ;;  %v1589_v27 = vadd.f32 1.0, %v4741_v37  ;;  %v6023_v13 = vmul.f32 %v5917_v63, %v7520_v14  ;;  %v3822_v43 = vmul.f32 -1.442695, %v5988_v53  ;;  %v7523_v37 = vld [vmem:[#allocation7_spill] sm:$0xff]  ;;  %v7529_v14 = vld [vmem:[#allocation9_spill] sm:$0xff] }
 0x217   : > { %v4745_v39 = vpop.eup %4744  ;;  %4770 = vpow2.f32 %v3818_v34  ;;  %v1591_v26 = vadd.f32 1.0, %v4743_v30  ;;  %v6028_v15 = vmul.f32 %v5937_v59, %v7521_v24  ;;  %v3824_v28 = vmul.f32 -1.442695, %v5995_v60  ;;  %v7522_v34 = vld [vmem:[#allocation36_spill] sm:$0xff] }
 0x218   : > { %v4747_v29 = vpop.eup %4746  ;;  %v2050_v2 = vmul.f32 %v4745_v39, %v5845_v47  ;;  %4772 = vrcp.f32 %v1583_v48  ;;  %v3820_v47 = vmul.f32 -1.442695, %v5980_v18  ;;  %v6037_v48 = vadd.f32 %v7523_v37, %v5592_v55  ;;  %v7525_v59 = vld [vmem:[#allocation8_spill] sm:$0xff] }
 0x219   : > { %v4749_v46 = vpop.eup %4748  ;;  %4774 = vrcp.f32 %v1585_v17  ;;  %v6033_v54 = vmul.f32 %v4747_v29, %v7522_v34  ;;  %v6041_v39 = vadd.f32 %v7525_v59, %v5592_v55 }
 0x21a   : > { %v4751_v22 = vpop.eup %4750  ;;  %4239 = vmatmul.mubr.f32.gmra.mxu1 %v2050_v2  ;;  %4776 = vrcp.f32 %v1587_v8  ;;  %v1593_v63 = vadd.f32 1.0, %v4749_v46  ;;  %7524 = vst [vmem:[#allocation26_spill] sm:$0xff] %v6037_v48  ;;  %v6044_v8 = vld [vmem:[%s5061_s27] ss:$0 sm:$0xff]  ;;  %v2155_v2 = vpop.f32.mrf.mxu0  ;;  %v6048_v46 = vstv %s5991_s28  ;;  %v3826_v23 = vmul.f32 -1.442695, %v6037_v48 }
 0x21b   : > { %v4753_v58 = vpop.eup %4752  ;;  %4778 = vrcp.f32 %v1589_v27  ;;  %v1595_v17 = vadd.f32 1.0, %v4751_v22  ;;  %7526 = vst [vmem:[#allocation29_spill] sm:$0xff] %v6041_v39  ;;  %v6067_v24 = vadd.f32 %v6044_v8, %v2155_v2  ;;  %v3828_v34 = vmul.f32 -1.442695, %v6041_v39  ;;  %v7538_v39 = vld [vmem:[#allocation11_spill] sm:$0xff] }
 0x21c   : > { %v4755_v12 = vpop.eup %4754  ;;  %v2052_v3 = vmul.f32 %v4753_v58, %v5861_v44  ;;  %4780 = vrcp.f32 %v1591_v26  ;;  %v7527_v44 = vld [vmem:[#allocation6_spill] sm:$0xff]  ;;  %v6051_v26 = vadd.f32 %v6044_v8, %v2145_v0  ;;  %v6064_v0 = vadd.f32 %v5945_v56, %v6044_v8  ;;  %v6076_v37 = vpop.f32.mrf.mxu0 }
 0x21d   : > { %v4757_v51 = vpop.eup %4756  ;;  %4782 = vpow2.f32 %v3820_v47  ;;  %v3067_v27 = vadd.s32 8, %v7527_v44  ;;  %v3068_v22 = vadd.s32 16, %v7527_v44  ;;  %vm3131_vm2 = vcmp.lt.s32.totalorder %v7527_v44, %v6048_v46  ;;  %7532 = vst [vmem:[#allocation7_spill] sm:$0xff] %v6067_v24 }
 0x21e   : > { %v4759_v30 = vpop.eup %4758  ;;  %4241 = vmatprep.mubr.f32.mxu1 %v2052_v3  ;;  %4784 = vpow2.f32 %v3822_v43  ;;  %7528 = vst [vmem:[#allocation31_spill] sm:$0xff] %v6051_v26  ;;  %v1597_v49 = vadd.f32 1.0, %v4757_v51  ;;  %v6060_v43 = vadd.f32 %v7529_v14, %v5592_v55  ;;  %7531 = vst [vmem:[#allocation36_spill] sm:$0xff] %v6064_v0  ;;  %v7533_v3 = vld [vmem:[#allocation38_spill] sm:$0xff]  ;;  %v3000_v56 = vmul.f32 %v6051_v26, %v6051_v26  ;;  %v2165_v26 = vpop.f32.mrf.mxu0 }
 0x21f   : > { %v4761_v29 = vpop.eup %4760  ;;  %4786 = vpow2.f32 %v3824_v28  ;;  %v6073_v51 = vmul.f32 %v4759_v30, %v5840_v41  ;;  %vm3132_vm3 = vcmp.lt.s32.totalorder %v3067_v27, %v6048_v46  ;;  %vm3133_vm4 = vcmp.lt.s32.totalorder %v3068_v22, %v6048_v46 }
 0x220   : > { %v2054_v47 = vmul.f32 %v4761_v29, %v5879_v42  ;;  %v4763_v58 = vpop.eup %4762  ;;  %7530 = vst [vmem:[#allocation34_spill] sm:$0xff] %v6060_v43  ;;  %v6070_v42 = vmul.f32 %v4755_v12, %v7533_v3  ;;  %4788 = vrcp.f32 %v1593_v63  ;;  %v7534_v63 = vmov 0.0  }
 0x221   : > { %v4765_v28 = vpop.eup %4764  ;;  %4790 = vrcp.f32 %v1595_v17  ;;  %v1599_v41 = vadd.f32 1.0, %v4763_v58  ;;  %v6087_v30 = vsel %vm3131_vm2, 1.0, %v7534_v63  ;;  %v3069_v17 = vadd.s32 24, %v7527_v44  ;;  %v7536_v58 = vld [vmem:[#allocation10_spill] sm:$0xff] }
 0x222   : > { %4242 = vmatmul.mubr.f32.gmra.mxu1 %v2054_v47  ;;  %v4767_v59 = vpop.eup %4766  ;;  %4792 = vrcp.f32 %v1597_v49  ;;  %7535 = vst [vmem:[#allocation8_spill] sm:$0xff] %v6087_v30  ;;  %v3830_v29 = vmul.f32 -1.442695, %v6060_v43  ;;  %v3001_v47 = vmul.f32 %v6064_v0, %v6064_v0  ;;  %v6097_v14 = vadd.f32 %v7536_v58, %v5592_v55 }
 0x223   : > { %4276 = vmatprep.mubr.f32.mxu1 %v5949_v6  ;;  %v4769_v12 = vpop.eup %4768  ;;  %4794 = vpow2.f32 %v3826_v23  ;;  %v3002_v6 = vmul.f32 %v6067_v24, %v6067_v24  ;;  %v6102_v3 = vsel %vm3132_vm3, 1.0, %v7534_v63  ;;  %v6107_v23 = vsel %vm3133_vm4, 1.0, %v7534_v63 }
 0x224   : > { %v4771_v2 = vpop.eup %4770  ;;  %4796 = vpow2.f32 %v3828_v34  ;;  %7537 = vst [vmem:[#allocation6_spill] sm:$0xff] %v6107_v23  ;;  %v1601_v0 = vadd.f32 1.0, %v4767_v59  ;;  %v3387_v34 = vmul.f32 %v6087_v30, %v3000_v56  ;;  %v6113_v58 = vadd.f32 %v6015_v36, %v6044_v8 }
 0x225   : > { %v4773_v49 = vpop.eup %4772  ;;  %v3070_v27 = vadd.s32 32, %v7527_v44  ;;  %v1603_v43 = vadd.f32 1.0, %v4769_v12  ;;  %v1605_v22 = vadd.f32 1.0, %v4771_v2  ;;  %v6119_v48 = vadd.f32 %v7538_v39, %v5592_v55 }
 0x226   : > { %4277 = vmatmul.mubr.f32.vlgmr.msra.gmra.mxu1 %v5953_v7  ;;  %v4775_v24 = vpop.eup %4774  ;;  %vm3134_vm5 = vcmp.lt.s32.totalorder %v3069_v17, %v6048_v46  ;;  %4798 = vpow2.f32 %v3830_v29  ;;  %v3388_v59 = vmul.f32 %v6102_v3, %v3001_v47  ;;  %v3389_v36 = vmul.f32 %v6107_v23, %v3002_v6 }
 0x227   : > { %4279 = vmatprep.mubr.f32.mxu1 %v5957_v20  ;;  %v4777_v35 = vpop.eup %4776  ;;  %v6125_v56 = vadd.f32 %v6044_v8, %v2165_v26  ;;  %v6128_v20 = vmul.f32 %v4765_v28, %v5855_v38  ;;  %v6131_v12 = vmul.f32 %v4773_v49, %v5869_v50  ;;  %4800 = vrcp.f32 %v1599_v41  ;;  %v4159_v26 = vpop.f32.mrf.mxu1 }
 0x228   : > { %v4779_v7 = vpop.eup %4778  ;;  %v3832_v39 = vmul.f32 -1.442695, %v6097_v14  ;;  %4802 = vrcp.f32 %v1601_v0  ;;  %v3518_v29 = vadd.f32 %v3388_v59, %v3387_v34  ;;  %v3003_v47 = vmul.f32 %v6113_v58, %v6113_v58  ;;  %v7542_v59 = vld [vmem:[#allocation42_spill] sm:$0xff] }
 0x229   : > { %v4781_v30 = vpop.eup %4780  ;;  %vm3135_vm6 = vcmp.lt.s32.totalorder %v3070_v27, %v6048_v46  ;;  %4804 = vrcp.f32 %v1603_v43  ;;  %v3834_v50 = vmul.f32 -1.442695, %v6119_v48  ;;  %v3073_v28 = vadd.s32 56, %v7527_v44  ;;  %v7540_v43 = vld [vmem:[#allocation12_spill] sm:$0xff] }
 0x22a   : > { %4280 = vmatmul.mubr.f32.gmra.mxu1 %v5962_v9  ;;  %v4783_v2 = vpop.eup %4782  ;;  %v6144_v9 = vsel %vm3134_vm5, 1.0, %v7534_v63  ;;  %4806 = vrcp.f32 %v1605_v22  ;;  %v3519_v41 = vadd.f32 %v3518_v29, %v3389_v36  ;;  %v3071_v6 = vadd.s32 40, %v7527_v44 }
 0x22b   : > { %4282 = vmatprep.mubr.f32.mxu1 %v5968_v62  ;;  %v4785_v38 = vpop.eup %4784  ;;  %7539 = vst [vmem:[#allocation9_spill] sm:$0xff] %v6144_v9  ;;  %v3004_v62 = vmul.f32 %v6125_v56, %v6125_v56  ;;  %v1607_v49 = vadd.f32 1.0, %v4783_v2  ;;  %4808 = vpow2.f32 %v3832_v39  ;;  %v6151_v34 = vadd.f32 %v7540_v43, %v5592_v55 }
 0x22c   : > { %v4787_v0 = vpop.eup %4786  ;;  %v6156_v17 = vsel %vm3135_vm6, 1.0, %v7534_v63  ;;  %v6160_v36 = vmul.f32 %v4775_v24, %v7542_v59  ;;  %v6163_v29 = vmul.f32 %v4777_v35, %v5883_v32  ;;  %v3390_v39 = vmul.f32 %v6144_v9, %v3003_v47 }
 0x22d   : > { %7541 = vst [vmem:[#allocation38_spill] sm:$0xff] %v6156_v17  ;;  %v4789_v22 = vpop.eup %4788  ;;  %v6168_v2 = vadd.f32 %v6076_v37, %v6044_v8  ;;  %v1609_v43 = vadd.f32 1.0, %v4785_v38  ;;  %4810 = vpow2.f32 %v3834_v50  ;;  %vm3138_vm7 = vcmp.lt.s32.totalorder %v3073_v28, %v6048_v46 }
 0x22e   : > { %4283 = vmatmul.mubr.f32.gmra.mxu1 %v5972_v5  ;;  %v4791_v27 = vpop.eup %4790  ;;  %v2175_v5 = vpop.f32.mrf.mxu1  ;;  %v3072_v24 = vadd.s32 48, %v7527_v44  ;;  %v1611_v23 = vadd.f32 1.0, %v4787_v0  ;;  %vm3136_vm8 = vcmp.lt.s32.totalorder %v3071_v6, %v6048_v46  ;;  %v3391_v32 = vmul.f32 %v6156_v17, %v3004_v62 }
 0x22f   : > { %4285 = vmatprep.mubr.f32.mxu1 %v5976_v40  ;;  %v4793_v59 = vpop.eup %4792  ;;  %v3520_v35 = vadd.f32 %v3519_v41, %v3390_v39  ;;  %v6176_v37 = vmul.f32 %v4779_v7, %v5889_v25  ;;  %v7543_v40 = vld [vmem:[#allocation43_spill] sm:$0xff]  ;;  %4812 = vrcp.f32 %v1607_v49  ;;  %v3836_v38 = vmul.f32 -1.442695, %v6151_v34 }
 0x230   : > { %v4795_v47 = vpop.eup %4794  ;;  %v6179_v9 = vmul.f32 %v4781_v30, %v7543_v40  ;;  %v6184_v0 = vmul.f32 %v4789_v22, %v5902_v31  ;;  %v6189_v41 = vsel %vm3138_vm7, 1.0, %v7534_v63  ;;  %v6192_v25 = vadd.f32 %v6044_v8, %v2175_v5  ;;  %v4162_v28 = vpop.f32.mrf.mxu1  ;;  %v7548_v5 = vld [vmem:[#allocation14_spill] sm:$0xff] }
 0x231   : > { %v4797_v50 = vpop.eup %4796  ;;  %7544 = vst [vmem:[#allocation10_spill] sm:$0xff] %v6189_v41  ;;  %v3005_v30 = vmul.f32 %v6168_v2, %v6168_v2  ;;  %4814 = vrcp.f32 %v1609_v43  ;;  %v6204_v31 = vsel %vm3136_vm8, 1.0, %v7534_v63  ;;  %v3075_v62 = vadd.s32 72, %v7527_v44 }
 0x232   : > { %4286 = vmatmul.mubr.f32.gmra.mxu1 %v5984_v19  ;;  %7545 = vst [vmem:[#allocation11_spill] sm:$0xff] %v6192_v25  ;;  %v7546_v19 = vld [vmem:[#allocation13_spill] sm:$0xff]  ;;  %7547 = vst [vmem:[#allocation12_spill] sm:$0xff] %v6204_v31  ;;  %4816 = vrcp.f32 %v1611_v23  ;;  %v1613_v49 = vadd.f32 1.0, %v4795_v47  ;;  %vm3137_vm9 = vcmp.lt.s32.totalorder %v3072_v24, %v6048_v46  ;;  %v3521_v22 = vadd.f32 %v3520_v35, %v3391_v32 }
 0x233   : > { %4288 = vmatprep.mubr.f32.mxu1 %v6000_v52  ;;  %v6199_v7 = vadd.f32 %v7546_v19, %v5592_v55  ;;  %v4799_v39 = vpop.eup %4798  ;;  %v6209_v52 = vmul.f32 %v4791_v27, %v5909_v11  ;;  %v1615_v43 = vadd.f32 1.0, %v4797_v50  ;;  %4818 = vpow2.f32 %v3836_v38  ;;  %v7551_v38 = vld [vmem:[#allocation15_spill] sm:$0xff] }
 0x234   : > { %v6213_v40 = vadd.f32 %v7548_v5, %v5592_v55  ;;  %v4801_v6 = vpop.eup %4800  ;;  %v6217_v19 = vmul.f32 %v4793_v59, %v5915_v1  ;;  %v6220_v23 = vadd.f32 %v4159_v26, %v6044_v8  ;;  %v3006_v32 = vmul.f32 %v6192_v25, %v6192_v25  ;;  %v2185_v1 = vpop.f32.mrf.mxu1 }
 0x235   : > { %v3392_v11 = vmul.f32 %v6204_v31, %v3005_v30  ;;  %v4803_v27 = vpop.eup %4802  ;;  %v3838_v35 = vmul.f32 -1.442695, %v6199_v7  ;;  %vm3140_vm10 = vcmp.lt.s32.totalorder %v3075_v62, %v6048_v46  ;;  %v3074_v26 = vadd.s32 64, %v7527_v44 }
 0x236   : > { %4289 = vmatmul.mubr.f32.gmra.mxu1 %v6004_v61  ;;  %7549 = vst [vmem:[#allocation42_spill] sm:$0xff] %v6220_v23  ;;  %v6230_v61 = vsel %vm3137_vm9, 1.0, %v7534_v63  ;;  %v4805_v59 = vpop.eup %4804  ;;  %4820 = vrcp.f32 %v1613_v49  ;;  %v1617_v47 = vadd.f32 1.0, %v4799_v39  ;;  %v6236_v50 = vadd.f32 %v7551_v38, %v5592_v55 }
 0x237   : > { %4291 = vmatprep.mubr.f32.mxu1 %v6008_v33  ;;  %7550 = vst [vmem:[#allocation43_spill] sm:$0xff] %v6230_v61  ;;  %v3522_v33 = vadd.f32 %v3521_v22, %v3392_v11  ;;  %v4807_v30 = vpop.eup %4806  ;;  %v6239_v5 = vmul.f32 %v4801_v6, %v5924_v16  ;;  %4822 = vrcp.f32 %v1615_v43  ;;  %v3840_v24 = vmul.f32 -1.442695, %v6213_v40 }
 0x238   : > { %v3077_v31 = vadd.s32 88, %v7527_v44  ;;  %v4809_v25 = vpop.eup %4808  ;;  %v6245_v49 = vmul.f32 %v4803_v27, %v5928_v21  ;;  %v3007_v39 = vmul.f32 %v6220_v23, %v6220_v23  ;;  %v3393_v22 = vmul.f32 %v6230_v61, %v3006_v32  ;;  %v4165_v21 = vpop.f32.mrf.mxu1 }
 0x239   : > { %v6251_v11 = vadd.f32 %v6044_v8, %v2185_v1  ;;  %v6255_v16 = vmul.f32 %v4805_v59, %v5934_v45  ;;  %4824 = vpow2.f32 %v3838_v35  ;;  %v3076_v43 = vadd.s32 80, %v7527_v44  ;;  %v7554_v35 = vld [vmem:[#allocation16_spill] sm:$0xff] }
 0x23a   : > { %4292 = vmatmul.mubr.f32.gmra.mxu1 %v6012_v4  ;;  %v6260_v4 = vsel %vm3140_vm10, 1.0, %v7534_v63  ;;  %v4811_v6 = vpop.eup %4810  ;;  %4826 = vrcp.f32 %v1617_v47  ;;  %v3842_v32 = vmul.f32 -1.442695, %v6236_v50  ;;  %v3523_v27 = vadd.f32 %v3522_v33, %v3393_v22  ;;  %v2195_v33 = vpop.f32.mrf.mxu1 }
 0x23b   : > { %7552 = vst [vmem:[#allocation13_spill] sm:$0xff] %v6251_v11  ;;  %4294 = vmatprep.mubr.f32.mxu1 %v6019_v10  ;;  %7553 = vst [vmem:[#allocation14_spill] sm:$0xff] %v6260_v4  ;;  %vm3139_vm11 = vcmp.lt.s32.totalorder %v3074_v26, %v6048_v46  ;;  %v6266_v10 = vmul.f32 %v4807_v30, %v5942_v57  ;;  %v1619_v45 = vadd.f32 1.0, %v4809_v25  ;;  %4828 = vpow2.f32 %v3840_v24  ;;  %v7556_v26 = vld [vmem:[#allocation17_spill] sm:$0xff] }
 0x23c   : > { %vm3142_vm12 = vcmp.lt.s32.totalorder %v3077_v31, %v6048_v46  ;;  %v4813_v62 = vpop.eup %4812  ;;  %v6272_v1 = vadd.f32 %v7554_v35, %v5592_v55  ;;  %v3394_v59 = vmul.f32 %v6189_v41, %v3007_v39  ;;  %v6276_v47 = vadd.f32 %v4162_v28, %v6044_v8  ;;  %v6299_v35 = vpop.f32.mrf.mxu1 }
 0x23d   : > { %v3008_v57 = vmul.f32 %v6251_v11, %v6251_v11  ;;  %v1621_v25 = vadd.f32 1.0, %v4811_v6  ;;  %v6283_v38 = vadd.f32 %v7556_v26, %v5592_v55  ;;  %vm3141_vm13 = vcmp.lt.s32.totalorder %v3076_v43, %v6048_v46 }
 0x23e   : > { %4295 = vmatmul.mubr.f32.gmra.mxu1 %v6023_v13  ;;  %7555 = vst [vmem:[#allocation15_spill] sm:$0xff] %v6276_v47  ;;  %v6286_v13 = vsel %vm3139_vm11, 1.0, %v7534_v63  ;;  %v4815_v30 = vpop.eup %4814  ;;  %4830 = vpow2.f32 %v3842_v32  ;;  %v3524_v28 = vadd.f32 %v3523_v27, %v3394_v59  ;;  %v3079_v24 = vadd.s32 104, %v7527_v44 }
 0x23f   : > { %4297 = vmatprep.mubr.f32.mxu1 %v6028_v15  ;;  %7557 = vst [vmem:[#allocation16_spill] sm:$0xff] %v6286_v13  ;;  %v3078_v39 = vadd.s32 96, %v7527_v44  ;;  %v4817_v22 = vpop.eup %4816  ;;  %v6292_v15 = vmul.f32 %v4813_v62, %v5980_v18  ;;  %4832 = vrcp.f32 %v1619_v45  ;;  %v6297_v6 = vsel %vm3142_vm12, 1.0, %v7534_v63 }
 0x240   : > { %7558 = vst [vmem:[#allocation17_spill] sm:$0xff] %v6297_v6  ;;  %v3081_v26 = vadd.s32 120, %v7527_v44  ;;  %v4819_v32 = vpop.eup %4818  ;;  %v3844_v27 = vmul.f32 -1.442695, %v6272_v1  ;;  %v3009_v59 = vmul.f32 %v6276_v47, %v6276_v47  ;;  %v3395_v18 = vmul.f32 %v6286_v13, %v3008_v57  ;;  %v2205_v13 = vpop.f32.mrf.mxu1 }
 0x241   : > { %v6308_v45 = vadd.f32 %v6044_v8, %v2195_v33  ;;  %v6312_v31 = vmul.f32 %v4815_v30, %v5988_v53  ;;  %4834 = vrcp.f32 %v1621_v25  ;;  %v3846_v62 = vmul.f32 -1.442695, %v6283_v38  ;;  %v7561_v25 = vld [vmem:[#allocation18_spill] sm:$0xff] }
 0x242   : > { %4298 = vmatmul.mubr.f32.gmra.mxu1 %v6033_v54  ;;  %v6318_v54 = vsel %vm3141_vm13, 1.0, %v7534_v63  ;;  %v3525_v41 = vadd.f32 %v3524_v28, %v3395_v18  ;;  %vm3144_vm14 = vcmp.lt.s32.totalorder %v3079_v24, %v6048_v46  ;;  %vm3143_vm15 = vcmp.lt.s32.totalorder %v3078_v39, %v6048_v46 }
 0x243   : > { %7559 = vst [vmem:[#allocation45_spill] sm:$0xff] %v6308_v45  ;;  %4300 = vmatprep.mubr.f32.mxu1 %v6070_v42  ;;  %7560 = vst [vmem:[#allocation46_spill] sm:$0xff] %v6318_v54  ;;  %v3080_v57 = vadd.s32 112, %v7527_v44  ;;  %v4821_v33 = vpop.eup %4820  ;;  %v6324_v42 = vmul.f32 %v4817_v22, %v5995_v60  ;;  %v1623_v53 = vadd.f32 1.0, %v4819_v32  ;;  %v6328_v30 = vadd.f32 %v7561_v25, %v5592_v55  ;;  %v6349_v32 = vpop.f32.mrf.mxu1 }
 0x244   : > { %vm3146_vm0 = vcmp.lt.s32.totalorder %v3081_v26, %v6048_v46  ;;  %v4823_v43 = vpop.eup %4822  ;;  %4836 = vpow2.f32 %v3844_v27  ;;  %v3396_v28 = vmul.f32 %v6260_v4, %v3009_v59  ;;  %v6334_v18 = vadd.f32 %v4165_v21, %v6044_v8  ;;  %v7565_v59 = vld [vmem:[#allocation26_spill] sm:$0xff]  ;;  %v7567_v4 = vld [vmem:[#allocation29_spill] sm:$0xff] }
 0x245   : > { %v3010_v60 = vmul.f32 %v6308_v45, %v6308_v45  ;;  %4838 = vpow2.f32 %v3846_v62  ;;  %v6342_v22 = vsel %vm3144_vm14, 1.0, %v7534_v63  ;;  %v3083_v21 = vadd.s32 136, %v7527_v44  ;;  %v2215_v47 = vpop.f32.mrf.mxu1 }
 0x246   : > { %4301 = vmatmul.mubr.f32.gmra.mxu1 %v6073_v51  ;;  %7562 = vst [vmem:[#allocation18_spill] sm:$0xff] %v6334_v18  ;;  %7563 = vst [vmem:[#allocation47_spill] sm:$0xff] %v6342_v22  ;;  %v6347_v51 = vsel %vm3143_vm15, 1.0, %v7534_v63  ;;  %v4825_v27 = vpop.eup %4824  ;;  %v6353_v25 = vmul.f32 %v4821_v33, %v7565_v59  ;;  %v6356_v62 = vadd.f32 %v6044_v8, %v2205_v13  ;;  %v3848_v39 = vmul.f32 -1.442695, %v6328_v30  ;;  %v7569_v13 = vld [vmem:[#allocation19_spill] sm:$0xff] }
 0x247   : > { %4303 = vmatprep.mubr.f32.mxu1 %v6128_v20  ;;  %7564 = vst [vmem:[#allocation48_spill] sm:$0xff] %v6347_v51  ;;  %v3526_v20 = vadd.f32 %v3525_v41, %v3396_v28  ;;  %vm3145_vm1 = vcmp.lt.s32.totalorder %v3080_v57, %v6048_v46  ;;  %v4827_v24 = vpop.eup %4826  ;;  %v6360_v45 = vmul.f32 %v4823_v43, %v7567_v4  ;;  %v6366_v11 = vsel %vm3146_vm0, 1.0, %v7534_v63  ;;  %v7570_v59 = vld [vmem:[#allocation20_spill] sm:$0xff]  ;;  %v6398_v57 = vpop.f32.mrf.mxu1 }
 0x248   : > { %7566 = vst [vmem:[#allocation26_spill] sm:$0xff] %v6356_v62  ;;  %7568 = vst [vmem:[#allocation29_spill] sm:$0xff] %v6366_v11  ;;  %v3082_v33 = vadd.s32 128, %v7527_v44  ;;  %v4829_v41 = vpop.eup %4828  ;;  %4840 = vrcp.f32 %v1623_v53  ;;  %v6372_v28 = vadd.f32 %v7569_v13, %v5592_v55  ;;  %v3011_v4 = vmul.f32 %v6334_v18, %v6334_v18  ;;  %v7572_v53 = vld [vmem:[#allocation34_spill] sm:$0xff] }
 0x249   : > { %v3397_v43 = vmul.f32 %v6318_v54, %v3010_v60  ;;  %v1625_v26 = vadd.f32 1.0, %v4825_v27  ;;  %v6380_v61 = vadd.f32 %v7570_v59, %v5592_v55  ;;  %vm3148_vm2 = vcmp.lt.s32.totalorder %v3083_v21, %v6048_v46  ;;  %v7573_v54 = vld [vmem:[#allocation21_spill] sm:$0xff]  ;;  %v2225_v23 = vpop.f32.mrf.mxu1 }
 0x24a   : > { %4304 = vmatmul.mubr.f32.gmra.mxu1 %v6131_v12  ;;  %v6385_v12 = vsel %vm3145_vm1, 1.0, %v7534_v63  ;;  %v6389_v13 = vmul.f32 %v4827_v24, %v7572_v53  ;;  %v3085_v60 = vadd.s32 152, %v7527_v44  ;;  %v1627_v59 = vadd.f32 1.0, %v4829_v41 }
 0x24b   : > { %4306 = vmatprep.mubr.f32.mxu1 %v6160_v36  ;;  %7571 = vst [vmem:[#allocation19_spill] sm:$0xff] %v6385_v12  ;;  %v3527_v18 = vadd.f32 %v3526_v20, %v3397_v43  ;;  %v3012_v36 = vmul.f32 %v6356_v62, %v6356_v62  ;;  %v4831_v27 = vpop.eup %4830  ;;  %4842 = vpow2.f32 %v3848_v39  ;;  %v6396_v17 = vadd.f32 %v7573_v54, %v5592_v55 }
 0x24c   : > { %vm3147_vm3 = vcmp.lt.s32.totalorder %v3082_v33, %v6048_v46  ;;  %v4833_v24 = vpop.eup %4832  ;;  %v3850_v20 = vmul.f32 -1.442695, %v6372_v28  ;;  %v3398_v43 = vmul.f32 %v6297_v6, %v3011_v4  ;;  %v6406_v53 = vadd.f32 %v6299_v35, %v6044_v8  ;;  %v6443_v33 = vpop.f32.mrf.mxu1 }
 0x24d   : > { %v6409_v39 = vadd.f32 %v6044_v8, %v2215_v47  ;;  %4844 = vrcp.f32 %v1625_v26  ;;  %v3852_v54 = vmul.f32 -1.442695, %v6380_v61  ;;  %v3084_v41 = vadd.s32 144, %v7527_v44  ;;  %v7576_v47 = vld [vmem:[#allocation22_spill] sm:$0xff] }
 0x24e   : > { %4307 = vmatmul.mubr.f32.gmra.mxu1 %v6163_v29  ;;  %v6416_v29 = vsel %vm3148_vm2, 1.0, %v7534_v63  ;;  %v4835_v4 = vpop.eup %4834  ;;  %v1629_v6 = vadd.f32 1.0, %v4831_v27  ;;  %v3399_v35 = vmul.f32 %v6347_v51, %v3012_v36  ;;  %v3528_v62 = vadd.f32 %v3527_v18, %v3398_v43 }
 0x24f   : > { %7574 = vst [vmem:[#allocation20_spill] sm:$0xff] %v6409_v39  ;;  %4309 = vmatprep.mubr.f32.mxu1 %v6176_v37  ;;  %7575 = vst [vmem:[#allocation34_spill] sm:$0xff] %v6416_v29  ;;  %vm3150_vm4 = vcmp.lt.s32.totalorder %v3085_v60, %v6048_v46  ;;  %4846 = vrcp.f32 %v1627_v59  ;;  %v3854_v37 = vmul.f32 -1.442695, %v6396_v17  ;;  %v6424_v26 = vadd.f32 %v7576_v47, %v5592_v55  ;;  %v7583_v47 = vld [vmem:[#allocation24_spill] sm:$0xff] }
 0x250   : > { %v6429_v21 = vsel %vm3147_vm3, 1.0, %v7534_v63  ;;  %v6433_v36 = vmul.f32 %v4833_v24, %v6097_v14  ;;  %4848 = vpow2.f32 %v3850_v20  ;;  %v3013_v18 = vmul.f32 %v6406_v53, %v6406_v53 }
 0x251   : > { %7577 = vst [vmem:[#allocation21_spill] sm:$0xff] %v6429_v21  ;;  %v3014_v27 = vmul.f32 %v6409_v39, %v6409_v39  ;;  %v4837_v59 = vpop.eup %4836  ;;  %v6441_v43 = vmul.f32 %v4835_v4, %v6119_v48  ;;  %4850 = vpow2.f32 %v3852_v54  ;;  %v6448_v14 = vsel %vm3150_vm4, 1.0, %v7534_v63  ;;  %v7581_v54 = vld [vmem:[#allocation23_spill] sm:$0xff]  ;;  %v2235_v39 = vpop.f32.mrf.mxu1 }
 0x252   : > { %4310 = vmatmul.mubr.f32.gmra.mxu1 %v6179_v9  ;;  %7578 = vst [vmem:[#allocation22_spill] sm:$0xff] %v6448_v14  ;;  %vm3149_vm5 = vcmp.lt.s32.totalorder %v3084_v41, %v6048_v46  ;;  %v4839_v9 = vpop.eup %4838  ;;  %4852 = vrcp.f32 %v1629_v6  ;;  %v3529_v24 = vadd.f32 %v3528_v62, %v3399_v35  ;;  %v6456_v48 = vadd.f32 %v6044_v8, %v2225_v23 }
 0x253   : > { %4312 = vmatprep.mubr.f32.mxu1 %v6184_v0  ;;  %v6453_v0 = vadd.f32 %v6349_v32, %v6044_v8  ;;  %4854 = vpow2.f32 %v3854_v37  ;;  %v3856_v20 = vmul.f32 -1.442695, %v6424_v26  ;;  %v6461_v60 = vadd.f32 %v7581_v54, %v5592_v55 }
 0x254   : > { %7580 = vst [vmem:[#allocation50_spill] sm:$0xff] %v6456_v48  ;;  %v3087_v4 = vadd.s32 168, %v7527_v44  ;;  %v3400_v6 = vmul.f32 %v6342_v22, %v3013_v18  ;;  %v3401_v62 = vmul.f32 %v6385_v12, %v3014_v27  ;;  %v6468_v32 = vsel %vm3149_vm5, 1.0, %v7534_v63 }
 0x255   : > { %7579 = vst [vmem:[#allocation49_spill] sm:$0xff] %v6453_v0  ;;  %7582 = vst [vmem:[#allocation23_spill] sm:$0xff] %v6468_v32  ;;  %v3086_v23 = vadd.s32 160, %v7527_v44  ;;  %v4841_v41 = vpop.eup %4840  ;;  %v1631_v35 = vadd.f32 1.0, %v4837_v59  ;;  %v1633_v37 = vadd.f32 1.0, %v4839_v9  ;;  %v6474_v54 = vadd.f32 %v7583_v47, %v5592_v55  ;;  %v7584_v59 = vld [vmem:[#allocation25_spill] sm:$0xff]  ;;  %v6487_v47 = vpop.f32.mrf.mxu1 }
 0x256   : > { %4313 = vmatmul.mubr.f32.gmra.mxu1 %v6209_v52  ;;  %v3089_v52 = vadd.s32 184, %v7527_v44  ;;  %v3015_v18 = vmul.f32 %v6453_v0, %v6453_v0  ;;  %v3530_v27 = vadd.f32 %v3529_v24, %v3400_v6  ;;  %v3016_v12 = vmul.f32 %v6456_v48, %v6456_v48 }
 0x257   : > { %4315 = vmatprep.mubr.f32.mxu1 %v6217_v19  ;;  %v3088_v22 = vadd.s32 176, %v7527_v44  ;;  %4856 = vpow2.f32 %v3856_v20  ;;  %v3858_v19 = vmul.f32 -1.442695, %v6461_v60  ;;  %v6485_v9 = vadd.f32 %v7584_v59, %v5592_v55 }
 0x258   : > { %vm3152_vm6 = vcmp.lt.s32.totalorder %v3087_v4, %v6048_v46  ;;  %v4843_v51 = vpop.eup %4842  ;;  %v6492_v24 = vmul.f32 %v4841_v41, %v6151_v34  ;;  %v3531_v6 = vadd.f32 %v3530_v27, %v3401_v62  ;;  %v6496_v20 = vadd.f32 %v6398_v57, %v6044_v8 }
 0x259   : > { %v6499_v48 = vadd.f32 %v6044_v8, %v2235_v39  ;;  %4858 = vrcp.f32 %v1631_v35  ;;  %v3860_v59 = vmul.f32 -1.442695, %v6474_v54  ;;  %vm3151_vm7 = vcmp.lt.s32.totalorder %v3086_v23, %v6048_v46  ;;  %v2245_v35 = vpop.f32.mrf.mxu1 }
 0x25a   : > { %4316 = vmatmul.mubr.f32.gmra.mxu1 %v6239_v5  ;;  %vm3154_vm8 = vcmp.lt.s32.totalorder %v3089_v52, %v6048_v46  ;;  %v4845_v5 = vpop.eup %4844  ;;  %4860 = vrcp.f32 %v1633_v37  ;;  %v3402_v34 = vmul.f32 %v6366_v11, %v3015_v18  ;;  %v3403_v62 = vmul.f32 %v6429_v21, %v3016_v12  ;;  %v7587_v37 = vld [vmem:[#allocation28_spill] sm:$0xff] }
 0x25b   : > { %7585 = vst [vmem:[#allocation24_spill] sm:$0xff] %v6499_v48  ;;  %4318 = vmatprep.mubr.f32.mxu1 %v6245_v49  ;;  %vm3153_vm9 = vcmp.lt.s32.totalorder %v3088_v22, %v6048_v46  ;;  %v1635_v57 = vadd.f32 1.0, %v4843_v51  ;;  %4862 = vpow2.f32 %v3858_v19  ;;  %v3862_v39 = vmul.f32 -1.442695, %v6485_v9  ;;  %v7586_v49 = vld [vmem:[#allocation27_spill] sm:$0xff] }
 0x25c   : > { %v6511_v41 = vadd.f32 %v7586_v49, %v5592_v55  ;;  %v4847_v27 = vpop.eup %4846  ;;  %v6516_v0 = vadd.f32 %v7587_v37, %v5592_v55  ;;  %v3017_v12 = vmul.f32 %v6496_v20, %v6496_v20  ;;  %v3532_v18 = vadd.f32 %v3531_v6, %v3402_v34  ;;  %v6536_v6 = vpop.f32.mrf.mxu1 }
 0x25d   : > { %v3018_v51 = vmul.f32 %v6499_v48, %v6499_v48  ;;  %v4849_v19 = vpop.eup %4848  ;;  %v6524_v49 = vmul.f32 %v4845_v5, %v6199_v7  ;;  %4864 = vpow2.f32 %v3860_v59  ;;  %v6534_v37 = vsel %vm3151_vm7, 1.0, %v7534_v63 }
 0x25e   : > { %4319 = vmatmul.mubr.f32.gmra.mxu1 %v6255_v16  ;;  %v6529_v16 = vsel %vm3152_vm6, 1.0, %v7534_v63  ;;  %7589 = vst [vmem:[#allocation27_spill] sm:$0xff] %v6534_v37  ;;  %v4851_v34 = vpop.eup %4850  ;;  %v3533_v48 = vadd.f32 %v3532_v18, %v3403_v62  ;;  %v6543_v7 = vadd.f32 %v6044_v8, %v2245_v35  ;;  %v6548_v4 = vsel %vm3154_vm8, 1.0, %v7534_v63  ;;  %v2255_v22 = vpop.f32.mrf.mxu1 }
 0x25f   : > { %4321 = vmatprep.mubr.f32.mxu1 %v6266_v10  ;;  %7588 = vst [vmem:[#allocation25_spill] sm:$0xff] %v6529_v16  ;;  %v6540_v10 = vadd.f32 %v6443_v33, %v6044_v8  ;;  %v4853_v59 = vpop.eup %4852  ;;  %v6551_v23 = vmul.f32 %v4847_v27, %v6213_v40  ;;  %4866 = vpow2.f32 %v3862_v39  ;;  %v3864_v5 = vmul.f32 -1.442695, %v6511_v41  ;;  %v7593_v27 = vld [vmem:[#allocation30_spill] sm:$0xff] }
 0x260   : > { %7591 = vst [vmem:[#allocation51_spill] sm:$0xff] %v6543_v7  ;;  %v6557_v33 = vsel %vm3153_vm9, 1.0, %v7534_v63  ;;  %v4855_v62 = vpop.eup %4854  ;;  %4868 = vrcp.f32 %v1635_v57  ;;  %v3866_v52 = vmul.f32 -1.442695, %v6516_v0  ;;  %v3404_v35 = vmul.f32 %v6416_v29, %v3017_v12 }
 0x261   : > { %7590 = vst [vmem:[#allocation28_spill] sm:$0xff] %v6540_v10  ;;  %7592 = vst [vmem:[#allocation52_spill] sm:$0xff] %v6557_v33  ;;  %v3405_v18 = vmul.f32 %v6468_v32, %v3018_v51  ;;  %v1637_v40 = vadd.f32 1.0, %v4849_v19  ;;  %v1639_v39 = vadd.f32 1.0, %v4851_v34  ;;  %v6566_v21 = vadd.f32 %v7593_v27, %v5592_v55  ;;  %v7595_v34 = vld [vmem:[#allocation33_spill] sm:$0xff]  ;;  %v6584_v32 = vpop.f32.mrf.mxu1 }
 0x262   : > { %4322 = vmatmul.mubr.f32.gmra.mxu1 %v6292_v15  ;;  %v3091_v11 = vadd.s32 200, %v7527_v44  ;;  %v7594_v15 = vld [vmem:[#allocation32_spill] sm:$0xff]  ;;  %v3019_v12 = vmul.f32 %v6540_v10, %v6540_v10  ;;  %v3534_v29 = vadd.f32 %v3533_v48, %v3404_v35  ;;  %v6578_v51 = vmul.f32 %v4853_v59, %v6236_v50 }
 0x263   : > { %4324 = vmatprep.mubr.f32.mxu1 %v6312_v31  ;;  %v6571_v57 = vadd.f32 %v7594_v15, %v5592_v55  ;;  %v3020_v31 = vmul.f32 %v6543_v7, %v6543_v7  ;;  %v1641_v19 = vadd.f32 1.0, %v4855_v62  ;;  %4870 = vpow2.f32 %v3864_v5  ;;  %v7598_v5 = vld [vmem:[#allocation35_spill] sm:$0xff] }
 0x264   : > { %v6582_v27 = vadd.f32 %v7595_v34, %v5592_v55  ;;  %v4857_v15 = vpop.eup %4856  ;;  %4872 = vpow2.f32 %v3866_v52  ;;  %v3535_v10 = vadd.f32 %v3534_v29, %v3405_v18  ;;  %v6589_v48 = vadd.f32 %v6487_v47, %v6044_v8 }
 0x265   : > { %v6592_v50 = vadd.f32 %v6044_v8, %v2255_v22  ;;  %4874 = vrcp.f32 %v1637_v40  ;;  %v3868_v59 = vmul.f32 -1.442695, %v6566_v21  ;;  %v6598_v62 = vadd.f32 %v7598_v5, %v5592_v55  ;;  %v2265_v40 = vpop.f32.mrf.mxu1 }
 0x266   : > { %4325 = vmatmul.mubr.f32.gmra.mxu1 %v6324_v42  ;;  %7596 = vst [vmem:[#allocation30_spill] sm:$0xff] %v6589_v48  ;;  %vm3156_vm10 = vcmp.lt.s32.totalorder %v3091_v11, %v6048_v46  ;;  %v4859_v42 = vpop.eup %4858  ;;  %4876 = vrcp.f32 %v1639_v39  ;;  %v3870_v29 = vmul.f32 -1.442695, %v6571_v57  ;;  %v3406_v47 = vmul.f32 %v6448_v14, %v3019_v12  ;;  %v7599_v39 = vld [vmem:[#allocation37_spill] sm:$0xff] }
 0x267   : > { %7597 = vst [vmem:[#allocation32_spill] sm:$0xff] %v6592_v50  ;;  %4327 = vmatprep.mubr.f32.mxu1 %v6353_v25  ;;  %v3407_v52 = vmul.f32 %v6534_v37, %v3020_v31  ;;  %v6604_v35 = vpop.eup %4860  ;;  %4878 = vrcp.f32 %v1641_v19  ;;  %v1643_v25 = vadd.f32 1.0, %v4857_v15  ;;  %v3872_v18 = vmul.f32 -1.442695, %v6582_v27  ;;  %v7600_v37 = vld [vmem:[#allocation39_spill] sm:$0xff]  ;;  %v6628_v14 = vpop.f32.mrf.mxu1 }
 0x268   : > { %v3090_v22 = vadd.s32 192, %v7527_v44  ;;  %v4863_v34 = vpop.eup %4862  ;;  %v6611_v5 = vadd.f32 %v7599_v39, %v5592_v55  ;;  %v3021_v12 = vmul.f32 %v6589_v48, %v6589_v48  ;;  %v3536_v31 = vadd.f32 %v3535_v10, %v3406_v47 }
 0x269   : > { %v3022_v19 = vmul.f32 %v6592_v50, %v6592_v50  ;;  %4880 = vpow2.f32 %v3868_v59  ;;  %v3874_v15 = vmul.f32 -1.442695, %v6598_v62  ;;  %v6626_v39 = vsel %vm3156_vm10, 1.0, %v7534_v63 }
 0x26a   : > { %4328 = vmatmul.mubr.f32.gmra.mxu1 %v6360_v45  ;;  %v6621_v45 = vadd.f32 %v7600_v37, %v5592_v55  ;;  %v4865_v10 = vpop.eup %4864  ;;  %4882 = vpow2.f32 %v3870_v29  ;;  %v3537_v47 = vadd.f32 %v3536_v31, %v3407_v52  ;;  %v6635_v59 = vadd.f32 %v6044_v8, %v2265_v40 }
 0x26b   : > { %4330 = vmatprep.mubr.f32.mxu1 %v6389_v13  ;;  %v6632_v13 = vadd.f32 %v6536_v6, %v6044_v8  ;;  %v1645_v50 = vadd.f32 1.0, %v4863_v34  ;;  %4884 = vpow2.f32 %v3872_v18  ;;  %vm3155_vm11 = vcmp.lt.s32.totalorder %v3090_v22, %v6048_v46  ;;  %v7602_v34 = vld [vmem:[#allocation40_spill] sm:$0xff] }
 0x26c   : > { %7601 = vst [vmem:[#allocation33_spill] sm:$0xff] %v6635_v59  ;;  %v3092_v11 = vadd.s32 208, %v7527_v44  ;;  %v4867_v37 = vpop.eup %4866  ;;  %4886 = vrcp.f32 %v1643_v25  ;;  %v3876_v29 = vmul.f32 -1.442695, %v6611_v5  ;;  %v3408_v52 = vmul.f32 %v6529_v16, %v3021_v12  ;;  %v7603_v25 = vld [vmem:[#allocation41_spill] sm:$0xff]  ;;  %v7604_v22 = vld [vmem:[#allocation44_spill] sm:$0xff] }
 0x26d   : > { %v3409_v6 = vmul.f32 %v6557_v33, %v3022_v19  ;;  %v4869_v40 = vpop.eup %4868  ;;  %v1647_v31 = vadd.f32 1.0, %v4865_v10  ;;  %4888 = vpow2.f32 %v3874_v15  ;;  %v3878_v18 = vmul.f32 -1.442695, %v6621_v45 }
 0x26e   : > { %4331 = vmatmul.mubr.f32.gmra.mxu1 %v6433_v36  ;;  %v6647_v7 = vadd.f32 %v7602_v34, %v5592_v55  ;;  %v2275_v36 = vpop.f32.mrf.mxu1  ;;  %v6651_v48 = vadd.f32 %v7603_v25, %v5592_v55  ;;  %v3023_v12 = vmul.f32 %v6632_v13, %v6632_v13  ;;  %v3538_v19 = vadd.f32 %v3537_v47, %v3408_v52 }
 0x26f   : > { %4333 = vmatprep.mubr.f32.mxu1 %v6441_v43  ;;  %v3024_v43 = vmul.f32 %v6635_v59, %v6635_v59  ;;  %v2015_v15 = vmul.f32 %v4859_v42, %v6272_v1  ;;  %4890 = vrcp.f32 %v1645_v50  ;;  %v1649_v10 = vadd.f32 1.0, %v4867_v37 }
 0x270   : > { %v6661_v34 = vsel %vm3155_vm11, 1.0, %v7534_v63  ;;  %v6663_v33 = vpop.f32.mrf.mxu1  ;;  %v4871_v25 = vpop.eup %4870  ;;  %4892 = vpow2.f32 %v3876_v29  ;;  %v3539_v16 = vadd.f32 %v3538_v19, %v3409_v6  ;;  %v6668_v47 = vadd.f32 %v6584_v32, %v6044_v8 }
 0x271   : > { %v6671_v1 = vadd.f32 %v6044_v8, %v2275_v36  ;;  %v4873_v50 = vpop.eup %4872  ;;  %4894 = vpow2.f32 %v3878_v18  ;;  %v3880_v42 = vmul.f32 -1.442695, %v6647_v7  ;;  %v6677_v37 = vadd.f32 %v7604_v22, %v5592_v55 }
 0x272   : > { %4334 = vmatmul.mubr.f32.gmra.mxu1 %v6492_v24  ;;  %vm3157_vm12 = vcmp.lt.s32.totalorder %v3092_v11, %v6048_v46  ;;  %v4875_v24 = vpop.eup %4874  ;;  %4896 = vrcp.f32 %v1647_v31  ;;  %v3882_v32 = vmul.f32 -1.442695, %v6651_v48  ;;  %v3410_v29 = vmul.f32 %v6548_v4, %v3023_v12  ;;  %v2285_v36 = vpop.f32.mrf.mxu1 }
 0x273   : > { %4336 = vmatprep.mubr.f32.mxu1 %v6524_v49  ;;  %v3411_v52 = vmul.f32 %v6661_v34, %v3024_v43  ;;  %v4877_v6 = vpop.eup %4876  ;;  %4898 = vrcp.f32 %v1649_v10  ;;  %v1651_v49 = vadd.f32 1.0, %v4871_v25  ;;  %v3093_v18 = vadd.s32 216, %v7527_v44 }
 0x274   : > { %v3094_v19 = vadd.s32 224, %v7527_v44  ;;  %v4879_v55 = vpop.eup %4878  ;;  %v1653_v22 = vadd.f32 1.0, %v4873_v50  ;;  %v3025_v31 = vmul.f32 %v6668_v47, %v6668_v47  ;;  %v3540_v59 = vadd.f32 %v3539_v16, %v3410_v29  ;;  %v6699_v25 = vpop.f32.mrf.mxu1 }
 0x275   : > { %v3026_v12 = vmul.f32 %v6671_v1, %v6671_v1  ;;  %v2017_v43 = vmul.f32 %v6604_v35, %v6283_v38  ;;  %4900 = vpow2.f32 %v3880_v42  ;;  %v3884_v10 = vmul.f32 -1.442695, %v6677_v37 }
 0x276   : > { %4337 = vmatmul.mubr.f32.gmra.mxu1 %v6551_v23  ;;  %v6697_v23 = vsel %vm3157_vm12, 1.0, %v7534_v63  ;;  %v4881_v50 = vpop.eup %4880  ;;  %4902 = vpow2.f32 %v3882_v32  ;;  %v3541_v16 = vadd.f32 %v3540_v59, %v3411_v52  ;;  %v6703_v29 = vadd.f32 %v6628_v14, %v6044_v8 }
 0x277   : > { %4339 = vmatprep.mubr.f32.mxu1 %v6578_v51  ;;  %v6706_v51 = vadd.f32 %v6044_v8, %v2285_v36  ;;  %v4883_v38 = vpop.eup %4882  ;;  %v2019_v35 = vmul.f32 %v4869_v40, %v6328_v30  ;;  %4904 = vrcp.f32 %v1651_v49  ;;  %vm3158_vm13 = vcmp.lt.s32.totalorder %v3093_v18, %v6048_v46  ;;  %v2295_v30 = vpop.f32.mrf.mxu1 }
 0x278   : > { %v3095_v11 = vadd.s32 232, %v7527_v44  ;;  %v4885_v42 = vpop.eup %4884  ;;  %4906 = vrcp.f32 %v1653_v22  ;;  %v3412_v59 = vmul.f32 %v6626_v39, %v3025_v31  ;;  %v3413_v32 = vmul.f32 %v6697_v23, %v3026_v12 }
 0x279   : > { %vm3159_vm14 = vcmp.lt.s32.totalorder %v3094_v19, %v6048_v46  ;;  %v4887_v8 = vpop.eup %4886  ;;  %v2021_v14 = vmul.f32 %v4875_v24, %v6372_v28  ;;  %v1655_v52 = vadd.f32 1.0, %v4881_v50  ;;  %4908 = vpow2.f32 %v3884_v10  ;;  %v6728_v12 = vpop.f32.mrf.mxu1  ;;  %v6731_v50 = vld [vmem:[%s5061_s27] ss:$0 sm:$0xff] }
 0x27a   : > { %4340 = vmatmul.mubr.f32.gmra.mxu1 %v2015_v15  ;;  %v3096_v40 = vadd.s32 240, %v7527_v44  ;;  %v4889_v49 = vpop.eup %4888  ;;  %v1657_v15 = vadd.f32 1.0, %v4883_v38  ;;  %v3027_v36 = vmul.f32 %v6703_v29, %v6703_v29  ;;  %v3542_v22 = vadd.f32 %v3541_v16, %v3412_v59 }
 0x27b   : > { %4342 = vmatprep.mubr.f32.mxu1 %v2017_v43  ;;  %v3028_v31 = vmul.f32 %v6706_v51, %v6706_v51  ;;  %v1659_v19 = vadd.f32 1.0, %v4885_v42  ;;  %v6723_v28 = vsel %vm3158_vm13, 1.0, %v7534_v63  ;;  %v6726_v24 = vsel %vm3159_vm14, 1.0, %v7534_v63 }
 0x27c   : > { %7605 = vst [vmem:[#allocation35_spill] sm:$0xff] %v6723_v28  ;;  %7606 = vst [vmem:[#allocation37_spill] sm:$0xff] %v6726_v24  ;;  %v4891_v43 = vpop.eup %4890  ;;  %v3543_v10 = vadd.f32 %v3542_v22, %v3413_v32  ;;  %v6735_v16 = vadd.f32 %v6731_v50, %v6663_v33  ;;  %vm3160_vm15 = vcmp.lt.s32.totalorder %v3095_v11, %v6048_v46  ;;  %4910 = vrcp.f32 %v1655_v52 }
 0x27d   : > { %v6739_v18 = vadd.f32 %v6731_v50, %v2295_v30  ;;  %v4893_v38 = vpop.eup %4892  ;;  %v2023_v42 = vmul.f32 %v4877_v6, %v6380_v61  ;;  %v2025_v59 = vmul.f32 %v4879_v55, %v6396_v17  ;;  %4912 = vrcp.f32 %v1657_v15  ;;  %v2305_v61 = vpop.f32.mrf.mxu1 }
 0x27e   : > { %4343 = vmatmul.mubr.f32.gmra.mxu1 %v2019_v35  ;;  %v1661_v35 = vadd.f32 1.0, %v4889_v49  ;;  %v4895_v32 = vpop.eup %4894  ;;  %v3414_v22 = vmul.f32 %v6723_v28, %v3027_v36  ;;  %v3415_v33 = vmul.f32 %v6726_v24, %v3028_v31  ;;  %vm3161_vm0 = vcmp.lt.s32.totalorder %v3096_v40, %v6048_v46 }
 0x27f   : > { %7607 = vst [vmem:[#allocation39_spill] sm:$0xff] %v6739_v18  ;;  %4345 = vmatprep.mubr.f32.mxu1 %v2021_v14  ;;  %v4897_v11 = vpop.eup %4896  ;;  %4914 = vrcp.f32 %v1659_v19  ;;  %v6747_v30 = vsel %vm3160_vm15, 1.0, %v7534_v63  ;;  %v3097_v14 = vadd.s32 248, %v7527_v44  ;;  %v3098_v17 = vadd.s32 256, %v7527_v44 }
 0x280   : > { %v4899_v6 = vpop.eup %4898  ;;  %v1663_v55 = vadd.f32 1.0, %v4893_v38  ;;  %v3029_v52 = vmul.f32 %v6735_v16, %v6735_v16  ;;  %v3544_v49 = vadd.f32 %v3543_v10, %v3414_v22  ;;  %v3030_v15 = vmul.f32 %v6739_v18, %v6739_v18 }
 0x281   : > { %v2027_v36 = vmul.f32 %v4887_v8, %v6424_v26  ;;  %4916 = vrcp.f32 %v1661_v35  ;;  %v1665_v31 = vadd.f32 1.0, %v4895_v32  ;;  %v6759_v19 = vsel %vm3161_vm0, 1.0, %v7534_v63 }
 0x282   : > { %4346 = vmatmul.mubr.f32.gmra.mxu1 %v2023_v42  ;;  %v6761_v42 = vpop.f32.mrf.mxu1  ;;  %v4901_v38 = vpop.eup %4900  ;;  %v2029_v24 = vmul.f32 %v4891_v43, %v6461_v60  ;;  %v3545_v28 = vadd.f32 %v3544_v49, %v3415_v33  ;;  %v6766_v10 = vadd.f32 %v6731_v50, %v6699_v25  ;;  %vm3162_vm1 = vcmp.lt.s32.totalorder %v3097_v14, %v6048_v46 }
 0x283   : > { %4348 = vmatprep.mubr.f32.mxu1 %v2025_v59  ;;  %v6769_v59 = vadd.f32 %v6731_v50, %v2305_v61  ;;  %v4903_v26 = vpop.eup %4902  ;;  %v3099_v8 = vadd.s32 264, %v7527_v44  ;;  %vm3163_vm2 = vcmp.lt.s32.totalorder %v3098_v17, %v6048_v46  ;;  %v2031_v35 = vmul.f32 %v4897_v11, %v6474_v54 }
 0x284   : > { %v4905_v40 = vpop.eup %4904  ;;  %4918 = vrcp.f32 %v1663_v55  ;;  %v3416_v60 = vmul.f32 %v6747_v30, %v3029_v52  ;;  %v3417_v25 = vmul.f32 %v6759_v19, %v3030_v15  ;;  %v2033_v32 = vmul.f32 %v4899_v6, %v6485_v9  ;;  %v2315_v33 = vpop.f32.mrf.mxu1 }
 0x285   : > { %v4907_v43 = vpop.eup %4906  ;;  %4920 = vrcp.f32 %v1665_v31  ;;  %v1667_v22 = vadd.f32 1.0, %v4901_v38  ;;  %v3100_v61 = vadd.s32 272, %v7527_v44  ;;  %v1669_v18 = vadd.f32 1.0, %v4903_v26 }
 0x286   : > { %4349 = vmatmul.mubr.f32.gmra.mxu1 %v2027_v36  ;;  %v4909_v49 = vpop.eup %4908  ;;  %v3031_v36 = vmul.f32 %v6766_v10, %v6766_v10  ;;  %v3546_v54 = vadd.f32 %v3545_v28, %v3416_v60  ;;  %v3032_v11 = vmul.f32 %v6769_v59, %v6769_v59  ;;  %v6791_v9 = vsel %vm3163_vm2, 1.0, %v7534_v63  ;;  %v4204_v6 = vpop.f32.mrf.mxu1 }
 0x287   : > { %4351 = vmatprep.mubr.f32.mxu1 %v2029_v24  ;;  %v6786_v24 = vsel %vm3162_vm1, 1.0, %v7534_v63  ;;  %v6795_v52 = vadd.f32 %v6731_v50, %v6728_v12  ;;  %vm3164_vm3 = vcmp.lt.s32.totalorder %v3099_v8, %v6048_v46  ;;  %v6799_v28 = vadd.f32 %v6731_v50, %v2315_v33 }
 0x288   : > { %v3547_v55 = vadd.f32 %v3546_v54, %v3417_v25  ;;  %v2035_v14 = vmul.f32 %v4905_v40, %v6511_v41  ;;  %4922 = vrcp.f32 %v1667_v22  ;;  %v1671_v15 = vadd.f32 1.0, %v4909_v49  ;;  %v2325_v60 = vpop.f32.mrf.mxu1 }
 0x289   : > { %vm3165_vm4 = vcmp.lt.s32.totalorder %v3100_v61, %v6048_v46  ;;  %v4911_v17 = vpop.eup %4910  ;;  %v2037_v31 = vmul.f32 %v4907_v43, %v6516_v0  ;;  %4924 = vrcp.f32 %v1669_v18  ;;  %v3418_v38 = vmul.f32 %v6786_v24, %v3031_v36 }
 0x28a   : > { %4352 = vmatmul.mubr.f32.gmra.mxu1 %v2031_v35  ;;  %v3419_v12 = vmul.f32 %v6791_v9, %v3032_v11  ;;  %v4913_v26 = vpop.eup %4912  ;;  %v3101_v35 = vadd.s32 280, %v7527_v44  ;;  %v3033_v41 = vmul.f32 %v6795_v52, %v6795_v52  ;;  %v3102_v0 = vadd.s32 288, %v7527_v44  ;;  %v4207_v33 = vpop.f32.mrf.mxu1 }
 0x28b   : > { %4354 = vmatprep.mubr.f32.mxu1 %v2033_v32  ;;  %v3548_v40 = vadd.f32 %v3547_v55, %v3418_v38  ;;  %v3034_v32 = vmul.f32 %v6799_v28, %v6799_v28  ;;  %v2039_v18 = vmul.f32 %v4911_v17, %v6566_v21  ;;  %4926 = vrcp.f32 %v1671_v15 }
 0x28c   : > { %v4915_v25 = vpop.eup %4914  ;;  %v6816_v43 = vsel %vm3164_vm3, 1.0, %v7534_v63  ;;  %v6821_v22 = vsel %vm3165_vm4, 1.0, %v7534_v63  ;;  %v2041_v36 = vmul.f32 %v4913_v26, %v6571_v57  ;;  %v6826_v11 = vadd.f32 %v6731_v50, %v6761_v42  ;;  %v2335_v15 = vpop.f32.mrf.mxu1 }
 0x28d   : > { %v3549_v54 = vadd.f32 %v3548_v40, %v3419_v12  ;;  %v6829_v21 = vadd.f32 %v6731_v50, %v2325_v60  ;;  %v3420_v8 = vmul.f32 %v6816_v43, %v3033_v41  ;;  %vm3166_vm5 = vcmp.lt.s32.totalorder %v3101_v35, %v6048_v46 }
 0x28e   : > { %4355 = vmatmul.mubr.f32.gmra.mxu1 %v2035_v14  ;;  %v4917_v49 = vpop.eup %4916  ;;  %v3421_v61 = vmul.f32 %v6821_v22, %v3034_v32  ;;  %vm3167_vm6 = vcmp.lt.s32.totalorder %v3102_v0, %v6048_v46  ;;  %v2043_v57 = vmul.f32 %v4915_v25, %v6582_v27  ;;  %v3103_v42 = vadd.s32 296, %v7527_v44 }
 0x28f   : > { %4357 = vmatprep.mubr.f32.mxu1 %v2037_v31  ;;  %v2045_v14 = vmul.f32 %v4917_v49, %v6598_v62  ;;  %v3035_v31 = vmul.f32 %v6826_v11, %v6826_v11  ;;  %v3550_v38 = vadd.f32 %v3549_v54, %v3420_v8  ;;  %v3036_v12 = vmul.f32 %v6829_v21, %v6829_v21  ;;  %v4210_v62 = vpop.f32.mrf.mxu1 }
 0x290   : > { %v3104_v26 = vadd.s32 304, %v7527_v44  ;;  %v6844_v35 = vsel %vm3166_vm5, 1.0, %v7534_v63  ;;  %v6847_v27 = vsel %vm3167_vm6, 1.0, %v7534_v63  ;;  %v6850_v25 = vadd.f32 %v6731_v50, %v4204_v6 }
 0x291   : > { %v4919_v55 = vpop.eup %4918  ;;  %v3551_v60 = vadd.f32 %v3550_v38, %v3421_v61  ;;  %v6853_v41 = vadd.f32 %v6731_v50, %v2335_v15  ;;  %vm3168_vm7 = vcmp.lt.s32.totalorder %v3103_v42, %v6048_v46  ;;  %v3423_v49 = vmul.f32 %v6847_v27, %v3036_v12  ;;  %v2345_v54 = vpop.f32.mrf.mxu1 }
 0x292   : > { %4358 = vmatmul.mubr.f32.gmra.mxu1 %v2039_v18  ;;  %v4921_v17 = vpop.eup %4920  ;;  %v2047_v40 = vmul.f32 %v4919_v55, %v6611_v5  ;;  %v3422_v18 = vmul.f32 %v6844_v35, %v3035_v31  ;;  %vm3169_vm8 = vcmp.lt.s32.totalorder %v3104_v26, %v6048_v46  ;;  %v3105_v6 = vadd.s32 312, %v7527_v44 }
 0x293   : > { %4360 = vmatprep.mubr.f32.mxu1 %v2041_v36  ;;  %v2049_v0 = vmul.f32 %v4921_v17, %v6621_v45  ;;  %v3037_v8 = vmul.f32 %v6850_v25, %v6850_v25  ;;  %v3038_v61 = vmul.f32 %v6853_v41, %v6853_v41  ;;  %v3106_v45 = vadd.s32 320, %v7527_v44  ;;  %v4213_v15 = vpop.f32.mrf.mxu1 }
 0x294   : > { %v3552_v5 = vadd.f32 %v3551_v60, %v3422_v18  ;;  %v6878_v12 = vadd.f32 %v6731_v50, %v4207_v33  ;;  %v6881_v26 = vadd.f32 %v6731_v50, %v2345_v54  ;;  %vm3170_vm9 = vcmp.lt.s32.totalorder %v3105_v6, %v6048_v46 }
 0x295   : > { %v4923_v32 = vpop.eup %4922  ;;  %vm3171_vm10 = vcmp.lt.s32.totalorder %v3106_v45, %v6048_v46  ;;  %v3108_v18 = vadd.s32 336, %v7527_v44  ;;  %v6901_v54 = vadd.f32 %v6731_v50, %v4210_v62  ;;  %v3109_v45 = vadd.s32 344, %v7527_v44 }
 0x296   : > { %4361 = vmatmul.mubr.f32.gmra.mxu1 %v2043_v57  ;;  %v4925_v36 = vpop.eup %4924  ;;  %v2051_v55 = vmul.f32 %v4923_v32, %v6647_v7  ;;  %v6871_v57 = vsel %vm3168_vm7, 1.0, %v7534_v63  ;;  %v3553_v38 = vadd.f32 %v3552_v5, %v3423_v49  ;;  %v3039_v33 = vmul.f32 %v6878_v12, %v6878_v12 }
 0x297   : > { %4363 = vmatprep.mubr.f32.mxu1 %v2045_v14  ;;  %v6874_v14 = vsel %vm3169_vm8, 1.0, %v7534_v63  ;;  %v2053_v31 = vmul.f32 %v4925_v36, %v6651_v48  ;;  %v3424_v7 = vmul.f32 %v6871_v57, %v3037_v8  ;;  %v3107_v48 = vadd.s32 328, %v7527_v44 }
 0x298   : > { %v4927_v17 = vpop.eup %4926  ;;  %v3425_v42 = vmul.f32 %v6874_v14, %v3038_v61  ;;  %v6895_v49 = vsel %vm3170_vm9, 1.0, %v7534_v63  ;;  %v6898_v36 = vsel %vm3171_vm10, 1.0, %v7534_v63  ;;  %vm3173_vm12 = vcmp.lt.s32.totalorder %v3108_v18, %v6048_v46 }
 0x299   : > { %v2055_v60 = vmul.f32 %v4927_v17, %v6677_v37  ;;  %v3554_v32 = vadd.f32 %v3553_v38, %v3424_v7  ;;  %v3426_v5 = vmul.f32 %v6895_v49, %v3039_v33  ;;  %vm3172_vm11 = vcmp.lt.s32.totalorder %v3107_v48, %v6048_v46 }
 0x29a   : > { %4364 = vmatmul.mubr.f32.gmra.mxu1 %v2047_v40  ;;  %v2355_v40 = vpop.f32.mrf.mxu1  ;;  %v3041_v17 = vmul.f32 %v6901_v54, %v6901_v54  ;;  %v3110_v38 = vadd.s32 352, %v7527_v44  ;;  %v6917_v7 = vsel %vm3172_vm11, 1.0, %v7534_v63  ;;  %vm3174_vm13 = vcmp.lt.s32.totalorder %v3109_v45, %v6048_v46 }
 0x29b   : > { %4366 = vmatprep.mubr.f32.mxu1 %v2049_v0  ;;  %v3040_v0 = vmul.f32 %v6881_v26, %v6881_v26  ;;  %v3555_v37 = vadd.f32 %v3554_v32, %v3425_v42  ;;  %v6904_v8 = vadd.f32 %v6731_v50, %v2355_v40  ;;  %7608 = vst [vmem:[#allocation40_spill] sm:$0xff] %v6917_v7  ;;  %v6920_v42 = vsel %vm3173_vm12, 1.0, %v7534_v63 }
 0x29c   : > { %v4216_v6 = vpop.f32.mrf.mxu1  ;;  %7609 = vst [vmem:[#allocation41_spill] sm:$0xff] %v6920_v42  ;;  %v6923_v40 = vadd.f32 %v6731_v50, %v4213_v15  ;;  %v3428_v32 = vmul.f32 %v6917_v7, %v3041_v17  ;;  %vm3175_vm14 = vcmp.lt.s32.totalorder %v3110_v38, %v6048_v46  ;;  %v3111_v18 = vadd.s32 360, %v7527_v44 }
 0x29d   : > { %v3427_v61 = vmul.f32 %v6898_v36, %v3040_v0  ;;  %v3042_v62 = vmul.f32 %v6904_v8, %v6904_v8  ;;  %v6939_v17 = vsel %vm3174_vm13, 1.0, %v7534_v63  ;;  %v6942_v45 = vsel %vm3175_vm14, 1.0, %v7534_v63 }
 0x29e   : > { %4367 = vmatmul.mubr.f32.gmra.mxu1 %v2051_v55  ;;  %v2365_v55 = vpop.f32.mrf.mxu1  ;;  %7611 = vst [vmem:[#allocation53_spill] sm:$0xff] %v6939_v17  ;;  %7612 = vst [vmem:[#allocation54_spill] sm:$0xff] %v6942_v45  ;;  %v6945_v38 = vadd.f32 %v6731_v50, %v4216_v6  ;;  %vm3176_vm15 = vcmp.lt.s32.totalorder %v3111_v18, %v6048_v46 }
 0x29f   : > { %4369 = vmatprep.mubr.f32.mxu1 %v2053_v31  ;;  %v3556_v31 = vadd.f32 %v3555_v37, %v3426_v5  ;;  %v6926_v33 = vadd.f32 %v6731_v50, %v2365_v55  ;;  %v3429_v0 = vmul.f32 %v6920_v42, %v3042_v62  ;;  %v3043_v5 = vmul.f32 %v6923_v40, %v6923_v40 }
 0x2a0   : > { %v3112_v55 = vadd.s32 368, %v7527_v44  ;;  %7613 = vst [vmem:[#allocation55_spill] sm:$0xff] %v6945_v38 }
 0x2a1   : > { %v3557_v48 = vadd.f32 %v3556_v31, %v3427_v61  ;;  %7610 = vst [vmem:[#allocation44_spill] sm:$0xff] %v6926_v33  ;;  %v3044_v15 = vmul.f32 %v6926_v33, %v6926_v33  ;;  %v3113_v33 = vadd.s32 376, %v7527_v44 }
 0x2a2   : > { %4370 = vmatmul.mubr.f32.gmra.mxu1 %v2055_v60  ;;  %v4219_v60 = vpop.f32.mrf.mxu1  ;;  %vm3177_vm0 = vcmp.lt.s32.totalorder %v3112_v55, %v6048_v46 }
 0x2a3   : > { %v3558_v61 = vadd.f32 %v3557_v48, %v3428_v32  ;;  %v3430_v48 = vmul.f32 %v6939_v17, %v3043_v5  ;;  %v3431_v32 = vmul.f32 %v6942_v45, %v3044_v15  ;;  %v6961_v5 = vsel %vm3176_vm15, 1.0, %v7534_v63 }
 0x2a4   : > { %v2375_v37 = vpop.f32.mrf.mxu1  ;;  %7615 = vst [vmem:[#allocation57_spill] sm:$0xff] %v6961_v5  ;;  %v6964_v18 = vsel %vm3177_vm0, 1.0, %v7534_v63  ;;  %v6967_v45 = vadd.f32 %v6731_v50, %v4219_v60  ;;  %vm3178_vm1 = vcmp.lt.s32.totalorder %v3113_v33, %v6048_v46 }
 0x2a5   : > { %v3559_v62 = vadd.f32 %v3558_v61, %v3429_v0  ;;  %v6948_v42 = vadd.f32 %v6731_v50, %v2375_v37  ;;  %v3045_v0 = vmul.f32 %v6945_v38, %v6945_v38  ;;  %v3114_v37 = vadd.s32 384, %v7527_v44  ;;  %7616 = vst [vmem:[#allocation58_spill] sm:$0xff] %v6964_v18 }
 0x2a6   : > { %7617 = vst [vmem:[#allocation59_spill] sm:$0xff] %v6967_v45 }
 0x2a7   : > { %7614 = vst [vmem:[#allocation56_spill] sm:$0xff] %v6948_v42  ;;  %v3560_v61 = vadd.f32 %v3559_v62, %v3430_v48  ;;  %v3046_v6 = vmul.f32 %v6948_v42, %v6948_v42  ;;  %v3432_v62 = vmul.f32 %v6961_v5, %v3045_v0  ;;  %vm3179_vm2 = vcmp.lt.s32.totalorder %v3114_v37, %v6048_v46 }
 0x2a8   : > { %v3115_v42 = vadd.s32 392, %v7527_v44  ;;  %v6983_v0 = vsel %vm3178_vm1, 1.0, %v7534_v63  ;;  %v6986_v33 = vsel %vm3179_vm2, 1.0, %v7534_v63 }
 0x2a9   : > { %v4222_v31 = vpop.f32.mrf.mxu1  ;;  %v3561_v55 = vadd.f32 %v3560_v61, %v3431_v32  ;;  %v3433_v48 = vmul.f32 %v6964_v18, %v3046_v6  ;;  %v3047_v32 = vmul.f32 %v6967_v45, %v6967_v45  ;;  %7619 = vst [vmem:[#allocation61_spill] sm:$0xff] %v6983_v0  ;;  %7620 = vst [vmem:[#allocation62_spill] sm:$0xff] %v6986_v33 }
 0x2aa   : > { %v6989_v18 = vadd.f32 %v6731_v50, %v4222_v31  ;;  %vm3180_vm3 = vcmp.lt.s32.totalorder %v3115_v42, %v6048_v46 }
 0x2ab   : > { %v2385_v7 = vpop.f32.mrf.mxu1  ;;  %v3562_v61 = vadd.f32 %v3561_v55, %v3432_v62  ;;  %v3434_v55 = vmul.f32 %v6983_v0, %v3047_v32  ;;  %v7005_v32 = vsel %vm3180_vm3, 1.0, %v7534_v63 }
 0x2ac   : > { %v6970_v17 = vadd.f32 %v6731_v50, %v2385_v7  ;;  %v3116_v7 = vadd.s32 400, %v7527_v44  ;;  %7621 = vst [vmem:[#allocation63_spill] sm:$0xff] %v6989_v18  ;;  %7623 = vst [vmem:[#allocation65_spill] sm:$0xff] %v7005_v32 }
 0x2ad   : > { %v3563_v37 = vadd.f32 %v3562_v61, %v3433_v48  ;;  %v3049_v48 = vmul.f32 %v6989_v18, %v6989_v18 }
 0x2ae   : > { %7618 = vst [vmem:[#allocation60_spill] sm:$0xff] %v6970_v17  ;;  %v3048_v60 = vmul.f32 %v6970_v17, %v6970_v17  ;;  %vm3181_vm4 = vcmp.lt.s32.totalorder %v3116_v7, %v6048_v46  ;;  %v3117_v17 = vadd.s32 408, %v7527_v44 }
 0x2af   : > { %v3564_v61 = vadd.f32 %v3563_v37, %v3434_v55  ;;  %v7008_v42 = vsel %vm3181_vm4, 1.0, %v7534_v63  ;;  %v3436_v37 = vmul.f32 %v7005_v32, %v3049_v48  ;;  %v3121_v32 = vadd.s32 440, %v7527_v44 }
 0x2b0   : > { %v3435_v62 = vmul.f32 %v6986_v33, %v3048_v60  ;;  %7624 = vst [vmem:[#allocation66_spill] sm:$0xff] %v7008_v42  ;;  %vm3182_vm5 = vcmp.lt.s32.totalorder %v3117_v17, %v6048_v46 }
 0x2b1   : > { %v4225_v15 = vpop.f32.mrf.mxu1  ;;  %v7027_v48 = vsel %vm3182_vm5, 1.0, %v7534_v63  ;;  %vm3186_vm9 = vcmp.lt.s32.totalorder %v3121_v32, %v6048_v46 }
 0x2b2   : > { %v3565_v60 = vadd.f32 %v3564_v61, %v3435_v62  ;;  %v7011_v7 = vadd.f32 %v6731_v50, %v4225_v15  ;;  %v3120_v61 = vadd.s32 432, %v7527_v44  ;;  %7627 = vst [vmem:[#allocation69_spill] sm:$0xff] %v7027_v48 }
 0x2b3   : > { %v2395_v38 = vpop.f32.mrf.mxu1 }
 0x2b4   : > { %v6992_v5 = vadd.f32 %v6731_v50, %v2395_v38  ;;  %v3118_v38 = vadd.s32 416, %v7527_v44  ;;  %7625 = vst [vmem:[#allocation67_spill] sm:$0xff] %v7011_v7  ;;  %v3051_v62 = vmul.f32 %v7011_v7, %v7011_v7  ;;  %v3566_v15 = vadd.f32 %v3565_v60, %v3436_v37 }
 0x2b5   : > { %vm3185_vm8 = vcmp.lt.s32.totalorder %v3120_v61, %v6048_v46  ;;  %v3122_v7 = vadd.s32 448, %v7527_v44 }
 0x2b6   : > { %7622 = vst [vmem:[#allocation64_spill] sm:$0xff] %v6992_v5  ;;  %v3050_v31 = vmul.f32 %v6992_v5, %v6992_v5  ;;  %vm3183_vm6 = vcmp.lt.s32.totalorder %v3118_v38, %v6048_v46  ;;  %v3119_v5 = vadd.s32 424, %v7527_v44  ;;  %v3438_v60 = vmul.f32 %v7027_v48, %v3051_v62 }
 0x2b7   : > { %v7030_v17 = vsel %vm3183_vm6, 1.0, %v7534_v63  ;;  %vm3187_vm10 = vcmp.lt.s32.totalorder %v3122_v7, %v6048_v46 }
 0x2b8   : > { %v3437_v55 = vmul.f32 %v7008_v42, %v3050_v31  ;;  %7628 = vst [vmem:[#allocation70_spill] sm:$0xff] %v7030_v17  ;;  %vm3184_vm7 = vcmp.lt.s32.totalorder %v3119_v5, %v6048_v46  ;;  %v7052_v5 = vsel %vm3185_vm8, 1.0, %v7534_v63  ;;  %v7074_v32 = vsel %vm3187_vm10, 1.0, %v7534_v63 }
 0x2b9   : > { %v7049_v62 = vsel %vm3184_vm7, 1.0, %v7534_v63  ;;  %7632 = vst [vmem:[#allocation74_spill] sm:$0xff] %v7052_v5  ;;  %7636 = vst [vmem:[#allocation78_spill] sm:$0xff] %v7074_v32 }
 0x2ba   : > { %v4228_v6 = vpop.f32.mrf.mxu1  ;;  %v3567_v31 = vadd.f32 %v3566_v15, %v3437_v55  ;;  %7631 = vst [vmem:[#allocation73_spill] sm:$0xff] %v7049_v62 }
 0x2bb   : > { %v7033_v38 = vadd.f32 %v6731_v50, %v4228_v6 }
 0x2bc   : > { %v2405_v45 = vpop.f32.mrf.mxu1  ;;  %v3568_v15 = vadd.f32 %v3567_v31, %v3438_v60 }
 0x2bd   : > { %v7014_v33 = vadd.f32 %v6731_v50, %v2405_v45  ;;  %7629 = vst [vmem:[#allocation71_spill] sm:$0xff] %v7033_v38  ;;  %v3053_v55 = vmul.f32 %v7033_v38, %v7033_v38 }
 0x2bf   : > { %7626 = vst [vmem:[#allocation68_spill] sm:$0xff] %v7014_v33  ;;  %v3052_v45 = vmul.f32 %v7014_v33, %v7014_v33  ;;  %v3440_v31 = vmul.f32 %v7049_v62, %v3053_v55  ;;  %v7071_v55 = vsel %vm3186_vm9, 1.0, %v7534_v63 }
 0x2c0   : > { %7635 = vst [vmem:[#allocation77_spill] sm:$0xff] %v7071_v55 }
 0x2c1   : > { %v3439_v37 = vmul.f32 %v7030_v17, %v3052_v45 }
 0x2c2   : > { %v4231_v0 = vpop.f32.mrf.mxu1 }
 0x2c3   : > { %v3569_v45 = vadd.f32 %v3568_v15, %v3439_v37  ;;  %v7055_v61 = vadd.f32 %v6731_v50, %v4231_v0 }
 0x2c4   : > { %v2415_v18 = vpop.f32.mrf.mxu1 }
 0x2c5   : > { %v7036_v42 = vadd.f32 %v6731_v50, %v2415_v18  ;;  %7633 = vst [vmem:[#allocation75_spill] sm:$0xff] %v7055_v61  ;;  %v3055_v48 = vmul.f32 %v7055_v61, %v7055_v61  ;;  %v3570_v37 = vadd.f32 %v3569_v45, %v3440_v31 }
 0x2c7   : > { %7630 = vst [vmem:[#allocation72_spill] sm:$0xff] %v7036_v42  ;;  %v3054_v6 = vmul.f32 %v7036_v42, %v7036_v42  ;;  %v3123_v42 = vadd.s32 456, %v7527_v44  ;;  %v3442_v45 = vmul.f32 %v7071_v55, %v3055_v48 }
 0x2c9   : > { %v4234_v33 = vpop.f32.mrf.mxu1  ;;  %v3441_v60 = vmul.f32 %v7052_v5, %v3054_v6  ;;  %vm3188_vm11 = vcmp.lt.s32.totalorder %v3123_v42, %v6048_v46 }
 0x2ca   : > { %v7077_v7 = vadd.f32 %v6731_v50, %v4234_v33  ;;  %v7093_v61 = vsel %vm3188_vm11, 1.0, %v7534_v63 }
 0x2cb   : > { %v2425_v18 = vpop.f32.mrf.mxu1  ;;  %v3571_v6 = vadd.f32 %v3570_v37, %v3441_v60  ;;  %7639 = vst [vmem:[#allocation81_spill] sm:$0xff] %v7093_v61 }
 0x2cc   : > { %v7058_v17 = vadd.f32 %v6731_v50, %v2425_v18  ;;  %v3124_v18 = vadd.s32 464, %v7527_v44  ;;  %7637 = vst [vmem:[#allocation79_spill] sm:$0xff] %v7077_v7  ;;  %v3057_v60 = vmul.f32 %v7077_v7, %v7077_v7  ;;  %v3127_v7 = vadd.s32 488, %v7527_v44 }
 0x2cd   : > { %v3572_v37 = vadd.f32 %v3571_v6, %v3442_v45 }
 0x2ce   : > { %7634 = vst [vmem:[#allocation76_spill] sm:$0xff] %v7058_v17  ;;  %v3056_v0 = vmul.f32 %v7058_v17, %v7058_v17  ;;  %vm3189_vm12 = vcmp.lt.s32.totalorder %v3124_v18, %v6048_v46  ;;  %v3125_v17 = vadd.s32 472, %v7527_v44  ;;  %vm3192_vm15 = vcmp.lt.s32.totalorder %v3127_v7, %v6048_v46  ;;  %v7141_v7 = vld [vmem:[%s423_s14] ss:$0 sm:$0xff] }
 0x2cf   : > { %v7096_v42 = vsel %vm3189_vm12, 1.0, %v7534_v63 }
 0x2d0   : > { %v3443_v31 = vmul.f32 %v7074_v32, %v3056_v0  ;;  %7640 = vst [vmem:[#allocation82_spill] sm:$0xff] %v7096_v42  ;;  %v3444_v32 = vmul.f32 %v7093_v61, %v3057_v60  ;;  %vm3190_vm13 = vcmp.lt.s32.totalorder %v3125_v17, %v6048_v46  ;;  %v7652_v61 = vld [vmem:[#allocation31_spill] sm:$0xff] }
 0x2d1   : > { %v4237_v15 = vpop.f32.mrf.mxu1 }
 0x2d2   : > { %v3573_v48 = vadd.f32 %v3572_v37, %v3443_v31  ;;  %v7099_v0 = vadd.f32 %v6731_v50, %v4237_v15  ;;  %v7112_v15 = vsel %vm3190_vm13, 1.0, %v7534_v63 }
 0x2d3   : > { %v2435_v5 = vpop.f32.mrf.mxu1  ;;  %7643 = vst [vmem:[#allocation85_spill] sm:$0xff] %v7112_v15 }
 0x2d4   : > { %v7080_v62 = vadd.f32 %v6731_v50, %v2435_v5  ;;  %v3126_v5 = vadd.s32 480, %v7527_v44  ;;  %7641 = vst [vmem:[#allocation83_spill] sm:$0xff] %v7099_v0  ;;  %v3574_v55 = vadd.f32 %v3573_v48, %v3444_v32  ;;  %v3128_v32 = vadd.s32 496, %v7527_v44 }
 0x2d6   : > { %7638 = vst [vmem:[#allocation80_spill] sm:$0xff] %v7080_v62  ;;  %v3058_v33 = vmul.f32 %v7080_v62, %v7080_v62  ;;  %vm3191_vm14 = vcmp.lt.s32.totalorder %v3126_v5, %v6048_v46  ;;  %v3059_v62 = vmul.f32 %v7099_v0, %v7099_v0  ;;  %vm3193_vm0 = vcmp.lt.s32.totalorder %v3128_v32, %v6048_v46 }
 0x2d7   : > { %v7115_v60 = vsel %vm3191_vm14, 1.0, %v7534_v63 }
 0x2d8   : > { %v3445_v6 = vmul.f32 %v7096_v42, %v3058_v33  ;;  %7644 = vst [vmem:[#allocation86_spill] sm:$0xff] %v7115_v60  ;;  %v3446_v5 = vmul.f32 %v7112_v15, %v3059_v62 }
 0x2da   : > { %v4240_v18 = vpop.f32.mrf.mxu1  ;;  %v3575_v17 = vadd.f32 %v3574_v55, %v3445_v6 }
 0x2db   : > { %v7118_v37 = vadd.f32 %v6731_v50, %v4240_v18 }
 0x2dc   : > { %v2445_v45 = vpop.f32.mrf.mxu1  ;;  %v3576_v6 = vadd.f32 %v3575_v17, %v3446_v5 }
 0x2dd   : > { %v7109_v31 = vadd.f32 %v6731_v50, %v2445_v45  ;;  %7645 = vst [vmem:[#allocation87_spill] sm:$0xff] %v7118_v37  ;;  %v3129_v45 = vadd.s32 504, %v7527_v44  ;;  %v3061_v55 = vmul.f32 %v7118_v37, %v7118_v37 }
 0x2df   : > { %7642 = vst [vmem:[#allocation84_spill] sm:$0xff] %v7109_v31  ;;  %v3060_v33 = vmul.f32 %v7109_v31, %v7109_v31  ;;  %v7134_v31 = vsel %vm3192_vm15, 1.0, %v7534_v63  ;;  %vm3194_vm1 = vcmp.lt.s32.totalorder %v3129_v45, %v6048_v46 }
 0x2e0   : > { %7647 = vst [vmem:[#allocation89_spill] sm:$0xff] %v7134_v31  ;;  %v3448_v32 = vmul.f32 %v7134_v31, %v3061_v55 }
 0x2e1   : > { %v3447_v48 = vmul.f32 %v7115_v60, %v3060_v33 }
 0x2e2   : > { %v4243_v42 = vpop.f32.mrf.mxu1 }
 0x2e3   : > { %v7130_v18 = vadd.f32 %v6731_v50, %v4243_v42  ;;  %v3577_v44 = vadd.f32 %v3576_v6, %v3447_v48  ;;  %v7148_v42 = vsel %vm3193_vm0, 1.0, %v7534_v63  ;;  %v7157_v48 = vsel %vm3194_vm1, 1.0, %v7534_v63  ;;  %v3517_v63 = vld [vmem:[%s7375_s9 + $0x8] sm:$0xff] }
 0x2e4   : > { %v2455_v62 = vpop.f32.mrf.mxu1  ;;  %7649 = vst [vmem:[#allocation91_spill] sm:$0xff] %v7148_v42  ;;  %7650 = vst [vmem:[#allocation92_spill] sm:$0xff] %v7157_v48 }
 0x2e5   : > { %7646 = vst [vmem:[#allocation88_spill] sm:$0xff] %v7130_v18  ;;  %v7145_v17 = vadd.f32 %v6731_v50, %v2455_v62  ;;  %v3063_v5 = vmul.f32 %v7130_v18, %v7130_v18  ;;  %v3578_v45 = vadd.f32 %v3577_v44, %v3448_v32  ;;  %v7651_v62 = vld [vmem:[#allocation36_spill] sm:$0xff] }
 0x2e6   : > { %v4278_v33 = vpop.f32.mrf.mxu1 }
 0x2e7   : > { %7648 = vst [vmem:[#allocation90_spill] sm:$0xff] %v7145_v17  ;;  %v3062_v60 = vmul.f32 %v7145_v17, %v7145_v17  ;;  %v2559_v15 = vadd.f32 %v4278_v33, %v7141_v7  ;;  %v3450_v31 = vmul.f32 %v7157_v48, %v3063_v5 }
 0x2e8   : > { %v2553_v46 = vpop.f32.mrf.mxu1 }
 0x2e9   : > { %v3449_v50 = vmul.f32 %v7148_v42, %v3062_v60  ;;  %v2554_v6 = vadd.f32 %v7141_v7, %v2553_v46  ;;  %v2873_v37 = vsub.f32 %v7651_v62, %v2559_v15  ;;  %v7659_v42 = vld [vmem:[#allocation11_spill] sm:$0xff] }
 0x2ea   : > { %v4281_v55 = vpop.f32.mrf.mxu1 }
 0x2eb   : > { %v3579_v18 = vadd.f32 %v3578_v45, %v3449_v50  ;;  %v2872_v0 = vsub.f32 %v7652_v61, %v2554_v6  ;;  %v2569_v17 = vadd.f32 %v4281_v55, %v7141_v7  ;;  %v2937_v44 = vmul.f32 %v2873_v37, %v2873_v37  ;;  %v7653_v50 = vld [vmem:[#allocation8_spill] sm:$0xff]  ;;  %v7654_v45 = vld [vmem:[#allocation7_spill] sm:$0xff] }
 0x2ec   : > { %v2563_v33 = vpop.f32.mrf.mxu1 }
 0x2ed   : > { %v3580_v38 = vadd.f32 %v3579_v18, %v3450_v31  ;;  %v2936_v60 = vmul.f32 %v2872_v0, %v2872_v0  ;;  %v2875_v32 = vsub.f32 %v6113_v58, %v2569_v17  ;;  %v2564_v15 = vadd.f32 %v7141_v7, %v2563_v33 }
 0x2ee   : > { %v4284_v46 = vpop.f32.mrf.mxu1  ;;  %v3324_v31 = vmul.f32 %v6102_v3, %v2937_v44  ;;  %v7657_v44 = vld [vmem:[#allocation42_spill] sm:$0xff] }
 0x2ef   : > { %v3581_v62 = vadd.f32 %v3580_v38, %v3517_v63  ;;  %v2579_v5 = vadd.f32 %v4284_v46, %v7141_v7  ;;  %v3323_v61 = vmul.f32 %v7653_v50, %v2936_v60  ;;  %v2874_v6 = vsub.f32 %v7654_v45, %v2564_v15  ;;  %v7655_v60 = vld [vmem:[#allocation6_spill] sm:$0xff]  ;;  %v7656_v45 = vld [vmem:[#allocation9_spill] sm:$0xff] }
 0x2f0   : > { %v2573_v55 = vpop.f32.mrf.mxu1  ;;  %v2939_v58 = vmul.f32 %v2875_v32, %v2875_v32 }
 0x2f1   : > { %3582 = vst [vmem:[%s7375_s9 + $0x8] sm:$0xff] %v3581_v62  ;;  %v2574_v0 = vadd.f32 %v7141_v7, %v2573_v55  ;;  %v2938_v37 = vmul.f32 %v2874_v6, %v2874_v6  ;;  %v2877_v18 = vsub.f32 %v6168_v2, %v2579_v5  ;;  %v3452_v33 = vadd.f32 %v3324_v31, %v3323_v61  ;;  %v7658_v2 = vld [vmem:[#allocation38_spill] sm:$0xff] }
 0x2f2   : > { %v4287_v38 = vpop.f32.mrf.mxu1  ;;  %v3326_v55 = vmul.f32 %v7656_v45, %v2939_v58 }
 0x2f3   : > { %v2876_v17 = vsub.f32 %v6125_v56, %v2574_v0  ;;  %v2589_v63 = vadd.f32 %v4287_v38, %v7141_v7  ;;  %v3325_v15 = vmul.f32 %v7655_v60, %v2938_v37  ;;  %v2941_v3 = vmul.f32 %v2877_v18, %v2877_v18 }
 0x2f4   : > { %v2583_v46 = vpop.f32.mrf.mxu1 }
 0x2f5   : > { %v2940_v50 = vmul.f32 %v2876_v17, %v2876_v17  ;;  %v2584_v62 = vadd.f32 %v7141_v7, %v2583_v46  ;;  %v3453_v48 = vadd.f32 %v3452_v33, %v3325_v15  ;;  %v2879_v32 = vsub.f32 %v7657_v44, %v2589_v63  ;;  %v7660_v17 = vld [vmem:[#allocation12_spill] sm:$0xff]  ;;  %v7661_v33 = vld [vmem:[#allocation15_spill] sm:$0xff]  ;;  %v7663_v44 = vld [vmem:[#allocation13_spill] sm:$0xff] }
 0x2f6   : > { %v4290_v6 = vpop.f32.mrf.mxu1  ;;  %v3328_v60 = vmul.f32 %v7660_v17, %v2941_v3  ;;  %v7662_v63 = vld [vmem:[#allocation43_spill] sm:$0xff] }
 0x2f7   : > { %v3327_v5 = vmul.f32 %v7658_v2, %v2940_v50  ;;  %v2878_v56 = vsub.f32 %v7659_v42, %v2584_v62  ;;  %v2599_v0 = vadd.f32 %v4290_v6, %v7141_v7  ;;  %v3454_v61 = vadd.f32 %v3453_v48, %v3326_v55  ;;  %v7664_v2 = vld [vmem:[#allocation10_spill] sm:$0xff] }
 0x2f8   : > { %v2593_v31 = vpop.f32.mrf.mxu1  ;;  %v2943_v58 = vmul.f32 %v2879_v32, %v2879_v32 }
 0x2f9   : > { %v2942_v37 = vmul.f32 %v2878_v56, %v2878_v56  ;;  %v2594_v38 = vadd.f32 %v7141_v7, %v2593_v31  ;;  %v3455_v46 = vadd.f32 %v3454_v61, %v3327_v5  ;;  %v2881_v18 = vsub.f32 %v7661_v33, %v2599_v0  ;;  %v7665_v5 = vld [vmem:[#allocation18_spill] sm:$0xff]  ;;  %v7666_v0 = vld [vmem:[#allocation16_spill] sm:$0xff]  ;;  %v7667_v33 = vld [vmem:[#allocation45_spill] sm:$0xff] }
 0x2fa   : > { %v4293_v15 = vpop.f32.mrf.mxu1  ;;  %v3330_v56 = vmul.f32 %v7664_v2, %v2943_v58  ;;  %v7670_v2 = vld [vmem:[#allocation26_spill] sm:$0xff] }
 0x2fb   : > { %v3329_v45 = vmul.f32 %v7662_v63, %v2942_v37  ;;  %v2880_v50 = vsub.f32 %v7663_v44, %v2594_v38  ;;  %v2609_v42 = vadd.f32 %v4293_v15, %v7141_v7  ;;  %v3456_v62 = vadd.f32 %v3455_v46, %v3328_v60  ;;  %v7668_v44 = vld [vmem:[#allocation14_spill] sm:$0xff] }
 0x2fc   : > { %v2603_v6 = vpop.f32.mrf.mxu1  ;;  %v2945_v3 = vmul.f32 %v2881_v18, %v2881_v18 }
 0x2fd   : > { %v2944_v48 = vmul.f32 %v2880_v50, %v2880_v50  ;;  %v2604_v55 = vadd.f32 %v7141_v7, %v2603_v6  ;;  %v3457_v31 = vadd.f32 %v3456_v62, %v3329_v45  ;;  %v2883_v32 = vsub.f32 %v7665_v5, %v2609_v42  ;;  %v7669_v42 = vld [vmem:[#allocation46_spill] sm:$0xff] }
 0x2fe   : > { %v4296_v61 = vpop.f32.mrf.mxu1  ;;  %v3332_v50 = vmul.f32 %v7668_v44, %v2945_v3 }
 0x2ff   : > { %v3331_v17 = vmul.f32 %v7666_v0, %v2944_v48  ;;  %v2882_v37 = vsub.f32 %v7667_v33, %v2604_v55  ;;  %v2619_v38 = vadd.f32 %v4296_v61, %v7141_v7  ;;  %v3458_v63 = vadd.f32 %v3457_v31, %v3330_v56  ;;  %v7671_v0 = vld [vmem:[#allocation17_spill] sm:$0xff] }
 0x300   : > { %v2613_v15 = vpop.f32.mrf.mxu1  ;;  %v2947_v58 = vmul.f32 %v2883_v32, %v2883_v32 }
 0x301   : > { %v2946_v60 = vmul.f32 %v2882_v37, %v2882_v37  ;;  %v2614_v46 = vadd.f32 %v7141_v7, %v2613_v15  ;;  %v3459_v6 = vadd.f32 %v3458_v63, %v3331_v17  ;;  %v2885_v18 = vsub.f32 %v6406_v53, %v2619_v38  ;;  %v7672_v17 = vld [vmem:[#allocation49_spill] sm:$0xff]  ;;  %v7673_v53 = vld [vmem:[#allocation48_spill] sm:$0xff] }
 0x302   : > { %v4299_v45 = vpop.f32.mrf.mxu1  ;;  %v3334_v33 = vmul.f32 %v7671_v0, %v2947_v58  ;;  %v7674_v15 = vld [vmem:[#allocation20_spill] sm:$0xff] }
 0x303   : > { %v3333_v62 = vmul.f32 %v7669_v42, %v2946_v60  ;;  %v2884_v48 = vsub.f32 %v7670_v2, %v2614_v46  ;;  %v2629_v55 = vadd.f32 %v4299_v45, %v7141_v7  ;;  %v3460_v5 = vadd.f32 %v3459_v6, %v3332_v50  ;;  %v7675_v42 = vld [vmem:[#allocation47_spill] sm:$0xff] }
 0x304   : > { %v2623_v61 = vpop.f32.mrf.mxu1  ;;  %v2949_v3 = vmul.f32 %v2885_v18, %v2885_v18 }
 0x305   : > { %v2948_v56 = vmul.f32 %v2884_v48, %v2884_v48  ;;  %v2624_v31 = vadd.f32 %v7141_v7, %v2623_v61  ;;  %v3461_v37 = vadd.f32 %v3460_v5, %v3333_v62  ;;  %v2887_v32 = vsub.f32 %v7672_v17, %v2629_v55  ;;  %v7676_v55 = vld [vmem:[#allocation19_spill] sm:$0xff]  ;;  %v7677_v61 = vld [vmem:[#allocation50_spill] sm:$0xff] }
 0x306   : > { %v4302_v63 = vpop.f32.mrf.mxu1  ;;  %v3336_v2 = vmul.f32 %v7675_v42, %v2949_v3 }
 0x307   : > { %v3335_v38 = vmul.f32 %v7673_v53, %v2948_v56  ;;  %v2886_v60 = vsub.f32 %v7674_v15, %v2624_v31  ;;  %v2639_v46 = vadd.f32 %v4302_v63, %v7141_v7  ;;  %v3462_v44 = vadd.f32 %v3461_v37, %v3334_v33  ;;  %v7678_v63 = vld [vmem:[#allocation29_spill] sm:$0xff] }
 0x308   : > { %v2633_v45 = vpop.f32.mrf.mxu1  ;;  %v2951_v58 = vmul.f32 %v2887_v32, %v2887_v32 }
 0x309   : > { %v2950_v50 = vmul.f32 %v2886_v60, %v2886_v60  ;;  %v2634_v6 = vadd.f32 %v7141_v7, %v2633_v45  ;;  %v3463_v48 = vadd.f32 %v3462_v44, %v3335_v38  ;;  %v2889_v18 = vsub.f32 %v6496_v20, %v2639_v46  ;;  %v7679_v38 = vld [vmem:[#allocation28_spill] sm:$0xff]  ;;  %v7680_v20 = vld [vmem:[#allocation21_spill] sm:$0xff] }
 0x30a   : > { %v4305_v62 = vpop.f32.mrf.mxu1  ;;  %v3338_v53 = vmul.f32 %v7678_v63, %v2951_v58  ;;  %v7681_v44 = vld [vmem:[#allocation24_spill] sm:$0xff] }
 0x30b   : > { %v3337_v5 = vmul.f32 %v7676_v55, %v2950_v50  ;;  %v2888_v56 = vsub.f32 %v7677_v61, %v2634_v6  ;;  %v2649_v31 = vadd.f32 %v4305_v62, %v7141_v7  ;;  %v3464_v0 = vadd.f32 %v3463_v48, %v3336_v2  ;;  %v7682_v62 = vld [vmem:[#allocation34_spill] sm:$0xff] }
 0x30c   : > { %v2643_v17 = vpop.f32.mrf.mxu1  ;;  %v2953_v3 = vmul.f32 %v2889_v18, %v2889_v18 }
 0x30d   : > { %v2952_v33 = vmul.f32 %v2888_v56, %v2888_v56  ;;  %v2644_v37 = vadd.f32 %v7141_v7, %v2643_v17  ;;  %v3465_v15 = vadd.f32 %v3464_v0, %v3337_v5  ;;  %v2891_v32 = vsub.f32 %v7679_v38, %v2649_v31  ;;  %v7683_v5 = vld [vmem:[#allocation30_spill] sm:$0xff]  ;;  %v7684_v31 = vld [vmem:[#allocation23_spill] sm:$0xff] }
 0x30e   : > { %v4308_v60 = vpop.f32.mrf.mxu1  ;;  %v3340_v55 = vmul.f32 %v7682_v62, %v2953_v3  ;;  %v7685_v17 = vld [vmem:[#allocation51_spill] sm:$0xff] }
 0x30f   : > { %v3339_v46 = vmul.f32 %v7680_v20, %v2952_v33  ;;  %v2890_v45 = vsub.f32 %v7681_v44, %v2644_v37  ;;  %v2659_v50 = vadd.f32 %v4308_v60, %v7141_v7  ;;  %v3466_v6 = vadd.f32 %v3465_v15, %v3338_v53  ;;  %v7686_v60 = vld [vmem:[#allocation22_spill] sm:$0xff] }
 0x310   : > { %v2653_v42 = vpop.f32.mrf.mxu1  ;;  %v2955_v58 = vmul.f32 %v2891_v32, %v2891_v32 }
 0x311   : > { %v2954_v2 = vmul.f32 %v2890_v45, %v2890_v45  ;;  %v2654_v48 = vadd.f32 %v7141_v7, %v2653_v42  ;;  %v3467_v61 = vadd.f32 %v3466_v6, %v3339_v46  ;;  %v2893_v18 = vsub.f32 %v7683_v5, %v2659_v50  ;;  %v7687_v45 = vld [vmem:[#allocation27_spill] sm:$0xff]  ;;  %v7688_v6 = vld [vmem:[#allocation32_spill] sm:$0xff]  ;;  %v7689_v5 = vld [vmem:[#allocation25_spill] sm:$0xff] }
 0x312   : > { %v4311_v56 = vpop.f32.mrf.mxu1  ;;  %v3342_v20 = vmul.f32 %v7686_v60, %v2955_v58 }
 0x313   : > { %v3341_v0 = vmul.f32 %v7684_v31, %v2954_v2  ;;  %v2892_v33 = vsub.f32 %v7685_v17, %v2654_v48  ;;  %v2669_v37 = vadd.f32 %v4311_v56, %v7141_v7  ;;  %v3468_v63 = vadd.f32 %v3467_v61, %v3340_v55 }
 0x314   : > { %v2663_v38 = vpop.f32.mrf.mxu1  ;;  %v2957_v3 = vmul.f32 %v2893_v18, %v2893_v18 }
 0x315   : > { %v2956_v53 = vmul.f32 %v2892_v33, %v2892_v33  ;;  %v2664_v15 = vadd.f32 %v7141_v7, %v2663_v38  ;;  %v3469_v44 = vadd.f32 %v3468_v63, %v3341_v0  ;;  %v2895_v32 = vsub.f32 %v6632_v13, %v2669_v37  ;;  %v7690_v13 = vld [vmem:[#allocation52_spill] sm:$0xff]  ;;  %v7691_v33 = vld [vmem:[#allocation33_spill] sm:$0xff] }
 0x316   : > { %v4314_v46 = vpop.f32.mrf.mxu1  ;;  %v3344_v56 = vmul.f32 %v7689_v5, %v2957_v3 }
 0x317   : > { %v3343_v50 = vmul.f32 %v7687_v45, %v2956_v53  ;;  %v2894_v42 = vsub.f32 %v7688_v6, %v2664_v15  ;;  %v2679_v2 = vadd.f32 %v4314_v46, %v7141_v7  ;;  %v3470_v48 = vadd.f32 %v3469_v44, %v3342_v20 }
 0x318   : > { %v2673_v62 = vpop.f32.mrf.mxu1  ;;  %v2959_v58 = vmul.f32 %v2895_v32, %v2895_v32 }
 0x319   : > { %v2958_v55 = vmul.f32 %v2894_v42, %v2894_v42  ;;  %v2674_v61 = vadd.f32 %v7141_v7, %v2673_v62  ;;  %v3471_v31 = vadd.f32 %v3470_v48, %v3343_v50  ;;  %v2897_v18 = vsub.f32 %v6668_v47, %v2679_v2 }
 0x31a   : > { %v4317_v0 = vpop.f32.mrf.mxu1  ;;  %v3346_v20 = vmul.f32 %v6548_v4, %v2959_v58 }
 0x31b   : > { %v3345_v17 = vmul.f32 %v7690_v13, %v2958_v55  ;;  %v2896_v37 = vsub.f32 %v7691_v33, %v2674_v61  ;;  %v2689_v63 = vadd.f32 %v4317_v0, %v7141_v7  ;;  %v3472_v38 = vadd.f32 %v3471_v31, %v3344_v56  ;;  %v7692_v0 = vld [vmem:[#allocation35_spill] sm:$0xff] }
 0x31c   : > { %v2683_v53 = vpop.f32.mrf.mxu1  ;;  %v2961_v3 = vmul.f32 %v2897_v18, %v2897_v18 }
 0x31d   : > { %v2960_v15 = vmul.f32 %v2896_v37, %v2896_v37  ;;  %v2684_v60 = vadd.f32 %v7141_v7, %v2683_v53  ;;  %v3473_v44 = vadd.f32 %v3472_v38, %v3345_v17  ;;  %v2899_v32 = vsub.f32 %v6703_v29, %v2689_v63  ;;  %v7694_v38 = vld [vmem:[#allocation39_spill] sm:$0xff] }
 0x31e   : > { %v4320_v46 = vpop.f32.mrf.mxu1  ;;  %v3348_v62 = vmul.f32 %v6626_v39, %v2961_v3 }
 0x31f   : > { %v3347_v47 = vmul.f32 %v6661_v34, %v2960_v15  ;;  %v2898_v45 = vsub.f32 %v6671_v1, %v2684_v60  ;;  %v2699_v50 = vadd.f32 %v4320_v46, %v7141_v7  ;;  %v3474_v6 = vadd.f32 %v3473_v44, %v3346_v20 }
 0x320   : > { %v2693_v42 = vpop.f32.mrf.mxu1  ;;  %v2963_v4 = vmul.f32 %v2899_v32, %v2899_v32 }
 0x321   : > { %v2962_v2 = vmul.f32 %v2898_v45, %v2898_v45  ;;  %v2694_v48 = vadd.f32 %v7141_v7, %v2693_v42  ;;  %v3475_v55 = vadd.f32 %v3474_v6, %v3347_v47  ;;  %v2901_v61 = vsub.f32 %v6735_v16, %v2699_v50  ;;  %v7693_v16 = vld [vmem:[#allocation37_spill] sm:$0xff] }
 0x322   : > { %v4323_v5 = vpop.f32.mrf.mxu1  ;;  %v3350_v13 = vmul.f32 %v7692_v0, %v2963_v4 }
 0x323   : > { %v3349_v29 = vmul.f32 %v6697_v23, %v2962_v2  ;;  %v2900_v34 = vsub.f32 %v6706_v51, %v2694_v48  ;;  %v2709_v1 = vadd.f32 %v4323_v5, %v7141_v7  ;;  %v3476_v56 = vadd.f32 %v3475_v55, %v3348_v62 }
 0x324   : > { %v2703_v31 = vpop.f32.mrf.mxu1  ;;  %v2965_v39 = vmul.f32 %v2901_v61, %v2901_v61 }
 0x325   : > { %v2964_v58 = vmul.f32 %v2900_v34, %v2900_v34  ;;  %v2704_v18 = vadd.f32 %v7141_v7, %v2703_v31  ;;  %v3477_v17 = vadd.f32 %v3476_v56, %v3349_v29  ;;  %v2903_v33 = vsub.f32 %v6766_v10, %v2709_v1 }
 0x326   : > { %v4326_v37 = vpop.f32.mrf.mxu1  ;;  %v3352_v44 = vmul.f32 %v6747_v30, %v2965_v39 }
 0x327   : > { %v3351_v63 = vmul.f32 %v7693_v16, %v2964_v58  ;;  %v2902_v23 = vsub.f32 %v7694_v38, %v2704_v18  ;;  %v2719_v51 = vadd.f32 %v4326_v37, %v7141_v7  ;;  %v3478_v53 = vadd.f32 %v3477_v17, %v3350_v13 }
 0x328   : > { %v2713_v15 = vpop.f32.mrf.mxu1  ;;  %v2967_v32 = vmul.f32 %v2903_v33, %v2903_v33 }
 0x329   : > { %v2966_v60 = vmul.f32 %v2902_v23, %v2902_v23  ;;  %v2714_v20 = vadd.f32 %v7141_v7, %v2713_v15  ;;  %v3479_v3 = vadd.f32 %v3478_v53, %v3351_v63  ;;  %v2905_v46 = vsub.f32 %v6795_v52, %v2719_v51 }
 0x32a   : > { %v4329_v47 = vpop.f32.mrf.mxu1  ;;  %v3354_v62 = vmul.f32 %v6786_v24, %v2967_v32 }
 0x32b   : > { %v3353_v10 = vmul.f32 %v6759_v19, %v2966_v60  ;;  %v2904_v45 = vsub.f32 %v6769_v59, %v2714_v20  ;;  %v2729_v50 = vadd.f32 %v4329_v47, %v7141_v7  ;;  %v3480_v6 = vadd.f32 %v3479_v3, %v3352_v44 }
 0x32c   : > { %v2723_v42 = vpop.f32.mrf.mxu1  ;;  %v2969_v30 = vmul.f32 %v2905_v46, %v2905_v46 }
 0x32d   : > { %v2968_v2 = vmul.f32 %v2904_v45, %v2904_v45  ;;  %v2724_v48 = vadd.f32 %v7141_v7, %v2723_v42  ;;  %v3481_v55 = vadd.f32 %v3480_v6, %v3353_v10  ;;  %v2907_v4 = vsub.f32 %v6826_v11, %v2729_v50 }
 0x32e   : > { %v4332_v61 = vpop.f32.mrf.mxu1  ;;  %v3356_v56 = vmul.f32 %v6816_v43, %v2969_v30 }
 0x32f   : > { %v3355_v52 = vmul.f32 %v6791_v9, %v2968_v2  ;;  %v2906_v19 = vsub.f32 %v6799_v28, %v2724_v48  ;;  %v2739_v59 = vadd.f32 %v4332_v61, %v7141_v7  ;;  %v3482_v5 = vadd.f32 %v3481_v55, %v3354_v62  ;;  %v7695_v55 = vld [vmem:[#allocation40_spill] sm:$0xff]  ;;  %v7696_v61 = vld [vmem:[#allocation55_spill] sm:$0xff] }
 0x330   : > { %v2733_v29 = vpop.f32.mrf.mxu1  ;;  %v2971_v24 = vmul.f32 %v2907_v4, %v2907_v4 }
 0x331   : > { %v2970_v34 = vmul.f32 %v2906_v19, %v2906_v19  ;;  %v2734_v1 = vadd.f32 %v7141_v7, %v2733_v29  ;;  %v3483_v31 = vadd.f32 %v3482_v5, %v3355_v52  ;;  %v2909_v58 = vsub.f32 %v6850_v25, %v2739_v59  ;;  %v7698_v5 = vld [vmem:[#allocation44_spill] sm:$0xff] }
 0x332   : > { %v4335_v18 = vpop.f32.mrf.mxu1  ;;  %v3358_v33 = vmul.f32 %v6844_v35, %v2971_v24 }
 0x333   : > { %v3357_v11 = vmul.f32 %v6821_v22, %v2970_v34  ;;  %v2908_v9 = vsub.f32 %v6829_v21, %v2734_v1  ;;  %v2749_v28 = vadd.f32 %v4335_v18, %v7141_v7  ;;  %v3484_v0 = vadd.f32 %v3483_v31, %v3356_v56  ;;  %v7699_v31 = vld [vmem:[#allocation53_spill] sm:$0xff] }
 0x334   : > { %v2743_v13 = vpop.f32.mrf.mxu1  ;;  %v2973_v43 = vmul.f32 %v2909_v58, %v2909_v58 }
 0x335   : > { %v2972_v17 = vmul.f32 %v2908_v9, %v2908_v9  ;;  %v2744_v39 = vadd.f32 %v7141_v7, %v2743_v13  ;;  %v3485_v37 = vadd.f32 %v3484_v0, %v3357_v11  ;;  %v2911_v16 = vsub.f32 %v6878_v12, %v2749_v28  ;;  %v7700_v11 = vld [vmem:[#allocation59_spill] sm:$0xff]  ;;  %v7701_v0 = vld [vmem:[#allocation54_spill] sm:$0xff] }
 0x336   : > { %v4338_v63 = vpop.f32.mrf.mxu1  ;;  %v3360_v15 = vmul.f32 %v6871_v57, %v2973_v43 }
 0x337   : > { %v3359_v25 = vmul.f32 %v6847_v27, %v2972_v17  ;;  %v2910_v22 = vsub.f32 %v6853_v41, %v2744_v39  ;;  %v2759_v21 = vadd.f32 %v4338_v63, %v7141_v7  ;;  %v3486_v38 = vadd.f32 %v3485_v37, %v3358_v33  ;;  %v7702_v17 = vld [vmem:[#allocation56_spill] sm:$0xff] }
 0x338   : > { %v2753_v23 = vpop.f32.mrf.mxu1  ;;  %v2975_v35 = vmul.f32 %v2911_v16, %v2911_v16 }
 0x339   : > { %v2974_v51 = vmul.f32 %v2910_v22, %v2910_v22  ;;  %v2754_v53 = vadd.f32 %v7141_v7, %v2753_v23  ;;  %v3487_v60 = vadd.f32 %v3486_v38, %v3359_v25  ;;  %v2913_v20 = vsub.f32 %v6901_v54, %v2759_v21  ;;  %v7703_v25 = vld [vmem:[#allocation57_spill] sm:$0xff]  ;;  %v7704_v23 = vld [vmem:[#allocation63_spill] sm:$0xff] }
 0x33a   : > { %v4341_v44 = vpop.f32.mrf.mxu1  ;;  %v3362_v10 = vmul.f32 %v6895_v49, %v2975_v35  ;;  %v7706_v35 = vld [vmem:[#allocation60_spill] sm:$0xff] }
 0x33b   : > { %v3361_v12 = vmul.f32 %v6874_v14, %v2974_v51  ;;  %v2912_v27 = vsub.f32 %v6881_v26, %v2754_v53  ;;  %v2769_v41 = vadd.f32 %v4341_v44, %v7141_v7  ;;  %v3488_v3 = vadd.f32 %v3487_v60, %v3360_v15  ;;  %v7705_v15 = vld [vmem:[#allocation58_spill] sm:$0xff] }
 0x33c   : > { %v2763_v32 = vpop.f32.mrf.mxu1  ;;  %v2977_v57 = vmul.f32 %v2913_v20, %v2913_v20 }
 0x33d   : > { %v2976_v46 = vmul.f32 %v2912_v27, %v2912_v27  ;;  %v2764_v47 = vadd.f32 %v7141_v7, %v2763_v32  ;;  %v3489_v45 = vadd.f32 %v3488_v3, %v3361_v12  ;;  %v2915_v50 = vsub.f32 %v6923_v40, %v2769_v41  ;;  %v7697_v40 = vld [vmem:[#allocation41_spill] sm:$0xff] }
 0x33e   : > { %v4344_v6 = vpop.f32.mrf.mxu1  ;;  %v3364_v30 = vmul.f32 %v7695_v55, %v2977_v57  ;;  %v7707_v32 = vld [vmem:[#allocation61_spill] sm:$0xff] }
 0x33f   : > { %v3363_v54 = vmul.f32 %v6898_v36, %v2976_v46  ;;  %v2914_v14 = vsub.f32 %v6904_v8, %v2764_v47  ;;  %v2779_v26 = vadd.f32 %v4344_v6, %v7141_v7  ;;  %v3490_v42 = vadd.f32 %v3489_v45, %v3362_v10  ;;  %v7708_v45 = vld [vmem:[#allocation67_spill] sm:$0xff]  ;;  %v7709_v6 = vld [vmem:[#allocation62_spill] sm:$0xff] }
 0x340   : > { %v2773_v2 = vpop.f32.mrf.mxu1  ;;  %v2979_v49 = vmul.f32 %v2915_v50, %v2915_v50 }
 0x341   : > { %v2978_v48 = vmul.f32 %v2914_v14, %v2914_v14  ;;  %v2774_v62 = vadd.f32 %v7141_v7, %v2773_v2  ;;  %v3491_v4 = vadd.f32 %v3490_v42, %v3363_v54  ;;  %v2917_v52 = vsub.f32 %v7696_v61, %v2779_v26  ;;  %v7710_v14 = vld [vmem:[#allocation64_spill] sm:$0xff] }
 0x342   : > { %v4347_v19 = vpop.f32.mrf.mxu1  ;;  %v3366_v24 = vmul.f32 %v7699_v31, %v2979_v49 }
 0x343   : > { %v3365_v59 = vmul.f32 %v7697_v40, %v2978_v48  ;;  %v2916_v36 = vsub.f32 %v7698_v5, %v2774_v62  ;;  %v2789_v8 = vadd.f32 %v4347_v19, %v7141_v7  ;;  %v3492_v29 = vadd.f32 %v3491_v4, %v3364_v30  ;;  %v7711_v30 = vld [vmem:[#allocation65_spill] sm:$0xff] }
 0x344   : > { %v2783_v34 = vpop.f32.mrf.mxu1  ;;  %v2981_v18 = vmul.f32 %v2917_v52, %v2917_v52  ;;  %v7712_v52 = vld [vmem:[#allocation71_spill] sm:$0xff] }
 0x345   : > { %v2980_v1 = vmul.f32 %v2916_v36, %v2916_v36  ;;  %v2784_v56 = vadd.f32 %v7141_v7, %v2783_v34  ;;  %v3493_v58 = vadd.f32 %v3492_v29, %v3365_v59  ;;  %v2919_v9 = vsub.f32 %v7700_v11, %v2789_v8  ;;  %v7713_v59 = vld [vmem:[#allocation66_spill] sm:$0xff]  ;;  %v7714_v36 = vld [vmem:[#allocation68_spill] sm:$0xff] }
 0x346   : > { %v4350_v28 = vpop.f32.mrf.mxu1  ;;  %v3368_v22 = vmul.f32 %v7703_v25, %v2981_v18 }
 0x347   : > { %v3367_v13 = vmul.f32 %v7701_v0, %v2980_v1  ;;  %v2918_v39 = vsub.f32 %v7702_v17, %v2784_v56  ;;  %v2799_v33 = vadd.f32 %v4350_v28, %v7141_v7  ;;  %v3494_v37 = vadd.f32 %v3493_v58, %v3366_v24  ;;  %v7715_v24 = vld [vmem:[#allocation69_spill] sm:$0xff] }
 0x348   : > { %v2793_v43 = vpop.f32.mrf.mxu1  ;;  %v2983_v38 = vmul.f32 %v2919_v9, %v2919_v9  ;;  %v7716_v9 = vld [vmem:[#allocation75_spill] sm:$0xff] }
 0x349   : > { %v2982_v16 = vmul.f32 %v2918_v39, %v2918_v39  ;;  %v2794_v63 = vadd.f32 %v7141_v7, %v2793_v43  ;;  %v3495_v21 = vadd.f32 %v3494_v37, %v3367_v13  ;;  %v2921_v51 = vsub.f32 %v7704_v23, %v2799_v33  ;;  %v7717_v13 = vld [vmem:[#allocation70_spill] sm:$0xff]  ;;  %v7718_v39 = vld [vmem:[#allocation72_spill] sm:$0xff] }
 0x34a   : > { %v4353_v53 = vpop.f32.mrf.mxu1  ;;  %v3370_v46 = vmul.f32 %v7707_v32, %v2983_v38 }
 0x34b   : > { %v3369_v60 = vmul.f32 %v7705_v15, %v2982_v16  ;;  %v2920_v20 = vsub.f32 %v7706_v35, %v2794_v63  ;;  %v2809_v44 = vadd.f32 %v4353_v53, %v7141_v7  ;;  %v3496_v12 = vadd.f32 %v3495_v21, %v3368_v22  ;;  %v7719_v22 = vld [vmem:[#allocation73_spill] sm:$0xff] }
 0x34c   : > { %v2803_v27 = vpop.f32.mrf.mxu1  ;;  %v2985_v10 = vmul.f32 %v2921_v51, %v2921_v51  ;;  %v7720_v51 = vld [vmem:[#allocation79_spill] sm:$0xff] }
 0x34d   : > { %v2984_v41 = vmul.f32 %v2920_v20, %v2920_v20  ;;  %v2804_v3 = vadd.f32 %v7141_v7, %v2803_v27  ;;  %v3497_v47 = vadd.f32 %v3496_v12, %v3369_v60  ;;  %v2923_v57 = vsub.f32 %v7708_v45, %v2809_v44  ;;  %v7721_v60 = vld [vmem:[#allocation74_spill] sm:$0xff]  ;;  %v7722_v20 = vld [vmem:[#allocation76_spill] sm:$0xff] }
 0x34e   : > { %v4356_v50 = vpop.f32.mrf.mxu1  ;;  %v3372_v4 = vmul.f32 %v7711_v30, %v2985_v10 }
 0x34f   : > { %v3371_v54 = vmul.f32 %v7709_v6, %v2984_v41  ;;  %v2922_v26 = vsub.f32 %v7710_v14, %v2804_v3  ;;  %v2819_v42 = vadd.f32 %v4356_v50, %v7141_v7  ;;  %v3498_v2 = vadd.f32 %v3497_v47, %v3370_v46  ;;  %v7723_v46 = vld [vmem:[#allocation77_spill] sm:$0xff] }
 0x350   : > { %v2813_v48 = vpop.f32.mrf.mxu1  ;;  %v2987_v61 = vmul.f32 %v2923_v57, %v2923_v57  ;;  %v7724_v57 = vld [vmem:[#allocation83_spill] sm:$0xff] }
 0x351   : > { %v2986_v62 = vmul.f32 %v2922_v26, %v2922_v26  ;;  %v2814_v55 = vadd.f32 %v7141_v7, %v2813_v48  ;;  %v3499_v49 = vadd.f32 %v3498_v2, %v3371_v54  ;;  %v2925_v19 = vsub.f32 %v7712_v52, %v2819_v42  ;;  %v7725_v54 = vld [vmem:[#allocation78_spill] sm:$0xff]  ;;  %v7726_v26 = vld [vmem:[#allocation80_spill] sm:$0xff] }
 0x352   : > { %v4359_v40 = vpop.f32.mrf.mxu1  ;;  %v3374_v58 = vmul.f32 %v7715_v24, %v2987_v61 }
 0x353   : > { %v3373_v5 = vmul.f32 %v7713_v59, %v2986_v62  ;;  %v2924_v8 = vsub.f32 %v7714_v36, %v2814_v55  ;;  %v2829_v29 = vadd.f32 %v4359_v40, %v7141_v7  ;;  %v3500_v34 = vadd.f32 %v3499_v49, %v3372_v4  ;;  %v7727_v4 = vld [vmem:[#allocation81_spill] sm:$0xff] }
 0x354   : > { %v2823_v1 = vpop.f32.mrf.mxu1  ;;  %v2989_v11 = vmul.f32 %v2925_v19, %v2925_v19  ;;  %v7728_v19 = vld [vmem:[#allocation87_spill] sm:$0xff] }
 0x355   : > { %v2988_v56 = vmul.f32 %v2924_v8, %v2924_v8  ;;  %v2824_v31 = vadd.f32 %v7141_v7, %v2823_v1  ;;  %v3501_v18 = vadd.f32 %v3500_v34, %v3373_v5  ;;  %v2927_v28 = vsub.f32 %v7716_v9, %v2829_v29  ;;  %v7729_v5 = vld [vmem:[#allocation82_spill] sm:$0xff]  ;;  %v7730_v8 = vld [vmem:[#allocation84_spill] sm:$0xff] }
 0x356   : > { %v4362_v0 = vpop.f32.mrf.mxu1  ;;  %v3376_v21 = vmul.f32 %v7719_v22, %v2989_v11 }
 0x357   : > { %v3375_v17 = vmul.f32 %v7717_v13, %v2988_v56  ;;  %v2926_v33 = vsub.f32 %v7718_v39, %v2824_v31  ;;  %v2839_v37 = vadd.f32 %v4362_v0, %v7141_v7  ;;  %v3502_v43 = vadd.f32 %v3501_v18, %v3374_v58  ;;  %v7731_v58 = vld [vmem:[#allocation85_spill] sm:$0xff]  ;;  %v7733_v13 = vld [vmem:[#allocation86_spill] sm:$0xff] }
 0x358   : > { %v2833_v16 = vpop.f32.mrf.mxu1  ;;  %v2991_v23 = vmul.f32 %v2927_v28, %v2927_v28  ;;  %v7732_v28 = vld [vmem:[#allocation88_spill] sm:$0xff]  ;;  %v7734_v39 = vld [vmem:[#allocation90_spill] sm:$0xff] }
 0x359   : > { %v2990_v63 = vmul.f32 %v2926_v33, %v2926_v33  ;;  %v2834_v25 = vadd.f32 %v7141_v7, %v2833_v16  ;;  %v3503_v38 = vadd.f32 %v3502_v43, %v3375_v17  ;;  %v2929_v53 = vsub.f32 %v7720_v51, %v2839_v37  ;;  %v7735_v16 = vld [vmem:[#allocation89_spill] sm:$0xff] }
 0x35a   : > { %v4365_v15 = vpop.f32.mrf.mxu1  ;;  %v3378_v47 = vmul.f32 %v7723_v46, %v2991_v23 }
 0x35b   : > { %v3377_v35 = vmul.f32 %v7721_v60, %v2990_v63  ;;  %v2928_v44 = vsub.f32 %v7722_v20, %v2834_v25  ;;  %v2849_v12 = vadd.f32 %v4365_v15, %v7141_v7  ;;  %v3504_v27 = vadd.f32 %v3503_v38, %v3376_v21  ;;  %v7736_v21 = vld [vmem:[#allocation91_spill] sm:$0xff]  ;;  %v3451_v15 = vld [vmem:[%s7375_s9] sm:$0xff] }
 0x35c   : > { %v2843_v41 = vpop.f32.mrf.mxu1  ;;  %v2993_v45 = vmul.f32 %v2929_v53, %v2929_v53 }
 0x35d   : > { %v2992_v3 = vmul.f32 %v2928_v44, %v2928_v44  ;;  %v2844_v32 = vadd.f32 %v7141_v7, %v2843_v41  ;;  %v3505_v10 = vadd.f32 %v3504_v27, %v3377_v35  ;;  %v2931_v50 = vsub.f32 %v7724_v57, %v2849_v12 }
 0x35e   : > { %v4368_v6 = vpop.f32.mrf.mxu1  ;;  %v3380_v49 = vmul.f32 %v7727_v4, %v2993_v45 }
 0x35f   : > { %v3379_v14 = vmul.f32 %v7725_v54, %v2992_v3  ;;  %v2930_v42 = vsub.f32 %v7726_v26, %v2844_v32  ;;  %v2859_v2 = vadd.f32 %v4368_v6, %v7141_v7  ;;  %v3506_v48 = vadd.f32 %v3505_v10, %v3378_v47 }
 0x360   : > { %v2853_v62 = vpop.f32.mrf.mxu1  ;;  %v2995_v52 = vmul.f32 %v2931_v50, %v2931_v50 }
 0x361   : > { %v2994_v55 = vmul.f32 %v2930_v42, %v2930_v42  ;;  %v2854_v30 = vadd.f32 %v7141_v7, %v2853_v62  ;;  %v3507_v61 = vadd.f32 %v3506_v48, %v3379_v14  ;;  %v2933_v40 = vsub.f32 %v7728_v19, %v2859_v2 }
 0x362   : > { %v4371_v59 = vpop.f32.mrf.mxu1  ;;  %v3382_v18 = vmul.f32 %v7731_v58, %v2995_v52 }
 0x363   : > { %v3381_v36 = vmul.f32 %v7729_v5, %v2994_v55  ;;  %v2932_v29 = vsub.f32 %v7730_v8, %v2854_v30  ;;  %v2869_v34 = vadd.f32 %v4371_v59, %v7141_v7  ;;  %v3508_v1 = vadd.f32 %v3507_v61, %v3380_v49 }
 0x364   : > { %v2863_v56 = vpop.f32.mrf.mxu1  ;;  %v2997_v9 = vmul.f32 %v2933_v40, %v2933_v40 }
 0x365   : > { %v2996_v31 = vmul.f32 %v2932_v29, %v2932_v29  ;;  %v2864_v24 = vadd.f32 %v7141_v7, %v2863_v56  ;;  %v3509_v11 = vadd.f32 %v3508_v1, %v3381_v36  ;;  %v2935_v0 = vsub.f32 %v7732_v28, %v2869_v34  ;;  %v7737_v7 = vld [vmem:[#allocation92_spill] sm:$0xff] }
 0x366   : > { %v3384_v63 = vmul.f32 %v7735_v16, %v2997_v9 }
 0x367   : > { %v3383_v17 = vmul.f32 %v7733_v13, %v2996_v31  ;;  %v2934_v33 = vsub.f32 %v7734_v39, %v2864_v24  ;;  %v3510_v37 = vadd.f32 %v3509_v11, %v3382_v18  ;;  %v2999_v22 = vmul.f32 %v2935_v0, %v2935_v0 }
 0x369   : > { %v2998_v43 = vmul.f32 %v2934_v33, %v2934_v33  ;;  %v3511_v25 = vadd.f32 %v3510_v37, %v3383_v17  ;;  %v3386_v51 = vmul.f32 %v7737_v7, %v2999_v22 }
 0x36b   : > { %v3385_v38 = vmul.f32 %v7736_v21, %v2998_v43  ;;  %v3512_v23 = vadd.f32 %v3511_v25, %v3384_v63 }
 0x36d   : > { %v3513_v53 = vadd.f32 %v3512_v23, %v3385_v38 }
 0x36f   : > { %v3514_v60 = vadd.f32 %v3513_v53, %v3386_v51 }
 0x371   : > { %v3515_v35 = vadd.f32 %v3514_v60, %v3451_v15 }
 0x373   : > { %3516 = vst [vmem:[%s7375_s9] sm:$0xff] %v3515_v35 }
 0x374 PF: > { %s29_s1 = sadd.s32 1, %s4961_s1  }
 0x375   : > { %p26_p7 = scmp.ge.s32.totalorder %s29_s1, 5  }
 0x377   :  { %28 = sbr.rel (!%p26_p7) target bundleno = 26 (0x1a), region = 96 }

</bundles_post_ra>
